<compile_context>
chip_gen: v7x
topology: tpu7x:2x2x1
jax: 0.10.0
libtpu: 0.0.40
codegen_flags: <defaults>
</compile_context>

<pallas_src>
import math
import numpy as np
import jax
import jax.numpy as jnp
from jax import lax
from jax.experimental import pallas as pl
from jax.experimental.pallas import tpu as pltpu

# ---- problem sizes (small, consistent with the module) ----
N = 16            # nodes per graph
DIM = 32          # hidden dim
NUM_HEADS = 4
HEAD_DIM = DIM // NUM_HEADS
DROPOUT_P = 0.1   # unused at inference (identity)
B = 16            # total graphs in the batch
G = 8             # graphs per grid step: G*N = 128 rows -> full MXU sublane fill


def _attention_kernel(x_ref, adj_ref, wqkv_ref, wo_ref, out_ref):
    """G graphs per grid step, fully VMEM-resident.

    x_ref:    (G, N, DIM)     f32
    adj_ref:  (G, N, N)       bf16 0/1 mask, adj[g, dst, src]
    wqkv_ref: (DIM+1, 3*DIM)  f32 (bias = last row; Q columns pre-scaled by 1/sqrt(Dh))
    wo_ref:   (DIM+1, DIM)    f32 (bias = last row)
    """
    x = x_ref[...].reshape(G * N, DIM)               # fold batch into the row axis
    adj = adj_ref[...].astype(jnp.float32)           # (G, N, N)

    # Single fused QKV projection for the whole G-graph block: (128,32)@(32,96).
    w_qkv = wqkv_ref[0:DIM, :]                       # (DIM, 3*DIM)
    b_qkv = wqkv_ref[DIM:DIM + 1, :]                 # (1, 3*DIM)
    qkv = jnp.dot(x, w_qkv, preferred_element_type=jnp.float32) + b_qkv   # (G*N, 3*DIM)

    # Additive softmax mask, hoisted out of the head loop (one VPU op).
    neg = (1.0 - adj) * (-1e30)                      # (G, N, N)

    y = jnp.zeros((G * N, DIM), jnp.float32)
    for h in range(NUM_HEADS):                       # static unroll; each iter is G-batched
        lo = h * HEAD_DIM
        qh = qkv[:, lo:lo + HEAD_DIM].reshape(G, N, HEAD_DIM)                    # scaled Q
        kh = qkv[:, DIM + lo:DIM + lo + HEAD_DIM].reshape(G, N, HEAD_DIM)
        vh = qkv[:, 2 * DIM + lo:2 * DIM + lo + HEAD_DIM].reshape(G, N, HEAD_DIM)

        # s[g, dst, src] = <K[g, dst], Q[g, src]>  == u_dot_v on edge src->dst (pre-scaled)
        s = jnp.einsum('gkd,gqd->gkq', kh, qh, preferred_element_type=jnp.float32)
        s = s + neg
        m = jnp.max(s, axis=-1, keepdims=True)
        p = jnp.exp(s - m) * adj                     # un-normalized; masked rows stay exactly 0
        denom = jnp.sum(p, axis=-1, keepdims=True)   # (G, N, 1)

        # out[g, dst] = sum_src p[g, dst, src] * V[g, src]  == u_mul_e_sum
        head_out = jnp.einsum('gkq,gqd->gkd', p, vh, preferred_element_type=jnp.float32)
        # Deferred softmax normalization: scale the small P.V result, not the (N,N) probs.
        inv = pl.reciprocal(jnp.maximum(denom, 1e-30), approx=True)   # EUP slot
        head_out = head_out * inv                    # (G, N, HEAD_DIM)

        # Accumulate through the matching sublane rows of Wo (no lane concat of heads).
        y = y + jnp.dot(head_out.reshape(G * N, HEAD_DIM),
                        wo_ref[lo:lo + HEAD_DIM, :],
                        preferred_element_type=jnp.float32)           # (G*N, DIM)

    y = y + wo_ref[DIM:DIM + 1, :]                   # output bias (last slab row)
    out_ref[...] = y.reshape(G, N, DIM).astype(out_ref.dtype)


def pack_params(p):
    """Pack unfused PyTorch-style params into two slabs (bias = extra row).

    The 1/sqrt(head_dim) attention scale is folded into Wq/bq so the kernel
    needs no per-head scaling.
    """
    scale = 1.0 / math.sqrt(HEAD_DIM)
    wqkv = jnp.concatenate([p["wq"] * scale, p["wk"], p["wv"]], axis=1)    # (DIM, 3*DIM)
    bqkv = jnp.concatenate([p["bq"] * scale, p["bk"], p["bv"]], axis=1)    # (1, 3*DIM)
    wqkv_slab = jnp.concatenate([wqkv, bqkv], axis=0)                      # (DIM+1, 3*DIM)
    wo_slab = jnp.concatenate([p["wo"], p["bo"]], axis=0)                  # (DIM+1, DIM)
    return wqkv_slab, wo_slab


def transformer_attention(x_b, adj_b, wqkv_slab, wo_slab):
    """x_b: (B, N, DIM) f32; adj_b: (B, N_dst, N_src) 0/1 masks."""
    bt = x_b.shape[0]
    assert bt % G == 0, "batch must be a multiple of G (graphs per grid step)"
    return pl.pallas_call(
        _attention_kernel,
        out_shape=jax.ShapeDtypeStruct((bt, N, DIM), jnp.float32),
        grid=(bt // G,),
        in_specs=[
            pl.BlockSpec((G, N, DIM), lambda i: (i, 0, 0)),        # x  (G graphs / step)
            pl.BlockSpec((G, N, N), lambda i: (i, 0, 0)),          # adjacency (bf16)
            pl.BlockSpec((DIM + 1, 3 * DIM), lambda i: (0, 0)),    # fused QKV slab
            pl.BlockSpec((DIM + 1, DIM), lambda i: (0, 0)),        # Wo|bo slab
        ],
        out_specs=pl.BlockSpec((G, N, DIM), lambda i: (i, 0, 0)),
        compiler_params=pltpu.CompilerParams(
            dimension_semantics=("parallel",)),                    # grid=(2,) -> both v7x TCs
    )(x_b, adj_b.astype(jnp.bfloat16), wqkv_slab, wo_slab)


def _init_params(key):
    """Deterministic PyTorch-Linear-like init; weights stored as (in, out)."""
    ks = jax.random.split(key, 8)
    bound = 1.0 / math.sqrt(DIM)

    def lin(kw, kb):
        w = jax.random.uniform(kw, (DIM, DIM), jnp.float32, -bound, bound)
        b = jax.random.uniform(kb, (1, DIM), jnp.float32, -bound, bound)
        return w, b

    wq, bq = lin(ks[0], ks[1])
    wk, bk = lin(ks[2], ks[3])
    wv, bv = lin(ks[4], ks[5])
    wo, bo = lin(ks[6], ks[7])
    return dict(wq=wq, bq=bq, wk=wk, bk=bk, wv=wv, bv=bv, wo=wo, bo=bo)


def _reference_numpy(x, adj, p):
    """Edge-list reference matching DGL u_dot_v / edge_softmax / u_mul_e_sum (one graph)."""
    x = np.asarray(x, np.float64)
    Wq, bq = np.asarray(p["wq"], np.float64), np.asarray(p["bq"], np.float64)
    Wk, bk = np.asarray(p["wk"], np.float64), np.asarray(p["bk"], np.float64)
    Wv, bv = np.asarray(p["wv"], np.float64), np.asarray(p["bv"], np.float64)
    Wo, bo = np.asarray(p["wo"], np.float64), np.asarray(p["bo"], np.float64)
    Q = (x @ Wq + bq).reshape(N, NUM_HEADS, HEAD_DIM)
    K = (x @ Wk + bk).reshape(N, NUM_HEADS, HEAD_DIM)
    V = (x @ Wv + bv).reshape(N, NUM_HEADS, HEAD_DIM)

    adj = np.asarray(adj)
    dst, src = np.nonzero(adj)                       # adj[dst, src] == 1 => edge src -> dst
    scores = np.einsum("ehd,ehd->eh", Q[src], K[dst]) / math.sqrt(HEAD_DIM)

    out = np.zeros((N, NUM_HEADS, HEAD_DIM))
    for j in range(N):
        idx = np.where(dst == j)[0]
        if idx.size == 0:
            continue                                 # zero-in-degree node -> zeros (bias only)
        sc = scores[idx]
        sc = sc - sc.max(axis=0, keepdims=True)
        e = np.exp(sc)
        prob = e / e.sum(axis=0, keepdims=True)
        out[j] = np.einsum("eh,ehd->hd", prob, V[src[idx]])
    return out.reshape(N, DIM) @ Wo + bo


if __name__ == "__main__":
    key = jax.random.PRNGKey(0)
    k_param, k_x, k_adj = jax.random.split(key, 3)

    params = _init_params(k_param)
    x_b = jax.random.normal(k_x, (B, N, DIM), jnp.float32)

    # random directed graphs with self-loops; adj[b, dst, src]
    adj_np = (np.asarray(jax.random.uniform(k_adj, (B, N, N))) < 0.4).astype(np.float32)
    for b in range(B):
        np.fill_diagonal(adj_np[b], 1.0)
    # exercise the zero-in-degree path: node 0 of graph 0 has no incoming edges at all
    adj_np[0, 0, :] = 0.0
    adj_b = jnp.asarray(adj_np)

    wqkv_slab, wo_slab = pack_params(params)

    y = transformer_attention(x_b, adj_b, wqkv_slab, wo_slab)
    y = jax.block_until_ready(y)

    x_np = np.asarray(x_b)
    y_np = np.asarray(y)
    # Tolerance loosened vs exact-divide version: the softmax denominator now goes through
    # the approximate EUP reciprocal (pl.reciprocal(approx=True)); structural bugs would
    # still produce O(1) errors and be caught.
    for b in range(B):
        y_ref = _reference_numpy(x_np[b], adj_np[b], params)
        np.testing.assert_allclose(y_np[b], y_ref, rtol=1e-2, atol=1e-2)

    print("KERNEL_OK")
</pallas_src>

<mosaic_0001>
module attributes {stable_mosaic.version = 11 : i64} {
  func.func @_attention_kernel(%arg0: i32, %arg1: memref<8x16x32xf32, #tpu.memory_space<vmem>>, %arg2: memref<8x16x16xbf16, #tpu.memory_space<vmem>>, %arg3: memref<33x96xf32, #tpu.memory_space<vmem>>, %arg4: memref<33x32xf32, #tpu.memory_space<vmem>>, %arg5: memref<8x16x32xf32, #tpu.memory_space<vmem>>) attributes {dimension_semantics = [#tpu.dimension_semantics<parallel>], iteration_bounds = array<i64: 2>, scalar_prefetch = 0 : i64, scratch_operands = 0 : i64, tpu.core_type = #tpu.core_type<tc>, window_params = [{transform_indices = @transform_0, window_bounds = array<i64: 8, 16, 32>}, {transform_indices = @transform_1, window_bounds = array<i64: 8, 16, 16>}, {pipeline_mode = #tpu.pipeline_mode<synchronous>, transform_indices = @transform_2, window_bounds = array<i64: 33, 96>}, {pipeline_mode = #tpu.pipeline_mode<synchronous>, transform_indices = @transform_3, window_bounds = array<i64: 33, 32>}, {transform_indices = @transform_4, window_bounds = array<i64: 8, 16, 32>}]} {
    %c0 = arith.constant 0 : index
    %c0_0 = arith.constant 0 : index
    %c0_1 = arith.constant 0 : index
    %0 = vector.load %arg1[%c0, %c0_0, %c0_1] : memref<8x16x32xf32, #tpu.memory_space<vmem>>, vector<8x16x32xf32>
    %1 = vector.shape_cast %0 : vector<8x16x32xf32> to vector<128x32xf32>
    %c0_2 = arith.constant 0 : index
    %c0_3 = arith.constant 0 : index
    %c0_4 = arith.constant 0 : index
    %2 = vector.load %arg2[%c0_2, %c0_3, %c0_4] : memref<8x16x16xbf16, #tpu.memory_space<vmem>>, vector<8x16x16xbf16>
    %3 = arith.extf %2 : vector<8x16x16xbf16> to vector<8x16x16xf32>
    %c0_5 = arith.constant 0 : index
    %c0_6 = arith.constant 0 : index
    %4 = vector.load %arg3[%c0_5, %c0_6] : memref<33x96xf32, #tpu.memory_space<vmem>>, vector<32x96xf32>
    %c32 = arith.constant 32 : index
    %c0_7 = arith.constant 0 : index
    %5 = vector.load %arg3[%c32, %c0_7] : memref<33x96xf32, #tpu.memory_space<vmem>>, vector<1x96xf32>
    %cst = arith.constant dense<0.000000e+00> : vector<128x96xf32>
    %6 = tpu.matmul %1, %4, %cst {dimension_numbers = #tpu.dot_dimension_numbers<[1], [0], [0], [1], [0, 0, 1, 1], [], []>} : vector<128x32xf32>, vector<32x96xf32>, vector<128x96xf32> -> vector<128x96xf32>
    %7 = vector.broadcast %5 : vector<1x96xf32> to vector<128x96xf32>
    %8 = arith.addf %6, %7 : vector<128x96xf32>
    %cst_8 = arith.constant 1.000000e+00 : f32
    %9 = vector.broadcast %cst_8 : f32 to vector<8x16x16xf32>
    %10 = arith.subf %9, %3 : vector<8x16x16xf32>
    %cst_9 = arith.constant -1.000000e+30 : f32
    %11 = vector.broadcast %cst_9 : f32 to vector<8x16x16xf32>
    %12 = arith.mulf %10, %11 : vector<8x16x16xf32>
    %cst_10 = arith.constant 0.000000e+00 : f32
    %13 = vector.broadcast %cst_10 : f32 to vector<128x32xf32>
    %14 = vector.extract_strided_slice %8 {offsets = [0, 0], sizes = [128, 8], strides = [1, 1]} : vector<128x96xf32> to vector<128x8xf32>
    %15 = vector.shape_cast %14 : vector<128x8xf32> to vector<8x16x8xf32>
    %16 = vector.extract_strided_slice %8 {offsets = [0, 32], sizes = [128, 8], strides = [1, 1]} : vector<128x96xf32> to vector<128x8xf32>
    %17 = vector.shape_cast %16 : vector<128x8xf32> to vector<8x16x8xf32>
    %18 = vector.extract_strided_slice %8 {offsets = [0, 64], sizes = [128, 8], strides = [1, 1]} : vector<128x96xf32> to vector<128x8xf32>
    %19 = vector.shape_cast %18 : vector<128x8xf32> to vector<8x16x8xf32>
    "tpu.trace_start"() <{level = 10 : i32, message = "gkd,gqd->gkq"}> : () -> ()
    %cst_11 = arith.constant dense<0.000000e+00> : vector<8x16x16xf32>
    %20 = tpu.matmul %17, %15, %cst_11 {dimension_numbers = #tpu.dot_dimension_numbers<[2], [2], [1], [1], [0, 0, 0, 1, 1, 1], [0], [0]>} : vector<8x16x8xf32>, vector<8x16x8xf32>, vector<8x16x16xf32> -> vector<8x16x16xf32>
    "tpu.trace_stop"() : () -> ()
    %21 = arith.addf %20, %12 : vector<8x16x16xf32>
    %cst_12 = arith.constant dense<0xFF800000> : vector<8x16xf32>
    %22 = vector.multi_reduction <maximumf>, %21, %cst_12 [2] : vector<8x16x16xf32> to vector<8x16xf32>
    %23 = vector.shape_cast %22 : vector<8x16xf32> to vector<8x16x1xf32>
    %24 = vector.broadcast %23 : vector<8x16x1xf32> to vector<8x16x16xf32>
    %25 = arith.subf %21, %24 : vector<8x16x16xf32>
    %26 = math.exp %25 : vector<8x16x16xf32>
    %27 = arith.mulf %26, %3 : vector<8x16x16xf32>
    %cst_13 = arith.constant dense<0.000000e+00> : vector<8x16xf32>
    %28 = vector.multi_reduction <add>, %27, %cst_13 [2] : vector<8x16x16xf32> to vector<8x16xf32>
    %29 = vector.shape_cast %28 : vector<8x16xf32> to vector<8x16x1xf32>
    "tpu.trace_start"() <{level = 10 : i32, message = "gkq,gqd->gkd"}> : () -> ()
    %cst_14 = arith.constant dense<0.000000e+00> : vector<8x16x8xf32>
    %30 = tpu.matmul %27, %19, %cst_14 {dimension_numbers = #tpu.dot_dimension_numbers<[2], [1], [1], [2], [0, 0, 0, 1, 1, 2], [0], [0]>} : vector<8x16x16xf32>, vector<8x16x8xf32>, vector<8x16x8xf32> -> vector<8x16x8xf32>
    "tpu.trace_stop"() : () -> ()
    %cst_15 = arith.constant 1.000000e-30 : f32
    %31 = vector.broadcast %cst_15 : f32 to vector<8x16x1xf32>
    %32 = arith.maximumf %29, %31 : vector<8x16x1xf32>
    %33 = tpu.reciprocal %32 {approx = true} : vector<8x16x1xf32> -> vector<8x16x1xf32>
    %34 = vector.broadcast %33 : vector<8x16x1xf32> to vector<8x16x8xf32>
    %35 = arith.mulf %30, %34 : vector<8x16x8xf32>
    %36 = vector.shape_cast %35 : vector<8x16x8xf32> to vector<128x8xf32>
    %c0_16 = arith.constant 0 : index
    %c0_17 = arith.constant 0 : index
    %37 = vector.load %arg4[%c0_16, %c0_17] : memref<33x32xf32, #tpu.memory_space<vmem>>, vector<8x32xf32>
    %cst_18 = arith.constant dense<0.000000e+00> : vector<128x32xf32>
    %38 = tpu.matmul %36, %37, %cst_18 {dimension_numbers = #tpu.dot_dimension_numbers<[1], [0], [0], [1], [0, 0, 1, 1], [], []>} : vector<128x8xf32>, vector<8x32xf32>, vector<128x32xf32> -> vector<128x32xf32>
    %39 = arith.addf %13, %38 : vector<128x32xf32>
    %40 = vector.extract_strided_slice %8 {offsets = [0, 8], sizes = [128, 8], strides = [1, 1]} : vector<128x96xf32> to vector<128x8xf32>
    %41 = vector.shape_cast %40 : vector<128x8xf32> to vector<8x16x8xf32>
    %42 = vector.extract_strided_slice %8 {offsets = [0, 40], sizes = [128, 8], strides = [1, 1]} : vector<128x96xf32> to vector<128x8xf32>
    %43 = vector.shape_cast %42 : vector<128x8xf32> to vector<8x16x8xf32>
    %44 = vector.extract_strided_slice %8 {offsets = [0, 72], sizes = [128, 8], strides = [1, 1]} : vector<128x96xf32> to vector<128x8xf32>
    %45 = vector.shape_cast %44 : vector<128x8xf32> to vector<8x16x8xf32>
    "tpu.trace_start"() <{level = 10 : i32, message = "gkd,gqd->gkq"}> : () -> ()
    %cst_19 = arith.constant dense<0.000000e+00> : vector<8x16x16xf32>
    %46 = tpu.matmul %43, %41, %cst_19 {dimension_numbers = #tpu.dot_dimension_numbers<[2], [2], [1], [1], [0, 0, 0, 1, 1, 1], [0], [0]>} : vector<8x16x8xf32>, vector<8x16x8xf32>, vector<8x16x16xf32> -> vector<8x16x16xf32>
    "tpu.trace_stop"() : () -> ()
    %47 = arith.addf %46, %12 : vector<8x16x16xf32>
    %cst_20 = arith.constant dense<0xFF800000> : vector<8x16xf32>
    %48 = vector.multi_reduction <maximumf>, %47, %cst_20 [2] : vector<8x16x16xf32> to vector<8x16xf32>
    %49 = vector.shape_cast %48 : vector<8x16xf32> to vector<8x16x1xf32>
    %50 = vector.broadcast %49 : vector<8x16x1xf32> to vector<8x16x16xf32>
    %51 = arith.subf %47, %50 : vector<8x16x16xf32>
    %52 = math.exp %51 : vector<8x16x16xf32>
    %53 = arith.mulf %52, %3 : vector<8x16x16xf32>
    %cst_21 = arith.constant dense<0.000000e+00> : vector<8x16xf32>
    %54 = vector.multi_reduction <add>, %53, %cst_21 [2] : vector<8x16x16xf32> to vector<8x16xf32>
    %55 = vector.shape_cast %54 : vector<8x16xf32> to vector<8x16x1xf32>
    "tpu.trace_start"() <{level = 10 : i32, message = "gkq,gqd->gkd"}> : () -> ()
    %cst_22 = arith.constant dense<0.000000e+00> : vector<8x16x8xf32>
    %56 = tpu.matmul %53, %45, %cst_22 {dimension_numbers = #tpu.dot_dimension_numbers<[2], [1], [1], [2], [0, 0, 0, 1, 1, 2], [0], [0]>} : vector<8x16x16xf32>, vector<8x16x8xf32>, vector<8x16x8xf32> -> vector<8x16x8xf32>
    "tpu.trace_stop"() : () -> ()
    %cst_23 = arith.constant 1.000000e-30 : f32
    %57 = vector.broadcast %cst_23 : f32 to vector<8x16x1xf32>
    %58 = arith.maximumf %55, %57 : vector<8x16x1xf32>
    %59 = tpu.reciprocal %58 {approx = true} : vector<8x16x1xf32> -> vector<8x16x1xf32>
    %60 = vector.broadcast %59 : vector<8x16x1xf32> to vector<8x16x8xf32>
    %61 = arith.mulf %56, %60 : vector<8x16x8xf32>
    %62 = vector.shape_cast %61 : vector<8x16x8xf32> to vector<128x8xf32>
    %c8 = arith.constant 8 : index
    %c0_24 = arith.constant 0 : index
    %63 = vector.load %arg4[%c8, %c0_24] : memref<33x32xf32, #tpu.memory_space<vmem>>, vector<8x32xf32>
    %cst_25 = arith.constant dense<0.000000e+00> : vector<128x32xf32>
    %64 = tpu.matmul %62, %63, %cst_25 {dimension_numbers = #tpu.dot_dimension_numbers<[1], [0], [0], [1], [0, 0, 1, 1], [], []>} : vector<128x8xf32>, vector<8x32xf32>, vector<128x32xf32> -> vector<128x32xf32>
    %65 = arith.addf %39, %64 : vector<128x32xf32>
    %66 = vector.extract_strided_slice %8 {offsets = [0, 16], sizes = [128, 8], strides = [1, 1]} : vector<128x96xf32> to vector<128x8xf32>
    %67 = vector.shape_cast %66 : vector<128x8xf32> to vector<8x16x8xf32>
    %68 = vector.extract_strided_slice %8 {offsets = [0, 48], sizes = [128, 8], strides = [1, 1]} : vector<128x96xf32> to vector<128x8xf32>
    %69 = vector.shape_cast %68 : vector<128x8xf32> to vector<8x16x8xf32>
    %70 = vector.extract_strided_slice %8 {offsets = [0, 80], sizes = [128, 8], strides = [1, 1]} : vector<128x96xf32> to vector<128x8xf32>
    %71 = vector.shape_cast %70 : vector<128x8xf32> to vector<8x16x8xf32>
    "tpu.trace_start"() <{level = 10 : i32, message = "gkd,gqd->gkq"}> : () -> ()
    %cst_26 = arith.constant dense<0.000000e+00> : vector<8x16x16xf32>
    %72 = tpu.matmul %69, %67, %cst_26 {dimension_numbers = #tpu.dot_dimension_numbers<[2], [2], [1], [1], [0, 0, 0, 1, 1, 1], [0], [0]>} : vector<8x16x8xf32>, vector<8x16x8xf32>, vector<8x16x16xf32> -> vector<8x16x16xf32>
    "tpu.trace_stop"() : () -> ()
    %73 = arith.addf %72, %12 : vector<8x16x16xf32>
    %cst_27 = arith.constant dense<0xFF800000> : vector<8x16xf32>
    %74 = vector.multi_reduction <maximumf>, %73, %cst_27 [2] : vector<8x16x16xf32> to vector<8x16xf32>
    %75 = vector.shape_cast %74 : vector<8x16xf32> to vector<8x16x1xf32>
    %76 = vector.broadcast %75 : vector<8x16x1xf32> to vector<8x16x16xf32>
    %77 = arith.subf %73, %76 : vector<8x16x16xf32>
    %78 = math.exp %77 : vector<8x16x16xf32>
    %79 = arith.mulf %78, %3 : vector<8x16x16xf32>
    %cst_28 = arith.constant dense<0.000000e+00> : vector<8x16xf32>
    %80 = vector.multi_reduction <add>, %79, %cst_28 [2] : vector<8x16x16xf32> to vector<8x16xf32>
    %81 = vector.shape_cast %80 : vector<8x16xf32> to vector<8x16x1xf32>
    "tpu.trace_start"() <{level = 10 : i32, message = "gkq,gqd->gkd"}> : () -> ()
    %cst_29 = arith.constant dense<0.000000e+00> : vector<8x16x8xf32>
    %82 = tpu.matmul %79, %71, %cst_29 {dimension_numbers = #tpu.dot_dimension_numbers<[2], [1], [1], [2], [0, 0, 0, 1, 1, 2], [0], [0]>} : vector<8x16x16xf32>, vector<8x16x8xf32>, vector<8x16x8xf32> -> vector<8x16x8xf32>
    "tpu.trace_stop"() : () -> ()
    %cst_30 = arith.constant 1.000000e-30 : f32
    %83 = vector.broadcast %cst_30 : f32 to vector<8x16x1xf32>
    %84 = arith.maximumf %81, %83 : vector<8x16x1xf32>
    %85 = tpu.reciprocal %84 {approx = true} : vector<8x16x1xf32> -> vector<8x16x1xf32>
    %86 = vector.broadcast %85 : vector<8x16x1xf32> to vector<8x16x8xf32>
    %87 = arith.mulf %82, %86 : vector<8x16x8xf32>
    %88 = vector.shape_cast %87 : vector<8x16x8xf32> to vector<128x8xf32>
    %c16 = arith.constant 16 : index
    %c0_31 = arith.constant 0 : index
    %89 = vector.load %arg4[%c16, %c0_31] : memref<33x32xf32, #tpu.memory_space<vmem>>, vector<8x32xf32>
    %cst_32 = arith.constant dense<0.000000e+00> : vector<128x32xf32>
    %90 = tpu.matmul %88, %89, %cst_32 {dimension_numbers = #tpu.dot_dimension_numbers<[1], [0], [0], [1], [0, 0, 1, 1], [], []>} : vector<128x8xf32>, vector<8x32xf32>, vector<128x32xf32> -> vector<128x32xf32>
    %91 = arith.addf %65, %90 : vector<128x32xf32>
    %92 = vector.extract_strided_slice %8 {offsets = [0, 24], sizes = [128, 8], strides = [1, 1]} : vector<128x96xf32> to vector<128x8xf32>
    %93 = vector.shape_cast %92 : vector<128x8xf32> to vector<8x16x8xf32>
    %94 = vector.extract_strided_slice %8 {offsets = [0, 56], sizes = [128, 8], strides = [1, 1]} : vector<128x96xf32> to vector<128x8xf32>
    %95 = vector.shape_cast %94 : vector<128x8xf32> to vector<8x16x8xf32>
    %96 = vector.extract_strided_slice %8 {offsets = [0, 88], sizes = [128, 8], strides = [1, 1]} : vector<128x96xf32> to vector<128x8xf32>
    %97 = vector.shape_cast %96 : vector<128x8xf32> to vector<8x16x8xf32>
    "tpu.trace_start"() <{level = 10 : i32, message = "gkd,gqd->gkq"}> : () -> ()
    %cst_33 = arith.constant dense<0.000000e+00> : vector<8x16x16xf32>
    %98 = tpu.matmul %95, %93, %cst_33 {dimension_numbers = #tpu.dot_dimension_numbers<[2], [2], [1], [1], [0, 0, 0, 1, 1, 1], [0], [0]>} : vector<8x16x8xf32>, vector<8x16x8xf32>, vector<8x16x16xf32> -> vector<8x16x16xf32>
    "tpu.trace_stop"() : () -> ()
    %99 = arith.addf %98, %12 : vector<8x16x16xf32>
    %cst_34 = arith.constant dense<0xFF800000> : vector<8x16xf32>
    %100 = vector.multi_reduction <maximumf>, %99, %cst_34 [2] : vector<8x16x16xf32> to vector<8x16xf32>
    %101 = vector.shape_cast %100 : vector<8x16xf32> to vector<8x16x1xf32>
    %102 = vector.broadcast %101 : vector<8x16x1xf32> to vector<8x16x16xf32>
    %103 = arith.subf %99, %102 : vector<8x16x16xf32>
    %104 = math.exp %103 : vector<8x16x16xf32>
    %105 = arith.mulf %104, %3 : vector<8x16x16xf32>
    %cst_35 = arith.constant dense<0.000000e+00> : vector<8x16xf32>
    %106 = vector.multi_reduction <add>, %105, %cst_35 [2] : vector<8x16x16xf32> to vector<8x16xf32>
    %107 = vector.shape_cast %106 : vector<8x16xf32> to vector<8x16x1xf32>
    "tpu.trace_start"() <{level = 10 : i32, message = "gkq,gqd->gkd"}> : () -> ()
    %cst_36 = arith.constant dense<0.000000e+00> : vector<8x16x8xf32>
    %108 = tpu.matmul %105, %97, %cst_36 {dimension_numbers = #tpu.dot_dimension_numbers<[2], [1], [1], [2], [0, 0, 0, 1, 1, 2], [0], [0]>} : vector<8x16x16xf32>, vector<8x16x8xf32>, vector<8x16x8xf32> -> vector<8x16x8xf32>
    "tpu.trace_stop"() : () -> ()
    %cst_37 = arith.constant 1.000000e-30 : f32
    %109 = vector.broadcast %cst_37 : f32 to vector<8x16x1xf32>
    %110 = arith.maximumf %107, %109 : vector<8x16x1xf32>
    %111 = tpu.reciprocal %110 {approx = true} : vector<8x16x1xf32> -> vector<8x16x1xf32>
    %112 = vector.broadcast %111 : vector<8x16x1xf32> to vector<8x16x8xf32>
    %113 = arith.mulf %108, %112 : vector<8x16x8xf32>
    %114 = vector.shape_cast %113 : vector<8x16x8xf32> to vector<128x8xf32>
    %c24 = arith.constant 24 : index
    %c0_38 = arith.constant 0 : index
    %115 = vector.load %arg4[%c24, %c0_38] : memref<33x32xf32, #tpu.memory_space<vmem>>, vector<8x32xf32>
    %cst_39 = arith.constant dense<0.000000e+00> : vector<128x32xf32>
    %116 = tpu.matmul %114, %115, %cst_39 {dimension_numbers = #tpu.dot_dimension_numbers<[1], [0], [0], [1], [0, 0, 1, 1], [], []>} : vector<128x8xf32>, vector<8x32xf32>, vector<128x32xf32> -> vector<128x32xf32>
    %117 = arith.addf %91, %116 : vector<128x32xf32>
    %c32_40 = arith.constant 32 : index
    %c0_41 = arith.constant 0 : index
    %118 = vector.load %arg4[%c32_40, %c0_41] : memref<33x32xf32, #tpu.memory_space<vmem>>, vector<1x32xf32>
    %119 = vector.broadcast %118 : vector<1x32xf32> to vector<128x32xf32>
    %120 = arith.addf %117, %119 : vector<128x32xf32>
    %121 = vector.shape_cast %120 : vector<128x32xf32> to vector<8x16x32xf32>
    %c0_42 = arith.constant 0 : index
    %c0_43 = arith.constant 0 : index
    %c0_44 = arith.constant 0 : index
    %122 = vector.load %arg5[%c0_42, %c0_43, %c0_44] : memref<8x16x32xf32, #tpu.memory_space<vmem>>, vector<8x16x32xf32>
    tpu.vector_store %arg5[%c0_42, %c0_43, %c0_44], %121 {strides = array<i32>} : memref<8x16x32xf32, #tpu.memory_space<vmem>>, vector<8x16x32xf32>,
    return
  }
  func.func @transform_0(%arg0: i32) -> (i32, i32, i32) {
    %c0_i32 = arith.constant 0 : i32
    %c0_i32_0 = arith.constant 0 : i32
    %c0_i32_1 = arith.constant 0 : i32
    return %arg0, %c0_i32, %c0_i32_0 : i32, i32, i32
  }
  func.func @transform_1(%arg0: i32) -> (i32, i32, i32) {
    %c0_i32 = arith.constant 0 : i32
    %c0_i32_0 = arith.constant 0 : i32
    %c0_i32_1 = arith.constant 0 : i32
    return %arg0, %c0_i32, %c0_i32_0 : i32, i32, i32
  }
  func.func @transform_2(%arg0: i32) -> (i32, i32) {
    %c0_i32 = arith.constant 0 : i32
    %c0_i32_0 = arith.constant 0 : i32
    %c0_i32_1 = arith.constant 0 : i32
    return %c0_i32, %c0_i32_0 : i32, i32
  }
  func.func @transform_3(%arg0: i32) -> (i32, i32) {
    %c0_i32 = arith.constant 0 : i32
    %c0_i32_0 = arith.constant 0 : i32
    %c0_i32_1 = arith.constant 0 : i32
    return %c0_i32, %c0_i32_0 : i32, i32
  }
  func.func @transform_4(%arg0: i32) -> (i32, i32, i32) {
    %c0_i32 = arith.constant 0 : i32
    %c0_i32_0 = arith.constant 0 : i32
    %c0_i32_1 = arith.constant 0 : i32
    return %arg0, %c0_i32, %c0_i32_0 : i32, i32, i32
  }
}

</mosaic_0001>

<bundles_post_ra>
// kernel: tpu_custom_call.1
= control target key start
LH: loop header
LB: loop body
LE: loop exit
PB: predicated region body
PF: predicated region fallthrough
CT: control target
= control target key end

     0   :  { %9 = vsyncpa [#allocation3], 0  ;;  %s12347_s0 = inlined_call_operand.hbm [shape: f32[16,16,32], index: 0, kind: input, shape index: {}]   ;;  %s12348_s1 = inlined_call_operand.hbm [shape: bf16[16,16,16], index: 1, kind: input, shape index: {}]   ;;  %s12349_s2 = inlined_call_operand.vmem [shape: f32[33,96], index: 2, kind: input, shape index: {}]   ;;  %s12350_s3 = inlined_call_operand.vmem [shape: f32[33,32], index: 3, kind: input, shape index: {}]   ;;  %s12351_s4 = inlined_call_operand.hbm [shape: f32[16,16,32], index: 4, kind: output, shape index: {}]  }
   0x1   :  { %11 = vsyncpa [#allocation3 + $0x1], 0 }
   0x2   :  { %12 = vsyncpa [#allocation6], 0 }
   0x3   :  { %14 = vsyncpa [#allocation6 + $0x1], 0 }
   0x4   :  { %15 = vsyncpa [#allocation4], 0 }
   0x5   :  { %17 = vsyncpa [#allocation4 + $0x1], 0  ;;  %s10441_s15 = smov 0   ;;  %s10443_s16 = smov 0  }
   0x6   :  { %s10445_s17 = smov 0   ;;  %s10447_s18 = smov 0  }
   0x7 LB: > { %s10462_s19 = sadd.s32 4294967295, %s10394_s18   ;;  %s8014_s20 = sadd.s32 4294967294, %s10394_s18   ;;  %s10394_s18 = sphi %s10447_s18, %s12631_s18   ;;  %s10390_s17 = sphi %s10445_s17, %s12630_s17   ;;  %s10386_s16 = sphi %s10443_s16, %s12629_s16   ;;  %s10382_s15 = sphi %s10441_s15, %s12628_s15  }
   0x8   : > { %s10466_s21 = sadd.s32 1, %s10394_s18   ;;  %s30_s22 = sadd.s32 1, %s10390_s17 }
   0x9   : > { %s27_s23 = ssub.s32 %s10394_s18, %s10466_s21  ;;  %p37_p0 = scmp.ne.s32.totalorder %s10390_s17, %s10386_s16 }
   0xa   : > { %p28_p1 = scmp.eq.s32.totalorder %s27_s23, 0  ;;  %p38_p2 = scmp.eq.s32.totalorder %s10394_s18, 0 }
   0xb   : > { %p43_p3 = scmp.ne.s32.totalorder %s10386_s16, %s10382_s15  ;;  %p44_p4 = scmp.eq.s32.totalorder %s10462_s19, 0 }
   0xc   : > { %s10478_s24 = scalar_select %p28_p1, %s10390_s17, %s30_s22  }
   0xd   : > { %p10480_p5 = por %p38_p2, %p37_p0  ;;  %p10484_p6 = por %p44_p4, %p43_p3 }
   0xe   : > { %p135_p7 = scmp.eq.s32.totalorder %s10462_s19, 1  ;;  %p141_p8 = scmp.eq.s32.totalorder %s8014_s20, 1 }
   0xf   : > { %s12438_s26 = scalar_select %p10484_p6, 1, 0 }
  0x10   : > { %p9677_p10 = scmp.lt.s32.totalorder %s10394_s18, 2  ;;  %p10491_p11 = por %p135_p7, %p37_p0 }
  0x11   : > { %p10495_p12 = por %p141_p8, %p43_p3  ;;  %s10500_s29 = sand.u32 1, %s10390_s17  }
  0x12   : > { %s12439_s27 = scalar_select %p10491_p11, 1, 0 }
  0x13   : > { %s12440_s28 = scalar_select %p10495_p12, 1, 0 }
  0x14   : > { %s8310_s30 = sshll.u32 %s10394_s18, 11  ;;  %s8017_s5 = sshll.u32 %s10500_s29, 7 }
  0x15   : > { %s10507_s8 = scalar_lea.hbm %s12347_s0, %s8310_s30  ;;  %s171_s9 = scalar_lea.vmem [#allocation2], %s8017_s5 }
  0x16   : > { %s179_s10 = sshll.u32 %s171_s9, 4  ;;  %p10511_p13 = pnand %p9677_p10, %p10480_p5  ;;  %s10515_s10 = int_to_ptr.vmem [resolvable:$true] %s179_s10 }
  0x17   : > { %s168_s12 = scalar_lea.sflag [#allocation3], %s10500_s29  ;;  %s10264_s13 = scalar_lea.hbm %s10507_s8, 2048 }
  0x18   : > { %p10265_p0 = scmp.ne.s32.totalorder %s10507_s8, %s10264_s13  ;;  %p10266_p1 = pneg %p10511_p13 }
  0x19   : > { %s10269_s22 = scalar_lea.hbm %s12347_s0, 4096  ;;  %p10270_p4 = scmp.lt.u32.totalorder %s10507_s8, %s12347_s0 }
  0x1a   : > { %p10267_p2 = pnand %p10266_p1, %p10265_p0  ;;  %p10271_p5 = scmp.lt.u32.totalorder %s10269_s22, %s10264_s13 }
  0x1b   : > { %p10273_p8 = scmp.lt.u32.totalorder %s10264_s13, %s10507_s8 }
  0x1c   : > { %p10268_p3 = pneg %p10267_p2  ;;  %p10272_p7 = por %p10271_p5, %p10270_p4 }
  0x1e   : > { %p10274_p10 = por %p10273_p8, %p10272_p7 }
  0x20   : > { %p10275_p9 = pnand %p10274_p10, %p10268_p3 }
  0x22   : > { %10278 = shalt.err (!%p10275_p9)
}
  0x23   : > { %s10279_s30 = scalar_lea.vmem %s10515_s10, 2048  ;;  %s10396_s5 = smov [#allocation2]  }
  0x24   : > { %p10280_p0 = scmp.ne.s32.totalorder %s10515_s10, %s10279_s30  ;;  %s10284_s6 = sshll.u32 %s10396_s5, 4  ;;  %s10285_s6 = int_to_ptr.vmem [resolvable:$false] %s10284_s6 }
  0x25   : > { %s10286_s7 = scalar_lea.vmem %s10285_s6, 4096  ;;  %p10287_p11 = scmp.lt.s32.totalorder %s10515_s10, %s10285_s6 }
  0x26   : > { %p10282_p2 = pnand %p10280_p0, %p10266_p1  ;;  %p10288_p4 = scmp.lt.s32.totalorder %s10286_s7, %s10279_s30 }
  0x28   : > { %p10283_p12 = pneg %p10282_p2  ;;  %p10289_p5 = por %p10288_p4, %p10287_p11 }
  0x2a   : > { %p10290_p7 = pnand %p10289_p5, %p10283_p12 }
  0x2c   : > { %10293 = shalt.err (!%p10290_p7)
}
  0x2d   : > { %s10397_s9 = smov 128   ;;  %s10398_s13 = smov 8  }
  0x2e   : > { %9669 = dma.hbm_to_vmem [thread:$0]  (!%p10511_p13), %s10507_s8, 2048, %s10515_s10, %s168_s12, %s10397_s9, %s10397_s9, %s10398_s13  }
  0x2f   : > { %p8025_p9 = scmp.ge.s32.totalorder %s10394_s18, 1  ;;  %p209_p3 = scmp.lt.s32.totalorder %s10394_s18, 3 }
  0x30   : > { %s8021_s14 = sshll.u32 %s10500_s29, 6  ;;  %s8312_s22 = sshll.u32 %s10394_s18, 10 }
  0x31   : > { %p10548_p11 = pnand %p8025_p9, %p209_p3  ;;  %s193_s23 = scalar_lea.vmem [#allocation5], %s8021_s14 }
  0x32   : > { %s201_s25 = sshll.u32 %s193_s23, 4  ;;  %s10556_s6 = scalar_lea.hbm %s12348_s1, %s8312_s22  ;;  %s10558_s25 = int_to_ptr.vmem [resolvable:$true] %s201_s25 }
  0x33   : > { %s190_s8 = scalar_lea.sflag [#allocation6], %s10500_s29  ;;  %s10294_s10 = scalar_lea.hbm %s10556_s6, 1024 }
  0x34   : > { %p10295_p12 = scmp.ne.s32.totalorder %s10556_s6, %s10294_s10  ;;  %s10299_s9 = scalar_lea.hbm %s12348_s1, 2048 }
  0x35   : > { %p10300_p0 = scmp.lt.u32.totalorder %s10556_s6, %s12348_s1  ;;  %p10301_p2 = scmp.lt.u32.totalorder %s10299_s9, %s10294_s10 }
  0x36   : > { %p10297_p8 = pnand %p10295_p12, %p10266_p1  ;;  %p10303_p5 = scmp.lt.u32.totalorder %s10294_s10, %s10556_s6 }
  0x37   : > { %p10302_p4 = por %p10301_p2, %p10300_p0 }
  0x38   : > { %p10298_p10 = pneg %p10297_p8 }
  0x39   : > { %p10304_p7 = por %p10303_p5, %p10302_p4 }
  0x3b   : > { %p10305_p9 = pnand %p10304_p7, %p10298_p10 }
  0x3d   : > { %10308 = shalt.err (!%p10305_p9)
}
  0x3e   : > { %s10309_s22 = scalar_lea.vmem %s10558_s25, 1024  ;;  %s10399_s23 = smov [#allocation5]  }
  0x3f   : > { %p10310_p3 = scmp.ne.s32.totalorder %s10558_s25, %s10309_s22  ;;  %s10314_s30 = sshll.u32 %s10399_s23, 4  ;;  %s10315_s30 = int_to_ptr.vmem [resolvable:$false] %s10314_s30 }
  0x40   : > { %s10316_s5 = scalar_lea.vmem %s10315_s30, 2048  ;;  %p10317_p6 = scmp.lt.s32.totalorder %s10558_s25, %s10315_s30 }
  0x41   : > { %p10312_p12 = pnand %p10310_p3, %p10266_p1  ;;  %p10318_p0 = scmp.lt.s32.totalorder %s10316_s5, %s10309_s22 }
  0x43   : > { %p10313_p8 = pneg %p10312_p12  ;;  %p10319_p2 = por %p10318_p0, %p10317_p6 }
  0x45   : > { %p10320_p4 = pnand %p10319_p2, %p10313_p8 }
  0x47   : > { %10323 = shalt.err (!%p10320_p4)
}
  0x48   : > { %s10400_s10 = smov 64   ;;  %s10401_s12 = smov 4  }
  0x49   : > { %9672 = dma.hbm_to_vmem [thread:$0]  (!%p10511_p13), %s10556_s6, 1024, %s10558_s25, %s190_s8, %s10400_s10, %s10400_s10, %s10401_s12  }
  0x4a   : > { %213 = sbr.rel (%p10548_p11) target bundleno = 3102 (0xc1e), region = 36 }
  0x51   : > { %s10589_s7 = sand.u32 1, %s10386_s16   ;;  %p12443_p6 = scmp.ne.s32.totalorder %s12438_s26, 0 }
  0x52   : > { %s8026_s9 = sshll.u32 %s10589_s7, 7  ;;  %s216_s13 = scalar_lea.sflag [#allocation3], %s10589_s7 }
  0x53   : > { %s10595_s14 = scalar_lea.vmem [#allocation2], %s8026_s9 }
  0x54   : > { %10369 = dma.done.wait (%p12443_p6), %s216_s13, 2048  }
  0x55   : > { %10371 = vsyncadd (%p12443_p6), %s216_s13, 4294965248  ;;  %s8027_s29 = sshll.u32 %s10589_s7, 6  ;;  %s225_s11 = scalar_lea.sflag [#allocation6], %s10589_s7 }
  0x56   : > { %s10603_s20 = scalar_lea.vmem [#allocation5], %s8027_s29 }
  0x57   : > { %10373 = dma.done.wait (%p12443_p6), %s225_s11, 1024  }
  0x58   : > { %10375 = vsyncadd (%p12443_p6), %s225_s11, 4294966272  ;;  %vm318_vm0 = vcmask 261120   ;;  %v309_v0 = vld [vmem:[%s12349_s2] sm:$0xff]  ;;  %v310_v1 = vld [vmem:[%s12349_s2 + $0x8] sm:$0xff]  ;;  %vm550_vm1 = vcmask 64512   ;;  %v12446_v27 = vmov 0 }
  0x59   : > { %v311_v2 = vld [vmem:[%s12349_s2 + $0x10] sm:$0xff]  ;;  %v9282_v3 = vpack.c.bf16 %v310_v1, %v309_v0  ;;  %v312_v4 = vld [vmem:[%s12349_s2 + $0x18] sm:$0xff]  ;;  %v261_v5 = vld [vmem:[%s10595_s14] sm:$0xff]  ;;  %s10402_s13 = smov 96   ;;  %s10404_s29 = smov 120   ;;  %vm1257_vm3 = vcmask 130048  }
  0x5a   : > { %v9286_v6 = vpack.c.bf16 %v312_v4, %v311_v2  ;;  %8706 = vmatprep.mubr.msk.f32.mxu0 %vm318_vm0, %v261_v5  ;;  %v262_v7 = vld [vmem:[%s10595_s14 + $0x8] sm:$0xff]  ;;  %v263_v8 = vld [vmem:[%s10595_s14 + $0x10] sm:$0xff]  ;;  %v264_v9 = vld [vmem:[%s10595_s14 + $0x18] sm:$0xff]  ;;  %s10405_s11 = smov 88   ;;  %s10407_s25 = smov 112  }
  0x5b   : > { %9283 = vmatprep.subr.bf16.mxu0 %v9282_v3  ;;  %v265_v10 = vld [vmem:[%s10595_s14 + $0x20] sm:$0xff]  ;;  %v266_v11 = vld [vmem:[%s10595_s14 + $0x28] sm:$0xff]  ;;  %v267_v12 = vld [vmem:[%s10595_s14 + $0x30] sm:$0xff]  ;;  %s10408_s22 = smov 80   ;;  %s10409_s23 = smov 48  }
  0x5c   : > { %9285 = vmatpush3.bf16.msra.mxu0 %v9282_v3  ;;  %v268_v13 = vld [vmem:[%s10595_s14 + $0x38] sm:$0xff]  ;;  %v269_v14 = vld [vmem:[%s10595_s14 + $0x40] sm:$0xff]  ;;  %v270_v15 = vld [vmem:[%s10595_s14 + $0x48] sm:$0xff]  ;;  %s10410_s5 = smov 104   ;;  %s10411_s10 = smov 72  }
  0x5d   : > { %9287 = vmatprep.subr.bf16.mxu0 %v9286_v6  ;;  %v271_v16 = vld [vmem:[%s10595_s14 + $0x50] sm:$0xff]  ;;  %v272_v17 = vld [vmem:[%s10595_s14 + $0x58] sm:$0xff]  ;;  %v273_v18 = vld [vmem:[%s10595_s14 + $0x60] sm:$0xff]  ;;  %s12252_s6 = scalar_lea.vmem [#allocation7], %s8026_s9  ;;  %s8314_s9 = sshll.u32 %s10462_s19, 11 }
  0x5e   : > { %v274_v19 = vld [vmem:[%s10595_s14 + $0x68] sm:$0xff]  ;;  %v275_v20 = vld [vmem:[%s10595_s14 + $0x70] sm:$0xff]  ;;  %v276_v21 = vld [vmem:[%s10595_s14 + $0x78] sm:$0xff]  ;;  %s10403_s14 = smov 64   ;;  %s7918_s8 = sshll.u32 %s12252_s6, 4  ;;  %s12299_s8 = int_to_ptr.vmem [resolvable:$true] %s7918_s8 }
  0x5f   : > { %v8029_v22 = vld [vmem:[%s12349_s2 + $0x20] ss:$0 sm:$0xff]  ;;  %vm10662_vm2 = vmpackc.low %vm550_vm1, %vm550_vm1  ;;  %s12297_s30 = scalar_lea.hbm %s12351_s4, %s8314_s9  ;;  %s7904_s19 = scalar_lea.sflag [#allocation4], %s10589_s7 }
  0x60   : > { %9289 = vmatpush3.bf16.msra.mxu0 %v9286_v6  ;;  %v12447_v27 = vsel %vm10662_vm2, 4294967295, %v12446_v27  ;;  %s10324_s26 = scalar_lea.vmem %s12299_s8, 2048  ;;  %p12625_p1 = scmp.ne.s32.totalorder %s12439_s27, 0 }
  0x61   : > { %12448 = vst [vmem:[#allocation13_spill] sm:$0xff] %v12447_v27  ;;  %p10325_p13 = scmp.ne.s32.totalorder %s12299_s8, %s10324_s26 }
  0x63   : > { %8707 = vmatmul.mubr.msk.f32.vlgmr.msra.gmra.mrb[0].mxu0 %vm318_vm0, %v262_v7  ;;  %p10326_p11 = pnand %p10325_p13, %p12625_p1 }
  0x64   : > { %8709 = vmatprep.mubr.msk.f32.mxu0 %vm318_vm0, %v263_v8 }
  0x65   : > { %p10327_p10 = pneg %p10326_p11 }
  0x67   : > { %8710 = vmatmul.mubr.msk.f32.gmra.mrb[2].mxu0 %vm318_vm0, %v264_v9 }
  0x68   : > { %8712 = vmatprep.mubr.msk.f32.mxu0 %vm318_vm0, %v265_v10 }
  0x6b   : > { %8713 = vmatmul.mubr.msk.f32.gmra.mrb[4].mxu0 %vm318_vm0, %v266_v11 }
  0x6c   : > { %8715 = vmatprep.mubr.msk.f32.mxu0 %vm318_vm0, %v267_v12 }
  0x6f   : > { %8716 = vmatmul.mubr.msk.f32.gmra.mrb[6].mxu0 %vm318_vm0, %v268_v13 }
  0x70   : > { %8718 = vmatprep.mubr.msk.f32.mxu0 %vm318_vm0, %v269_v14 }
  0x73   : > { %8719 = vmatmul.mubr.msk.f32.gmra.mrb[8].mxu0 %vm318_vm0, %v270_v15 }
  0x74   : > { %8721 = vmatprep.mubr.msk.f32.mxu0 %vm318_vm0, %v271_v16 }
  0x77   : > { %8722 = vmatmul.mubr.msk.f32.gmra.mrb[10].mxu0 %vm318_vm0, %v272_v17 }
  0x78   : > { %8724 = vmatprep.mubr.msk.f32.mxu0 %vm318_vm0, %v273_v18 }
  0x7b   : > { %8725 = vmatmul.mubr.msk.f32.gmra.mrb[12].mxu0 %vm318_vm0, %v274_v19 }
  0x7c   : > { %8727 = vmatprep.mubr.msk.f32.mxu0 %vm318_vm0, %v275_v20 }
  0x7f   : > { %8728 = vmatmul.mubr.msk.f32.gmra.mrb[14].mxu0 %vm318_vm0, %v276_v21 }
 0x136   : > { %v8708_v23 = vpop.f32.mrb[0].mxu0 }
 0x137   : > { %v10656_v24 = vadd.f32 %v8708_v23, %v8029_v22  ;;  %v433_v25 = vpop.f32.mrb[1].mxu0 }
 0x138   : > { %v10658_v26 = vadd.f32 %v8029_v22, %v433_v25 }
 0x139   : > { %12444 = vst [vmem:[#allocation11_spill] sm:$0xff] %v10656_v24 }
 0x13a   : > { %12445 = vst [vmem:[#allocation12_spill] sm:$0xff] %v10658_v26  ;;  %v8711_v28 = vpop.f32.mrb[2].mxu0  ;;  %546 = vrot.lane.b32.xlu0 %v10658_v26, %s10402_s13  ;;  %v9290_v29 = vpack.c.bf16 %v10656_v24, %v10658_v26  ;;  %v10756_v61 = vpack.i.bf16 %v10656_v24, %v10658_v26 }
 0x13b   : > { %v10670_v30 = vadd.f32 %v8711_v28, %v8029_v22  ;;  %v443_v31 = vpop.f32.mrb[3].mxu0 }
 0x13c   : > { %v10672_v32 = vadd.f32 %v8029_v22, %v443_v31  ;;  %9292 = vmatprep.subr.msk.bf16.mxu1 %vm10662_vm2, %v9290_v29 }
 0x13d   : > { %12449 = vst [vmem:[#allocation14_spill] sm:$0xff] %v10670_v30  ;;  %9295 = vmatpush3.bf16.xpose.msk.msra.mxu1 %vm10662_vm2, %v9290_v29 }
 0x13e   : > { %12450 = vst [vmem:[#allocation15_spill] sm:$0xff] %v10672_v32  ;;  %v8714_v33 = vpop.f32.mrb[4].mxu0  ;;  %636 = vrot.lane.b32.xlu1 %v10672_v32, %s10402_s13  ;;  %548 = vrot.lane.b32.xlu0 %v10656_v24, %s10402_s13  ;;  %v10684_v34 = vpack.c.bf16 %v10670_v30, %v10672_v32  ;;  %v10749_v60 = vpack.i.bf16 %v10670_v30, %v10672_v32 }
 0x13f   : > { %v453_v35 = vpop.f32.mrb[5].mxu0  ;;  %v10691_v37 = vadd.f32 %v8714_v33, %v8029_v22 }
 0x140   : > { %v10686_v36 = vadd.f32 %v8029_v22, %v453_v35  ;;  %9298 = vmatprep.subr.msk.bf16.mxu1 %vm10662_vm2, %v10684_v34 }
 0x141   : > { %12451 = vst [vmem:[#allocation16_spill] sm:$0xff] %v10691_v37 }
 0x142   : > { %v8717_v38 = vpop.f32.mrb[6].mxu0  ;;  %638 = vrot.lane.b32.xlu1 %v10670_v30, %s10402_s13  ;;  %725 = vrot.lane.b32.xlu0 %v10686_v36, %s10402_s13  ;;  %v10766_v63 = vpack.i.bf16 %v10691_v37, %v10686_v36  ;;  %v9302_v7 = vpack.c.bf16 %v10691_v37, %v10686_v36 }
 0x143   : > { %v463_v39 = vpop.f32.mrb[7].mxu0  ;;  %v10699_v41 = vadd.f32 %v8717_v38, %v8029_v22 }
 0x144   : > { %v10697_v40 = vadd.f32 %v8029_v22, %v463_v39 }
 0x146   : > { %12452 = vst [vmem:[#allocation17_spill] sm:$0xff] %v10697_v40  ;;  %v8720_v42 = vpop.f32.mrb[8].mxu0  ;;  %727 = vrot.lane.b32.xlu1 %v10691_v37, %s10402_s13  ;;  %814 = vrot.lane.b32.xlu0 %v10697_v40, %s10402_s13  ;;  %v10776_v1 = vpack.i.bf16 %v10699_v41, %v10697_v40  ;;  %v9308_v12 = vpack.c.bf16 %v10699_v41, %v10697_v40 }
 0x147   : > { %v473_v43 = vpop.f32.mrb[9].mxu0  ;;  %v10705_v44 = vadd.f32 %v8720_v42, %v8029_v22 }
 0x148   : > { %v10707_v45 = vadd.f32 %v8029_v22, %v473_v43 }
 0x149   : > { %12453 = vst [vmem:[#allocation18_spill] sm:$0xff] %v10705_v44 }
 0x14a   : > { %12454 = vst [vmem:[#allocation19_spill] sm:$0xff] %v10707_v45  ;;  %v8723_v46 = vpop.f32.mrb[10].mxu0  ;;  %816 = vrot.lane.b32.xlu1 %v10699_v41, %s10402_s13  ;;  %903 = vrot.lane.b32.xlu0 %v10707_v45, %s10402_s13  ;;  %v9314_v47 = vpack.c.bf16 %v10705_v44, %v10707_v45  ;;  %v10760_v62 = vpack.i.bf16 %v10705_v44, %v10707_v45 }
 0x14b   : > { %v483_v48 = vpop.f32.mrb[11].mxu0  ;;  %v10721_v50 = vadd.f32 %v8723_v46, %v8029_v22 }
 0x14c   : > { %v10715_v49 = vadd.f32 %v8029_v22, %v483_v48  ;;  %9316 = vmatprep.subr.msk.bf16.mxu0 %vm10662_vm2, %v9314_v47 }
 0x14d   : > { %9319 = vmatpush3.bf16.xpose.msk.msra.mxu0 %vm10662_vm2, %v9314_v47  ;;  %12456 = vst [vmem:[#allocation21_spill] sm:$0xff] %v10721_v50 }
 0x14e   : > { %12455 = vst [vmem:[#allocation20_spill] sm:$0xff] %v10715_v49  ;;  %v8726_v51 = vpop.f32.mrb[12].mxu0  ;;  %905 = vrot.lane.b32.xlu1 %v10705_v44, %s10402_s13  ;;  %992 = vrot.lane.b32.xlu0 %v10715_v49, %s10402_s13  ;;  %v10783_v2 = vpack.i.bf16 %v10721_v50, %v10715_v49  ;;  %v9320_v17 = vpack.c.bf16 %v10721_v50, %v10715_v49 }
 0x14f   : > { %v493_v52 = vpop.f32.mrb[13].mxu0  ;;  %v10727_v53 = vadd.f32 %v8726_v51, %v8029_v22 }
 0x150   : > { %v10729_v54 = vadd.f32 %v8029_v22, %v493_v52 }
 0x151   : > { %12457 = vst [vmem:[#allocation22_spill] sm:$0xff] %v10727_v53 }
 0x152   : > { %12458 = vst [vmem:[#allocation23_spill] sm:$0xff] %v10729_v54  ;;  %v8729_v55 = vpop.f32.mrb[14].mxu0  ;;  %994 = vrot.lane.b32.xlu1 %v10721_v50, %s10402_s13  ;;  %1081 = vrot.lane.b32.xlu0 %v10729_v54, %s10402_s13  ;;  %v9326_v56 = vpack.c.bf16 %v10727_v53, %v10729_v54  ;;  %v10770_v0 = vpack.i.bf16 %v10727_v53, %v10729_v54 }
 0x153   : > { %v503_v57 = vpop.f32.mrb[15].mxu0  ;;  %v10741_v59 = vadd.f32 %v8729_v55, %v8029_v22  ;;  %v8316_v55 = vld [vmem:[%s10603_s20] sm:$0xff]  }
 0x154   : > { %v10737_v58 = vadd.f32 %v8029_v22, %v503_v57  ;;  %9328 = vmatprep.subr.msk.bf16.mxu0 %vm10662_vm2, %v9326_v56  ;;  %12461 = vst [vmem:[#allocation26_spill] sm:$0xff] %v10770_v0  ;;  %v10851_v57 = vunpack.c.l.bf16 %v8316_v55 }
 0x155   : > { %12460 = vst [vmem:[#allocation25_spill] sm:$0xff] %v10741_v59 }
 0x156   : > { %12459 = vst [vmem:[#allocation24_spill] sm:$0xff] %v10737_v58  ;;  %1083 = vrot.lane.b32.xlu1 %v10727_v53, %s10402_s13  ;;  %1170 = vrot.lane.b32.xlu0 %v10737_v58, %s10402_s13  ;;  %v10794_v3 = vpack.i.bf16 %v10741_v59, %v10737_v58  ;;  %v9332_v22 = vpack.c.bf16 %v10741_v59, %v10737_v58  ;;  %12463 = vst [vmem:[#allocation28_spill] sm:$0xff] %v10851_v57 }
 0x15a   : > { %1172 = vrot.lane.b32.xlu1 %v10741_v59, %s10402_s13  ;;  %9734 = vrot.lane.b32.xlu0 %v10749_v60, %s10403_s14 }
 0x15e   : > { %9729 = vrot.lane.b32.xlu1 %v10756_v61, %s10403_s14  ;;  %9749 = vrot.lane.b32.xlu0 %v10760_v62, %s10403_s14 }
 0x162   : > { %9739 = vrot.lane.b32.xlu1 %v10766_v63, %s10403_s14  ;;  %9759 = vrot.lane.b32.xlu0 %v10770_v0, %s10403_s14 }
 0x166   : > { %9744 = vrot.lane.b32.xlu1 %v10776_v1, %s10403_s14  ;;  %9764 = vrot.lane.b32.xlu0 %v10756_v61, %s10404_s29 }
 0x16a   : > { %9754 = vrot.lane.b32.xlu1 %v10783_v2, %s10403_s14  ;;  %9774 = vrot.lane.b32.xlu0 %v10766_v63, %s10404_s29 }
 0x16e   : > { %9769 = vrot.lane.b32.xlu1 %v10749_v60, %s10404_s29 }
 0x172   : > { %2163 = vrot.lane.b32.xlu1 %v10658_v26, %s10405_s11 }
 0x176   : > { %9779 = vrot.lane.b32.xlu1 %v10794_v3, %s10403_s14  ;;  %s10412_s14 = smov 40  }
 0x1ac   : > { %v547_v4 = vpop.permute.xlu0 %546 }
 0x1ad   : > { %8734 = vmatprep.mubr.msk.f32.mxu1 %vm550_vm1, %v547_v4 }
 0x1b0   : > { %v637_v5 = vpop.permute.xlu1 %636  ;;  %v549_v6 = vpop.permute.xlu0 %548 }
 0x1b1   : > { %8735 = vmatmul.mubr.msk.f32.vlgmr.msra.gmra.mrb[0].mxu1 %vm550_vm1, %v549_v6  ;;  %v8347_v6 = vld [vmem:[%s10603_s20 + $0x8] sm:$0xff]  }
 0x1b2   : > { %9301 = vmatpush3.bf16.xpose.msk.msra.mxu1 %vm10662_vm2, %v10684_v34  ;;  %8741 = vmatprep.mubr.msk.f32.mxu1 %vm550_vm1, %v637_v5  ;;  %v512_v5 = vsub.f32 1.0, %v10851_v57 }
 0x1b3   : > { %9304 = vmatprep.subr.msk.bf16.mxu1 %vm10662_vm2, %v9302_v7 }
 0x1b4   : > { %v639_v8 = vpop.permute.xlu1 %638  ;;  %v726_v9 = vpop.permute.xlu0 %725 }
 0x1b8   : > { %v728_v10 = vpop.permute.xlu1 %727  ;;  %v815_v11 = vpop.permute.xlu0 %814 }
 0x1b9   : > { %8742 = vmatmul.mubr.msk.f32.vlgmr.msra.gmra.mrb[2].mxu1 %vm550_vm1, %v639_v8  ;;  %v10858_v8 = vunpack.c.h.bf16 %v8347_v6 }
 0x1ba   : > { %9307 = vmatpush3.bf16.xpose.msk.msra.mxu1 %vm10662_vm2, %v9302_v7  ;;  %8748 = vmatprep.mubr.msk.f32.mxu1 %vm550_vm1, %v726_v9  ;;  %v10860_v9 = vmul.f32 -1e+30, %v512_v5 }
 0x1bb   : > { %9310 = vmatprep.subr.msk.bf16.mxu1 %vm10662_vm2, %v9308_v12 }
 0x1bc   : > { %v817_v13 = vpop.permute.xlu1 %816  ;;  %v904_v14 = vpop.permute.xlu0 %903  ;;  %12465 = vst [vmem:[#allocation30_spill] sm:$0xff] %v10860_v9 }
 0x1bd   : > { %8762 = vmatprep.mubr.msk.f32.mxu0 %vm550_vm1, %v904_v14  ;;  %v515_v14 = vsub.f32 1.0, %v10858_v8 }
 0x1c0   : > { %v906_v15 = vpop.permute.xlu1 %905  ;;  %v993_v16 = vpop.permute.xlu0 %992 }
 0x1c1   : > { %8749 = vmatmul.mubr.msk.f32.vlgmr.msra.gmra.mrb[4].mxu1 %vm550_vm1, %v728_v10  ;;  %8763 = vmatmul.mubr.msk.f32.vlgmr.msra.gmra.mrb[16].mxu0 %vm550_vm1, %v906_v15  ;;  %v10862_v10 = vunpack.c.l.bf16 %v8347_v6  ;;  %v8352_v6 = vld [vmem:[%s10603_s20 + $0x30] sm:$0xff]  }
 0x1c2   : > { %9313 = vmatpush3.bf16.xpose.msk.msra.mxu1 %vm10662_vm2, %v9308_v12  ;;  %8755 = vmatprep.mubr.msk.f32.mxu1 %vm550_vm1, %v815_v11 }
 0x1c3   : > { %9331 = vmatpush3.bf16.xpose.msk.msra.mxu0 %vm10662_vm2, %v9326_v56  ;;  %9322 = vmatprep.subr.msk.bf16.mxu1 %vm10662_vm2, %v9320_v17  ;;  %v10849_v56 = vunpack.c.h.bf16 %v8316_v55 }
 0x1c4   : > { %v995_v18 = vpop.permute.xlu1 %994  ;;  %v1082_v19 = vpop.permute.xlu0 %1081 }
 0x1c5   : > { %8776 = vmatprep.mubr.msk.f32.mxu0 %vm550_vm1, %v1082_v19  ;;  %12462 = vst [vmem:[#allocation27_spill] sm:$0xff] %v10849_v56  ;;  %v513_v4 = vsub.f32 1.0, %v10849_v56 }
 0x1c7   : > { %v10856_v7 = vmul.f32 -1e+30, %v513_v4 }
 0x1c8   : > { %v1084_v20 = vpop.permute.xlu1 %1083  ;;  %v1171_v21 = vpop.permute.xlu0 %1170 }
 0x1c9   : > { %8756 = vmatmul.mubr.msk.f32.vlgmr.msra.gmra.mrb[6].mxu1 %vm550_vm1, %v817_v13  ;;  %12464 = vst [vmem:[#allocation29_spill] sm:$0xff] %v10856_v7 }
 0x1ca   : > { %9325 = vmatpush3.bf16.xpose.msk.msra.mxu1 %vm10662_vm2, %v9320_v17  ;;  %8769 = vmatprep.mubr.msk.f32.mxu1 %vm550_vm1, %v993_v16  ;;  %v514_v16 = vsub.f32 1.0, %v10862_v10  ;;  %v8348_v17 = vld [vmem:[%s10603_s20 + $0x10] sm:$0xff]  }
 0x1cb   : > { %9334 = vmatprep.subr.msk.bf16.mxu1 %vm10662_vm2, %v9332_v22  ;;  %8777 = vmatmul.mubr.msk.f32.vlgmr.msra.gmra.mrb[18].mxu0 %vm550_vm1, %v1084_v20  ;;  %v10877_v20 = vmul.f32 -1e+30, %v515_v14 }
 0x1cc   : > { %v1173_v23 = vpop.permute.xlu1 %1172  ;;  %v9735_v25 = vpop.permute.xlu0 %9734 }
 0x1cd   : > { %v9737_v28 = vunpack.i.h.bf16 %v9735_v25  ;;  %v9736_v29 = vunpack.i.l.bf16 %v9735_v25  ;;  %12466 = vst [vmem:[#allocation31_spill] sm:$0xff] %v10877_v20 }
 0x1cf   : > { %v9342_v31 = vpack.c.bf16 %v9737_v28, %v9736_v29  ;;  %v8350_v28 = vld [vmem:[%s10603_s20 + $0x20] sm:$0xff]  }
 0x1d0   : > { %v9730_v33 = vpop.permute.xlu1 %9729 }
 0x1d1   : > { %v9732_v34 = vunpack.i.h.bf16 %v9730_v33  ;;  %v9731_v35 = vunpack.i.l.bf16 %v9730_v33  ;;  %8770 = vmatmul.mubr.msk.f32.vlgmr.msra.gmra.mrb[8].mxu1 %vm550_vm1, %v995_v18 }
 0x1d2   : > { %9337 = vmatpush3.bf16.xpose.msk.msra.mxu1 %vm10662_vm2, %v9332_v22  ;;  %8783 = vmatprep.mubr.msk.f32.mxu1 %vm550_vm1, %v1171_v21  ;;  %v10879_v21 = vunpack.c.h.bf16 %v8348_v17  ;;  %v10881_v22 = vmul.f32 -1e+30, %v514_v16 }
 0x1d3   : > { %9343 = vmatprep.subr.bf16.mxu1 %v9342_v31  ;;  %v9338_v38 = vpack.c.bf16 %v9732_v34, %v9731_v35  ;;  %v8349_v35 = vld [vmem:[%s10603_s20 + $0x18] sm:$0xff]  }
 0x1d4   : > { %v9740_v39 = vpop.permute.xlu1 %9739  ;;  %12467 = vst [vmem:[#allocation32_spill] sm:$0xff] %v10881_v22  ;;  %v517_v33 = vsub.f32 1.0, %v10879_v21  ;;  %v10910_v5 = vunpack.c.l.bf16 %v8349_v35 }
 0x1d5   : > { %v9742_v42 = vunpack.i.h.bf16 %v9740_v39  ;;  %v9741_v43 = vunpack.i.l.bf16 %v9740_v39  ;;  %9339 = vmatprep.subr.bf16.mxu0 %v9338_v38 }
 0x1d6   : > { %9341 = vmatpush3.bf16.msra.mxu0 %v9338_v38 }
 0x1d7   : > { %v10841_v46 = vpack.c.bf16 %v9742_v42, %v9741_v43  ;;  %v10897_v42 = vunpack.c.h.bf16 %v8350_v28 }
 0x1d8   : > { %v9745_v47 = vpop.permute.xlu1 %9744 }
 0x1d9   : > { %v9747_v48 = vunpack.i.h.bf16 %v9745_v47  ;;  %v9746_v51 = vunpack.i.l.bf16 %v9745_v47  ;;  %8784 = vmatmul.mubr.msk.f32.vlgmr.msra.gmra.mrb[10].mxu1 %vm550_vm1, %v1173_v23  ;;  %9347 = vmatprep.subr.bf16.mxu0 %v10841_v46  ;;  %v10883_v23 = vunpack.c.l.bf16 %v8348_v17  ;;  %v10901_v47 = vmul.f32 -1e+30, %v517_v33 }
 0x1da   : > { %9345 = vmatpush3.bf16.msra.mxu1 %v9342_v31  ;;  %v521_v4 = vsub.f32 1.0, %v10897_v42 }
 0x1db   : > { %v10845_v52 = vpack.c.bf16 %v9747_v48, %v9746_v51  ;;  %v516_v39 = vsub.f32 1.0, %v10883_v23  ;;  %12468 = vst [vmem:[#allocation33_spill] sm:$0xff] %v10901_v47  ;;  %v10903_v48 = vunpack.c.h.bf16 %v8349_v35  ;;  %v10905_v51 = vunpack.c.l.bf16 %v8350_v28 }
 0x1dc   : > { %v10920_v28 = vunpack.c.l.bf16 %v8352_v6  ;;  %v10925_v33 = vmul.f32 -1e+30, %v521_v4 }
 0x1dd   : > { %9351 = vmatprep.subr.bf16.mxu1 %v10845_v52  ;;  %v10907_v55 = vmul.f32 -1e+30, %v516_v39  ;;  %v8351_v39 = vld [vmem:[%s10603_s20 + $0x28] sm:$0xff]  }
 0x1de   : > { %12470 = vst [vmem:[#allocation35_spill] sm:$0xff] %v10925_v33  ;;  %v524_v26 = vsub.f32 1.0, %v10920_v28 }
 0x1df   : > { %12469 = vst [vmem:[#allocation34_spill] sm:$0xff] %v10907_v55 }
 0x284   : > { %v8736_v11 = vpop.f32.mrb[0].mxu1 }
 0x285   : > { %v10865_v12 = vadd.f32 %v8736_v11, %v10856_v7  ;;  %v625_v13 = vpop.f32.mrb[1].mxu1  ;;  %v10951_v7 = vmul.f32 -1e+30, %v524_v26 }
 0x286   : > { %v10869_v15 = vadd.f32 %v625_v13, %v10860_v9 }
 0x287   : > { %v1261_v18 = vsel %vm1257_vm3, %v10865_v12, -inf  ;;  %12476 = vst [vmem:[#allocation41_spill] sm:$0xff] %v10951_v7 }
 0x288   : > { %1262 = vmax.xlane.f32.xlu1 %v1261_v18  ;;  %v1258_v19 = vsel %vm1257_vm3, %v10869_v15, -inf  ;;  %v519_v18 = vsub.f32 1.0, %v10903_v48 }
 0x289   : > { %1259 = vmax.xlane.f32.xlu0 %v1258_v19  ;;  %v520_v19 = vsub.f32 1.0, %v10905_v51 }
 0x28b   : > { %v10940_v4 = vmul.f32 -1e+30, %v520_v19 }
 0x28c   : > { %v8743_v25 = vpop.f32.mrb[2].mxu1 }
 0x28d   : > { %v10887_v29 = vadd.f32 %v8743_v25, %v10877_v20  ;;  %v714_v31 = vpop.f32.mrb[3].mxu1  ;;  %v10918_v25 = vunpack.c.h.bf16 %v8352_v6  ;;  %v10935_v6 = vunpack.c.h.bf16 %v8351_v39  ;;  %12473 = vst [vmem:[#allocation38_spill] sm:$0xff] %v10940_v4 }
 0x28e   : > { %v10891_v34 = vadd.f32 %v714_v31, %v10881_v22 }
 0x28f   : > { %v1267_v38 = vsel %vm1257_vm3, %v10887_v29, -inf  ;;  %12472 = vst [vmem:[#allocation37_spill] sm:$0xff] %v10935_v6 }
 0x290   : > { %1268 = vmax.xlane.f32.xlu1 %v1267_v38  ;;  %v1264_v43 = vsel %vm1257_vm3, %v10891_v34, -inf  ;;  %v518_v38 = vsub.f32 1.0, %v10910_v5 }
 0x291   : > { %1265 = vmax.xlane.f32.xlu0 %v1264_v43  ;;  %v10931_v43 = vmul.f32 -1e+30, %v519_v18 }
 0x292   : > { %v10944_v20 = vmul.f32 -1e+30, %v518_v38 }
 0x293   : > { %12471 = vst [vmem:[#allocation36_spill] sm:$0xff] %v10931_v43 }
 0x294   : > { %v8750_v11 = vpop.f32.mrb[4].mxu1  ;;  %v8764_v13 = vpop.f32.mrb[16].mxu0  ;;  %12474 = vst [vmem:[#allocation39_spill] sm:$0xff] %v10944_v20 }
 0x295   : > { %v10914_v14 = vadd.f32 %v8750_v11, %v10901_v47  ;;  %v803_v16 = vpop.f32.mrb[5].mxu1  ;;  %v981_v17 = vpop.f32.mrb[17].mxu0  ;;  %v525_v11 = vsub.f32 1.0, %v10918_v25 }
 0x296   : > { %v10923_v31 = vadd.f32 %v803_v16, %v10907_v55  ;;  %v10938_v16 = vadd.f32 %v8764_v13, %v10925_v33  ;;  %v523_v13 = vsub.f32 1.0, %v10935_v6  ;;  %v10955_v19 = vadd.f32 %v981_v17, %v10940_v4 }
 0x297   : > { %v1273_v35 = vsel %vm1257_vm3, %v10914_v14, -inf  ;;  %v10949_v47 = vmul.f32 -1e+30, %v525_v11 }
 0x298   : > { %1274 = vmax.xlane.f32.xlu0 %v1273_v35  ;;  %v1270_v22 = vsel %vm1257_vm3, %v10923_v31, -inf  ;;  %v10964_v11 = vmul.f32 -1e+30, %v523_v13 }
 0x299   : > { %12475 = vst [vmem:[#allocation40_spill] sm:$0xff] %v10949_v47 }
 0x29a   : > { %12477 = vst [vmem:[#allocation42_spill] sm:$0xff] %v10964_v11 }
 0x29c   : > { %v8757_v55 = vpop.f32.mrb[6].mxu1  ;;  %1271 = vmax.xlane.f32.xlu0 %v1270_v22 }
 0x29d   : > { %v10947_v18 = vadd.f32 %v8757_v55, %v10931_v43  ;;  %v892_v35 = vpop.f32.mrb[7].mxu1  ;;  %v1285_v55 = vsel %vm1257_vm3, %v10938_v16, -inf }
 0x29e   : > { %v8778_v9 = vpop.f32.mrb[18].mxu0  ;;  %v10958_v33 = vadd.f32 %v892_v35, %v10944_v20  ;;  %v1282_v20 = vsel %vm1257_vm3, %v10955_v19, -inf }
 0x29f   : > { %v1279_v22 = vsel %vm1257_vm3, %v10947_v18, -inf  ;;  %v1159_v38 = vpop.f32.mrb[19].mxu0  ;;  %v10967_v26 = vadd.f32 %v8778_v9, %v10949_v47 }
 0x2a0   : > { %1280 = vmax.xlane.f32.xlu1 %v1279_v22  ;;  %1286 = vmax.xlane.f32.xlu0 %v1285_v55  ;;  %v10970_v17 = vadd.f32 %v1159_v38, %v10951_v7  ;;  %v1276_v35 = vsel %vm1257_vm3, %v10958_v33, -inf }
 0x2a1   : > { %v1297_v55 = vsel %vm1257_vm3, %v10967_v26, -inf }
 0x2a2   : > { %v1294_v9 = vsel %vm1257_vm3, %v10970_v17, -inf }
 0x2a4   : > { %v8771_v43 = vpop.f32.mrb[8].mxu1  ;;  %1277 = vmax.xlane.f32.xlu1 %v1276_v35  ;;  %1283 = vmax.xlane.f32.xlu0 %v1282_v20  ;;  %v8353_v20 = vld [vmem:[%s10603_s20 + $0x38] sm:$0xff]   ;;  %s10406_s20 = smov 56  }
 0x2a5   : > { %v1070_v22 = vpop.f32.mrb[9].mxu1  ;;  %v10977_v13 = vadd.f32 %v8771_v43, %v10964_v11  ;;  %v10990_v43 = vunpack.c.l.bf16 %v8351_v39  ;;  %v10992_v35 = vunpack.c.h.bf16 %v8353_v20 }
 0x2a7   : > { %v1291_v38 = vsel %vm1257_vm3, %v10977_v13, -inf  ;;  %12478 = vst [vmem:[#allocation43_spill] sm:$0xff] %v10992_v35 }
 0x2a8   : > { %1295 = vmax.xlane.f32.xlu1 %v1294_v9  ;;  %1298 = vmax.xlane.f32.xlu0 %v1297_v55  ;;  %v522_v9 = vsub.f32 1.0, %v10990_v43  ;;  %v527_v55 = vsub.f32 1.0, %v10992_v35 }
 0x2aa   : > { %v10996_v11 = vmul.f32 -1e+30, %v522_v9  ;;  %v11020_v9 = vunpack.c.l.bf16 %v8353_v20 }
 0x2ac   : > { %1292 = vmax.xlane.f32.xlu0 %v1291_v38  ;;  %v8785_v47 = vpop.f32.mrb[10].mxu1  ;;  %12479 = vst [vmem:[#allocation44_spill] sm:$0xff] %v10996_v11  ;;  %v10998_v38 = vmul.f32 -1e+30, %v527_v55  ;;  %v11001_v4 = vadd.f32 %v1070_v22, %v10996_v11  ;;  %v11018_v22 = vpop.permute.xlu1 %9754  ;;  %12481 = vst [vmem:[#allocation46_spill] sm:$0xff] %v11020_v9 }
 0x2ad   : > { %v1248_v7 = vpop.f32.mrb[11].mxu1 }
 0x2ae   : > { %12480 = vst [vmem:[#allocation45_spill] sm:$0xff] %v10998_v38  ;;  %v11004_v6 = vadd.f32 %v8785_v47, %v10998_v38  ;;  %v1288_v39 = vsel %vm1257_vm3, %v11001_v4, -inf  ;;  %v9750_v47 = vpop.permute.xlu0 %9749 }
 0x2b2   : > { %v11025_v55 = vpop.permute.xlu0 %9759 }
 0x2b9   : > { %9784 = vrot.lane.b32.xlu1 %v10776_v1, %s10404_s29 }
 0x2c2   : > { %2165 = vrot.lane.b32.xlu0 %v10656_v24, %s10405_s11  ;;  %v1303_v24 = vsel %vm1257_vm3, %v11004_v6, -inf }
 0x2dd   : > { %1289 = vmax.xlane.f32.xlu1 %v1288_v39  ;;  %v11027_v39 = vpop.permute.xlu1 %9769 }
 0x2e1   : > { %1304 = vmax.xlane.f32.xlu0 %v1303_v24  ;;  %v526_v24 = vsub.f32 1.0, %v11020_v9  ;;  %v11037_v20 = vpop.permute.xlu1 %2163 }
 0x2ee   : > { %2256 = vrot.lane.b32.xlu1 %v10670_v30, %s10405_s11  ;;  %v11044_v30 = vpop.permute.xlu1 %9779 }
 0x2f7   : > { %2254 = vrot.lane.b32.xlu0 %v10672_v32, %s10405_s11  ;;  %v11031_v32 = vmul.f32 -1e+30, %v526_v24 }
 0x2f9   : > { %12482 = vst [vmem:[#allocation47_spill] sm:$0xff] %v11031_v32 }
 0x2fb   : > { %9789 = vrot.lane.b32.xlu0 %v10760_v62, %s10404_s29 }
 0x2ff   : > { %2347 = vrot.lane.b32.xlu0 %v10691_v37, %s10405_s11  ;;  %v11035_v37 = vpop.permute.xlu0 %9764 }
 0x303   : > { %2436 = vrot.lane.b32.xlu0 %v10697_v40, %s10405_s11  ;;  %v11040_v40 = vadd.f32 %v1248_v7, %v11031_v32  ;;  %v11048_v24 = vpop.permute.xlu0 %9774 }
 0x307   : > { %9799 = vrot.lane.b32.xlu0 %v10770_v0, %s10404_s29  ;;  %v1300_v0 = vsel %vm1257_vm3, %v11040_v40, -inf }
 0x30b   : > { %2529 = vrot.lane.b32.xlu0 %v10705_v44, %s10405_s11 }
 0x30f   : > { %2618 = vrot.lane.b32.xlu0 %v10715_v49, %s10405_s11 }
 0x312   : > { %1301 = vmax.xlane.f32.xlu1 %v1300_v0 }
 0x313   : > { %2709 = vrot.lane.b32.xlu0 %v10729_v54, %s10405_s11 }
 0x315   : > { %v1263_v44 = vpop.xlane.xlu1 %1262 }
 0x316   : > { %v1307_v38 = vsub.f32 %v10865_v12, %v1263_v44  ;;  %v1260_v11 = vpop.xlane.xlu0 %1259 }
 0x317   : > { %2800 = vrot.lane.b32.xlu0 %v10737_v58, %s10405_s11  ;;  %v1306_v7 = vsub.f32 %v10869_v15, %v1260_v11  ;;  %v9752_v15 = vunpack.i.h.bf16 %v9750_v47  ;;  %v9751_v11 = vunpack.i.l.bf16 %v9750_v47 }
 0x318   : > { %v1324_v49 = vmul.f32 1.442695, %v1307_v38 }
 0x319   : > { %v1322_v32 = vmul.f32 1.442695, %v1306_v7 }
 0x31a   : > { %10008 = vpow2.f32 %v1324_v49 }
 0x31b   : > { %10010 = vpow2.f32 %v1322_v32  ;;  %9814 = vrot.lane.b32.xlu0 %v10749_v60, %s10406_s20 }
 0x31d   : > { %v1269_v0 = vpop.xlane.xlu1 %1268 }
 0x31e   : > { %v1309_v54 = vsub.f32 %v10887_v29, %v1269_v0  ;;  %v1266_v35 = vpop.xlane.xlu0 %1265 }
 0x31f   : > { %v1308_v44 = vsub.f32 %v10891_v34, %v1266_v35  ;;  %9829 = vrot.lane.b32.xlu0 %v10760_v62, %s10406_s20  ;;  %v9354_v35 = vpack.c.bf16 %v9752_v15, %v9751_v11 }
 0x320   : > { %v1328_v12 = vmul.f32 1.442695, %v1309_v54 }
 0x321   : > { %v1326_v58 = vmul.f32 1.442695, %v1308_v44 }
 0x322   : > { %10012 = vpow2.f32 %v1328_v12  ;;  %v9757_v12 = vunpack.i.h.bf16 %v11018_v22 }
 0x323   : > { %10014 = vpow2.f32 %v1326_v58  ;;  %2345 = vrot.lane.b32.xlu1 %v10686_v36, %s10405_s11 }
 0x324   : > { %v10009_v32 = vpop.eup %10008 }
 0x325   : > { %v10011_v49 = vpop.eup %10010  ;;  %v1275_v38 = vpop.xlane.xlu0 %1274  ;;  %v11071_v54 = vmul.f32 %v10009_v32, %v10849_v56  ;;  %v9756_v32 = vunpack.i.l.bf16 %v11018_v22 }
 0x326   : > { %v1311_v29 = vsub.f32 %v10914_v14, %v1275_v38  ;;  %v11066_v7 = vmul.f32 %v10011_v49, %v10851_v57 }
 0x327   : > { %9794 = vrot.lane.b32.xlu1 %v10783_v2, %s10404_s29 }
 0x328   : > { %12483 = vst [vmem:[#allocation48_spill] sm:$0xff] %v11066_v7  ;;  %8790 = vmatprep.mubr.msk.f32.mxu0 %vm1257_vm3, %v11066_v7  ;;  %v1332_v58 = vmul.f32 1.442695, %v1311_v29 }
 0x329   : > { %v1272_v34 = vpop.xlane.xlu0 %1271  ;;  %8791 = vmatmul.mubr.msk.f32.vlgmr.msra.gmra.mrb[20].mxu0 %vm1257_vm3, %v11071_v54 }
 0x32a   : > { %v1310_v14 = vsub.f32 %v10923_v31, %v1272_v34  ;;  %9349 = vmatpush3.bf16.msra.mxu0 %v10841_v46  ;;  %10016 = vpow2.f32 %v1332_v58 }
 0x32b   : > { %2438 = vrot.lane.b32.xlu1 %v10699_v41, %s10405_s11  ;;  %9355 = vmatprep.subr.bf16.mxu0 %v9354_v35 }
 0x32c   : > { %v10013_v47 = vpop.eup %10012  ;;  %v1330_v0 = vmul.f32 1.442695, %v1310_v14 }
 0x32d   : > { %v10015_v44 = vpop.eup %10014  ;;  %v1281_v49 = vpop.xlane.xlu1 %1280  ;;  %v11091_v11 = vmul.f32 %v10013_v47, %v10858_v8 }
 0x32e   : > { %v1287_v38 = vpop.xlane.xlu0 %1286  ;;  %10018 = vpow2.f32 %v1330_v0  ;;  %v1313_v15 = vsub.f32 %v10947_v18, %v1281_v49  ;;  %v11086_v46 = vmul.f32 %v10015_v44, %v10862_v10 }
 0x32f   : > { %v1315_v31 = vsub.f32 %v10938_v16, %v1287_v38  ;;  %2527 = vrot.lane.b32.xlu1 %v10707_v45, %s10405_s11  ;;  %v9358_v16 = vpack.c.bf16 %v9757_v12, %v9756_v32  ;;  %v9761_v32 = vunpack.i.l.bf16 %v11025_v55 }
 0x330   : > { %12484 = vst [vmem:[#allocation49_spill] sm:$0xff] %v11086_v46  ;;  %v1336_v29 = vmul.f32 1.442695, %v1313_v15  ;;  %8797 = vmatprep.mubr.msk.f32.mxu1 %vm1257_vm3, %v11086_v46 }
 0x331   : > { %v1340_v22 = vmul.f32 1.442695, %v1315_v31  ;;  %v1278_v58 = vpop.xlane.xlu1 %1277  ;;  %8798 = vmatmul.mubr.msk.f32.vlgmr.msra.gmra.mrb[12].mxu1 %vm1257_vm3, %v11091_v11 }
 0x332   : > { %v1284_v18 = vpop.xlane.xlu0 %1283  ;;  %v1312_v34 = vsub.f32 %v10958_v33, %v1278_v58  ;;  %9353 = vmatpush3.bf16.msra.mxu1 %v10845_v52  ;;  %10020 = vpow2.f32 %v1336_v29 }
 0x333   : > { %v1314_v14 = vsub.f32 %v10955_v19, %v1284_v18  ;;  %9359 = vmatprep.subr.bf16.mxu1 %v9358_v16  ;;  %9804 = vrot.lane.b32.xlu1 %v10794_v3, %s10404_s29  ;;  %10022 = vpow2.f32 %v1340_v22  ;;  %v9762_v19 = vunpack.i.h.bf16 %v11025_v55  ;;  %v9782_v18 = vunpack.i.h.bf16 %v11044_v30 }
 0x334   : > { %v1334_v47 = vmul.f32 1.442695, %v1312_v34  ;;  %v10017_v33 = vpop.eup %10016  ;;  %v9781_v34 = vunpack.i.l.bf16 %v11044_v30 }
 0x335   : > { %v1338_v0 = vmul.f32 1.442695, %v1314_v14  ;;  %v1296_v44 = vpop.xlane.xlu1 %1295 }
 0x336   : > { %v1299_v49 = vpop.xlane.xlu0 %1298  ;;  %10024 = vpow2.f32 %v1334_v47  ;;  %v1318_v38 = vsub.f32 %v10970_v17, %v1296_v44  ;;  %v11112_v17 = vmul.f32 %v10017_v33, %v10879_v21  ;;  %v9767_v47 = vunpack.i.h.bf16 %v11035_v37 }
 0x337   : > { %v1319_v12 = vsub.f32 %v10967_v26, %v1299_v49  ;;  %10026 = vpow2.f32 %v1338_v0  ;;  %2620 = vrot.lane.b32.xlu1 %v10721_v50, %s10405_s11  ;;  %v9362_v26 = vpack.c.bf16 %v9762_v19, %v9761_v32  ;;  %v9766_v0 = vunpack.i.l.bf16 %v11035_v37 }
 0x338   : > { %v10019_v52 = vpop.eup %10018  ;;  %v1346_v15 = vmul.f32 1.442695, %v1318_v38  ;;  %v9366_v37 = vpack.c.bf16 %v9782_v18, %v9781_v34  ;;  %v9776_v32 = vunpack.i.l.bf16 %v11048_v24 }
 0x339   : > { %v1348_v31 = vmul.f32 1.442695, %v1319_v12  ;;  %v11109_v29 = vmul.f32 %v10019_v52, %v10883_v23  ;;  %v9370_v33 = vpack.c.bf16 %v9767_v47, %v9766_v0 }
 0x33a   : > { %10028 = vpow2.f32 %v1346_v15 }
 0x33b   : > { %12485 = vst [vmem:[#allocation50_spill] sm:$0xff] %v11109_v29  ;;  %10030 = vpow2.f32 %v1348_v31  ;;  %2711 = vrot.lane.b32.xlu1 %v10727_v53, %s10405_s11  ;;  %8804 = vmatprep.mubr.msk.f32.mxu0 %vm1257_vm3, %v11109_v29  ;;  %v1293_v31 = vpop.xlane.xlu0 %1292  ;;  %v12523_v29 = vld [vmem:[#allocation44_spill] sm:$0xff] }
 0x33c   : > { %8805 = vmatmul.mubr.msk.f32.vlgmr.msra.gmra.mrb[22].mxu0 %vm1257_vm3, %v11112_v17  ;;  %v10021_v55 = vpop.eup %10020 }
 0x33d   : > { %9357 = vmatpush3.bf16.msra.mxu0 %v9354_v35  ;;  %v10023_v22 = vpop.eup %10022  ;;  %v11133_v49 = vmul.f32 %v10021_v55, %v10903_v48 }
 0x33e   : > { %9363 = vmatprep.subr.bf16.mxu0 %v9362_v26  ;;  %v11140_v30 = vmul.f32 %v10023_v22, %v10897_v42 }
 0x33f   : > { %2802 = vrot.lane.b32.xlu1 %v10741_v59, %s10405_s11 }
 0x340   : > { %v10025_v58 = vpop.eup %10024 }
 0x341   : > { %v10027_v14 = vpop.eup %10026  ;;  %v11127_v44 = vmul.f32 %v10025_v58, %v10910_v5 }
 0x342   : > { %v11130_v35 = vmul.f32 %v10027_v14, %v10905_v51 }
 0x343   : > { %12486 = vst [vmem:[#allocation51_spill] sm:$0xff] %v11127_v44  ;;  %9809 = vrot.lane.b32.xlu1 %v10756_v61, %s10406_s20  ;;  %8811 = vmatprep.mubr.msk.f32.mxu1 %vm1257_vm3, %v11127_v44 }
 0x344   : > { %12487 = vst [vmem:[#allocation52_spill] sm:$0xff] %v11130_v35  ;;  %v10029_v38 = vpop.eup %10028  ;;  %8818 = vmatprep.mubr.msk.f32.mxu0 %vm1257_vm3, %v11130_v35  ;;  %8812 = vmatmul.mubr.msk.f32.vlgmr.msra.gmra.mrb[14].mxu1 %vm1257_vm3, %v11133_v49 }
 0x345   : > { %v10031_v12 = vpop.eup %10030  ;;  %8819 = vmatmul.mubr.msk.f32.vlgmr.msra.gmra.mrb[24].mxu0 %vm1257_vm3, %v11140_v30  ;;  %9361 = vmatpush3.bf16.msra.mxu1 %v9358_v16  ;;  %v11149_v52 = vmul.f32 %v10029_v38, %v10920_v28  ;;  %v9777_v16 = vunpack.i.h.bf16 %v11048_v24  ;;  %v1317_v24 = vsub.f32 %v10977_v13, %v1293_v31 }
 0x346   : > { %9365 = vmatpush3.bf16.msra.mxu0 %v9362_v26  ;;  %9367 = vmatprep.subr.bf16.mxu1 %v9366_v37  ;;  %v11152_v19 = vmul.f32 %v10031_v12, %v10918_v25  ;;  %v2166_v26 = vpop.permute.xlu0 %2165 }
 0x347   : > { %12488 = vst [vmem:[#allocation53_spill] sm:$0xff] %v11149_v52  ;;  %9372 = vmatprep.subr.msk.bf16.mxu0 %vm10662_vm2, %v9370_v33  ;;  %9819 = vrot.lane.b32.xlu1 %v10766_v63, %s10406_s20  ;;  %v9382_v15 = vpack.c.bf16 %v9777_v16, %v9776_v32  ;;  %v1344_v55 = vmul.f32 1.442695, %v1317_v24  ;;  %v9772_v16 = vunpack.i.h.bf16 %v11027_v39  ;;  %v9771_v32 = vunpack.i.l.bf16 %v11027_v39 }
 0x348   : > { %12489 = vst [vmem:[#allocation54_spill] sm:$0xff] %v11152_v19  ;;  %8832 = vmatprep.mubr.msk.f32.mxu0 %vm1257_vm3, %v11149_v52 }
 0x349   : > { %8833 = vmatmul.mubr.msk.f32.vlgmr.msra.gmra.mrb[26].mxu0 %vm1257_vm3, %v11152_v19  ;;  %10032 = vpow2.f32 %v1344_v55 }
 0x34a   : > { %8846 = vmatprep.mubr.msk.f32.mxu0 %vm550_vm1, %v11037_v20  ;;  %v9785_v20 = vpop.permute.xlu1 %9784 }
 0x34b   : > { %9824 = vrot.lane.b32.xlu1 %v10776_v1, %s10406_s20 }
 0x34f   : > { %9375 = vmatpush3.bf16.xpose.msk.msra.mxu0 %vm10662_vm2, %v9370_v33  ;;  %9834 = vrot.lane.b32.xlu1 %v10783_v2, %s10406_s20 }
 0x350   : > { %9384 = vmatprep.subr.msk.bf16.mxu0 %vm10662_vm2, %v9382_v15 }
 0x353   : > { %v10033_v12 = vpop.eup %10032 }
 0x356   : > { %8847 = vmatmul.mubr.msk.f32.vlgmr.msra.gmra.mrb[28].mxu0 %vm550_vm1, %v2166_v26  ;;  %v9376_v26 = vpack.c.bf16 %v9772_v16, %v9771_v32 }
 0x357   : > { %9387 = vmatpush3.bf16.xpose.msk.msra.mxu0 %vm10662_vm2, %v9382_v15 }
 0x36a   : > { %v1290_v22 = vpop.xlane.xlu1 %1289 }
 0x36b   : > { %v1316_v58 = vsub.f32 %v11001_v4, %v1290_v22  ;;  %v12491_v4 = vld [vmem:[#allocation37_spill] sm:$0xff] }
 0x36c   : > { %v11187_v31 = vmul.f32 %v10033_v12, %v12491_v4 }
 0x36d   : > { %v1342_v18 = vmul.f32 1.442695, %v1316_v58 }
 0x36e   : > { %v1305_v34 = vpop.xlane.xlu0 %1304  ;;  %v2257_v55 = vpop.permute.xlu1 %2256 }
 0x36f   : > { %10034 = vpow2.f32 %v1342_v18  ;;  %v1321_v22 = vsub.f32 %v11004_v6, %v1305_v34 }
 0x371   : > { %v1352_v18 = vmul.f32 1.442695, %v1321_v22 }
 0x372   : > { %v2255_v14 = vpop.permute.xlu0 %2254 }
 0x373   : > { %10036 = vpow2.f32 %v1352_v18  ;;  %v9787_v18 = vunpack.i.h.bf16 %v9785_v20 }
 0x376   : > { %v9790_v47 = vpop.permute.xlu0 %9789 }
 0x377   : > { %v9792_v0 = vunpack.i.h.bf16 %v9790_v47  ;;  %v9791_v38 = vunpack.i.l.bf16 %v9790_v47 }
 0x379   : > { %v10035_v33 = vpop.eup %10034  ;;  %v9394_v15 = vpack.c.bf16 %v9792_v0, %v9791_v38 }
 0x37a   : > { %v11182_v13 = vmul.f32 %v10035_v33, %v10990_v43  ;;  %v2348_v39 = vpop.permute.xlu0 %2347 }
 0x37b   : > { %9396 = vmatprep.subr.msk.bf16.mxu0 %vm10662_vm2, %v9394_v15 }
 0x37c   : > { %12490 = vst [vmem:[#allocation55_spill] sm:$0xff] %v11182_v13  ;;  %8825 = vmatprep.mubr.msk.f32.mxu1 %vm1257_vm3, %v11182_v13 }
 0x37d   : > { %8826 = vmatmul.mubr.msk.f32.vlgmr.msra.gmra.mrb[16].mxu1 %vm1257_vm3, %v11187_v31  ;;  %v10037_v22 = vpop.eup %10036 }
 0x37e   : > { %9369 = vmatpush3.bf16.msra.mxu1 %v9366_v37  ;;  %v2437_v24 = vpop.permute.xlu0 %2436 }
 0x37f   : > { %9378 = vmatprep.subr.msk.bf16.mxu1 %vm10662_vm2, %v9376_v26 }
 0x382   : > { %v9800_v58 = vpop.permute.xlu0 %9799 }
 0x383   : > { %v9802_v38 = vunpack.i.h.bf16 %v9800_v58  ;;  %v9801_v12 = vunpack.i.l.bf16 %v9800_v58 }
 0x385   : > { %v9406_v37 = vpack.c.bf16 %v9802_v38, %v9801_v12 }
 0x386   : > { %v2530_v32 = vpop.permute.xlu0 %2529 }
 0x38a   : > { %v2619_v34 = vpop.permute.xlu0 %2618 }
 0x38e   : > { %v2710_v12 = vpop.permute.xlu0 %2709 }
 0x39f   : > { %v1302_v47 = vpop.xlane.xlu1 %1301 }
 0x3a0   : > { %v1320_v0 = vsub.f32 %v11040_v40, %v1302_v47  ;;  %v9786_v47 = vunpack.i.l.bf16 %v9785_v20 }
 0x3a2   : > { %v1350_v33 = vmul.f32 1.442695, %v1320_v0 }
 0x3a3   : > { %v2346_v16 = vpop.permute.xlu1 %2345 }
 0x3a4   : > { %10038 = vpow2.f32 %v1350_v33  ;;  %8860 = vmatprep.mubr.msk.f32.mxu0 %vm550_vm1, %v2346_v16 }
 0x3a5   : > { %8861 = vmatmul.mubr.msk.f32.vlgmr.msra.gmra.mrb[30].mxu0 %vm550_vm1, %v2348_v39  ;;  %v12493_v39 = vld [vmem:[#allocation43_spill] sm:$0xff] }
 0x3a6   : > { %9399 = vmatpush3.bf16.xpose.msk.msra.mxu0 %vm10662_vm2, %v9394_v15  ;;  %v11208_v38 = vmul.f32 %v10037_v22, %v12493_v39  ;;  %v9388_v15 = vpack.c.bf16 %v9787_v18, %v9786_v47 }
 0x3a7   : > { %9408 = vmatprep.subr.msk.bf16.mxu0 %vm10662_vm2, %v9406_v37  ;;  %v9795_v6 = vpop.permute.xlu1 %9794 }
 0x3a8   : > { %12494 = vst [vmem:[#allocation56_spill] sm:$0xff] %v11208_v38  ;;  %v9797_v16 = vunpack.i.h.bf16 %v9795_v6 }
 0x3ab   : > { %v2439_v40 = vpop.permute.xlu1 %2438 }
 0x3ae   : > { %v10039_v58 = vpop.eup %10038 }
 0x3af   : > { %v2528_v0 = vpop.permute.xlu1 %2527  ;;  %v11204_v33 = vmul.f32 %v10039_v58, %v11020_v9 }
 0x3b0   : > { %8874 = vmatprep.mubr.msk.f32.mxu0 %vm550_vm1, %v2528_v0 }
 0x3b1   : > { %12492 = vst [vmem:[#allocation37_spill] sm:$0xff] %v11204_v33  ;;  %8839 = vmatprep.mubr.msk.f32.mxu1 %vm1257_vm3, %v11204_v33  ;;  %8875 = vmatmul.mubr.msk.f32.vlgmr.msra.gmra.mrb[32].mxu0 %vm550_vm1, %v2530_v32  ;;  %v9796_v32 = vunpack.i.l.bf16 %v9795_v6 }
 0x3b2   : > { %9411 = vmatpush3.bf16.xpose.msk.msra.mxu0 %vm10662_vm2, %v9406_v37  ;;  %8840 = vmatmul.mubr.msk.f32.vlgmr.msra.gmra.mrb[18].mxu1 %vm1257_vm3, %v11208_v38 }
 0x3b3   : > { %9381 = vmatpush3.bf16.xpose.msk.msra.mxu1 %vm10662_vm2, %v9376_v26  ;;  %8888 = vmatprep.mubr.msk.f32.mxu0 %vm550_vm1, %v2710_v12  ;;  %v9805_v20 = vpop.permute.xlu1 %9804  ;;  %v9400_v58 = vpack.c.bf16 %v9797_v16, %v9796_v32 }
 0x3b4   : > { %8853 = vmatprep.mubr.msk.f32.mxu1 %vm550_vm1, %v2255_v14  ;;  %9390 = vmatprep.subr.msk.bf16.mxu1 %vm10662_vm2, %v9388_v15  ;;  %v2801_v14 = vpop.permute.xlu0 %2800  ;;  %v9807_v37 = vunpack.i.h.bf16 %v9805_v20  ;;  %v9806_v18 = vunpack.i.l.bf16 %v9805_v20 }
 0x3b6   : > { %v9412_v6 = vpack.c.bf16 %v9807_v37, %v9806_v18 }
 0x3b7   : > { %v2621_v22 = vpop.permute.xlu1 %2620 }
 0x3b8   : > { %v9815_v0 = vpop.permute.xlu0 %9814 }
 0x3b9   : > { %v9817_v12 = vunpack.i.h.bf16 %v9815_v0  ;;  %v9816_v16 = vunpack.i.l.bf16 %v9815_v0 }
 0x3ba   : > { %8854 = vmatmul.mubr.msk.f32.vlgmr.msra.gmra.mrb[20].mxu1 %vm550_vm1, %v2257_v55 }
 0x3bb   : > { %9393 = vmatpush3.bf16.xpose.msk.msra.mxu1 %vm10662_vm2, %v9388_v15  ;;  %8867 = vmatprep.mubr.msk.f32.mxu1 %vm550_vm1, %v2437_v24  ;;  %v2712_v26 = vpop.permute.xlu1 %2711 }
 0x3bc   : > { %9402 = vmatprep.subr.msk.bf16.mxu1 %vm10662_vm2, %v9400_v58  ;;  %8889 = vmatmul.mubr.msk.f32.vlgmr.msra.gmra.mrb[34].mxu0 %vm550_vm1, %v2712_v26 }
 0x3bf   : > { %v2803_v47 = vpop.permute.xlu1 %2802 }
 0x3c2   : > { %8868 = vmatmul.mubr.msk.f32.vlgmr.msra.gmra.mrb[22].mxu1 %vm550_vm1, %v2439_v40  ;;  %v9422_v40 = vpack.c.bf16 %v9817_v12, %v9816_v16 }
 0x3c3   : > { %9405 = vmatpush3.bf16.xpose.msk.msra.mxu1 %vm10662_vm2, %v9400_v58  ;;  %8881 = vmatprep.mubr.msk.f32.mxu1 %vm550_vm1, %v2619_v34  ;;  %v9810_v24 = vpop.permute.xlu1 %9809 }
 0x3c4   : > { %v9812_v55 = vunpack.i.h.bf16 %v9810_v24  ;;  %v9811_v15 = vunpack.i.l.bf16 %v9810_v24  ;;  %9414 = vmatprep.subr.msk.bf16.mxu1 %vm10662_vm2, %v9412_v6 }
 0x3c6   : > { %v9418_v32 = vpack.c.bf16 %v9812_v55, %v9811_v15 }
 0x3c7   : > { %v9820_v20 = vpop.permute.xlu1 %9819 }
 0x3c8   : > { %v9822_v26 = vunpack.i.h.bf16 %v9820_v20  ;;  %v9821_v37 = vunpack.i.l.bf16 %v9820_v20  ;;  %9419 = vmatprep.subr.bf16.mxu0 %v9418_v32 }
 0x3c9   : > { %9421 = vmatpush3.bf16.msra.mxu0 %v9418_v32 }
 0x3ca   : > { %8882 = vmatmul.mubr.msk.f32.vlgmr.msra.gmra.mrb[24].mxu1 %vm550_vm1, %v2621_v22  ;;  %v11237_v58 = vpack.c.bf16 %v9822_v26, %v9821_v37 }
 0x3cb   : > { %9417 = vmatpush3.bf16.xpose.msk.msra.mxu1 %vm10662_vm2, %v9412_v6  ;;  %8895 = vmatprep.mubr.msk.f32.mxu1 %vm550_vm1, %v2801_v14  ;;  %v9825_v34 = vpop.permute.xlu1 %9824 }
 0x3cc   : > { %9423 = vmatprep.subr.bf16.mxu1 %v9422_v40  ;;  %9427 = vmatprep.subr.bf16.mxu0 %v11237_v58  ;;  %v9827_v18 = vunpack.i.h.bf16 %v9825_v34  ;;  %v9826_v0 = vunpack.i.l.bf16 %v9825_v34  ;;  %v12507_v34 = vld [vmem:[#allocation29_spill] sm:$0xff] }
 0x3ce   : > { %v11244_v24 = vpack.c.bf16 %v9827_v18, %v9826_v0 }
 0x3d2   : > { %8896 = vmatmul.mubr.msk.f32.vlgmr.msra.gmra.mrb[26].mxu1 %vm550_vm1, %v2803_v47 }
 0x3d3   : > { %9425 = vmatpush3.bf16.msra.mxu1 %v9422_v40 }
 0x3d4   : > { %9431 = vmatprep.subr.bf16.mxu1 %v11244_v24 }
 0x3fc   : > { %v11247_v22 = vpop.f32.mrb[20].mxu0 }
 0x3fd   : > { %12495 = vst [vmem:[#allocation57_spill] sm:$0xff] %v11247_v22  ;;  %v11249_v55 = vpop.f32.mrb[21].mxu0 }
 0x3fe   : > { %12496 = vst [vmem:[#allocation58_spill] sm:$0xff] %v11249_v55 }
 0x404   : > { %v11251_v6 = vpop.f32.mrb[12].mxu1 }
 0x405   : > { %12497 = vst [vmem:[#allocation59_spill] sm:$0xff] %v11251_v6  ;;  %v11253_v14 = vpop.f32.mrb[13].mxu1 }
 0x406   : > { %12498 = vst [vmem:[#allocation60_spill] sm:$0xff] %v11253_v14 }
 0x40f   : > { %v11255_v15 = vpop.f32.mrb[22].mxu0 }
 0x410   : > { %12499 = vst [vmem:[#allocation61_spill] sm:$0xff] %v11255_v15  ;;  %v11257_v12 = vpop.f32.mrb[23].mxu0  ;;  %v12508_v15 = vld [vmem:[#allocation30_spill] sm:$0xff] }
 0x411   : > { %12500 = vst [vmem:[#allocation62_spill] sm:$0xff] %v11257_v12  ;;  %v12512_v12 = vld [vmem:[#allocation34_spill] sm:$0xff] }
 0x417   : > { %v11259_v16 = vpop.f32.mrb[14].mxu1 }
 0x418   : > { %12501 = vst [vmem:[#allocation63_spill] sm:$0xff] %v11259_v16  ;;  %v11261_v47 = vpop.f32.mrb[24].mxu0  ;;  %v11263_v32 = vpop.f32.mrb[15].mxu1 }
 0x419   : > { %12502 = vst [vmem:[#allocation64_spill] sm:$0xff] %v11261_v47  ;;  %12503 = vst [vmem:[#allocation65_spill] sm:$0xff] %v11263_v32  ;;  %v11265_v20 = vpop.f32.mrb[25].mxu0  ;;  %v12511_v32 = vld [vmem:[#allocation33_spill] sm:$0xff] }
 0x41a   : > { %12504 = vst [vmem:[#allocation66_spill] sm:$0xff] %v11265_v20 }
 0x41c   : > { %v11267_v26 = vpop.f32.mrb[26].mxu0 }
 0x41d   : > { %12505 = vst [vmem:[#allocation67_spill] sm:$0xff] %v11267_v26  ;;  %v11269_v37 = vpop.f32.mrb[27].mxu0 }
 0x41e   : > { %12506 = vst [vmem:[#allocation68_spill] sm:$0xff] %v11269_v37 }
 0x429   : > { %v8848_v40 = vpop.f32.mrb[28].mxu0 }
 0x42a   : > { %v11272_v18 = vadd.f32 %v8848_v40, %v12507_v34  ;;  %v2245_v0 = vpop.f32.mrb[29].mxu0 }
 0x42b   : > { %v11275_v6 = vadd.f32 %v2245_v0, %v12508_v15 }
 0x42c   : > { %v2894_v16 = vsel %vm1257_vm3, %v11272_v18, -inf }
 0x42d   : > { %2895 = vmax.xlane.f32.xlu0 %v2894_v16  ;;  %v2891_v47 = vsel %vm1257_vm3, %v11275_v6, -inf }
 0x431   : > { %2892 = vmax.xlane.f32.xlu0 %v2891_v47 }
 0x450   : > { %v11281_v20 = vpop.f32.mrb[16].mxu1 }
 0x451   : > { %12509 = vst [vmem:[#allocation69_spill] sm:$0xff] %v11281_v20  ;;  %v11283_v26 = vpop.f32.mrb[17].mxu1 }
 0x452   : > { %12510 = vst [vmem:[#allocation70_spill] sm:$0xff] %v11283_v26 }
 0x478   : > { %v8862_v37 = vpop.f32.mrb[30].mxu0 }
 0x479   : > { %v11286_v40 = vadd.f32 %v8862_v37, %v12511_v32  ;;  %v2427_v34 = vpop.f32.mrb[31].mxu0  ;;  %v12515_v32 = vld [vmem:[#allocation31_spill] sm:$0xff] }
 0x47a   : > { %v11289_v0 = vadd.f32 %v2427_v34, %v12512_v12  ;;  %v12516_v12 = vld [vmem:[#allocation32_spill] sm:$0xff] }
 0x47b   : > { %v2906_v15 = vsel %vm1257_vm3, %v11286_v40, -inf }
 0x47c   : > { %2907 = vmax.xlane.f32.xlu1 %v2906_v15  ;;  %v2903_v16 = vsel %vm1257_vm3, %v11289_v0, -inf  ;;  %v12517_v15 = vld [vmem:[#allocation35_spill] sm:$0xff] }
 0x480   : > { %2904 = vmax.xlane.f32.xlu1 %v2903_v16 }
 0x484   : > { %v8876_v47 = vpop.f32.mrb[32].mxu0 }
 0x485   : > { %v11295_v20 = vpop.f32.mrb[18].mxu1  ;;  %v2609_v26 = vpop.f32.mrb[33].mxu0  ;;  %v11306_v52 = vadd.f32 %v8876_v47, %v12517_v15 }
 0x486   : > { %12513 = vst [vmem:[#allocation71_spill] sm:$0xff] %v11295_v20  ;;  %v11297_v14 = vpop.f32.mrb[19].mxu1  ;;  %v12518_v20 = vld [vmem:[#allocation38_spill] sm:$0xff] }
 0x487   : > { %12514 = vst [vmem:[#allocation72_spill] sm:$0xff] %v11297_v14  ;;  %v11311_v35 = vadd.f32 %v2609_v26, %v12518_v20  ;;  %v12520_v14 = vld [vmem:[#allocation36_spill] sm:$0xff] }
 0x489   : > { %v2915_v15 = vsel %vm1257_vm3, %v11311_v35, -inf }
 0x48d   : > { %v8855_v37 = vpop.f32.mrb[20].mxu1 }
 0x48e   : > { %v11300_v22 = vadd.f32 %v8855_v37, %v12515_v32  ;;  %v2336_v34 = vpop.f32.mrb[21].mxu1 }
 0x48f   : > { %v11303_v55 = vadd.f32 %v2336_v34, %v12516_v12  ;;  %v8890_v33 = vpop.f32.mrb[34].mxu0  ;;  %v2918_v34 = vsel %vm1257_vm3, %v11306_v52, -inf  ;;  %v12519_v12 = vld [vmem:[#allocation41_spill] sm:$0xff] }
 0x490   : > { %v2900_v16 = vsel %vm1257_vm3, %v11300_v22, -inf  ;;  %v2791_v13 = vpop.f32.mrb[35].mxu0 }
 0x491   : > { %2901 = vmax.xlane.f32.xlu0 %v2900_v16  ;;  %v2897_v37 = vsel %vm1257_vm3, %v11303_v55, -inf  ;;  %v11318_v32 = vadd.f32 %v2791_v13, %v12519_v12  ;;  %v12521_v16 = vld [vmem:[#allocation39_spill] sm:$0xff] }
 0x492   : > { %2898 = vmax.xlane.f32.xlu1 %v2897_v37 }
 0x493   : > { %v2927_v13 = vsel %vm1257_vm3, %v11318_v32, -inf }
 0x495   : > { %v8869_v47 = vpop.f32.mrb[22].mxu1  ;;  %2919 = vmax.xlane.f32.xlu0 %v2918_v34  ;;  %v12522_v34 = vld [vmem:[#allocation40_spill] sm:$0xff] }
 0x496   : > { %v11323_v44 = vadd.f32 %v8869_v47, %v12520_v14  ;;  %v2518_v26 = vpop.f32.mrb[23].mxu1  ;;  %2916 = vmax.xlane.f32.xlu1 %v2915_v15  ;;  %v11333_v12 = vadd.f32 %v8890_v33, %v12522_v34 }
 0x497   : > { %v11326_v20 = vadd.f32 %v2518_v26, %v12521_v16  ;;  %v12524_v16 = vld [vmem:[#allocation42_spill] sm:$0xff] }
 0x498   : > { %v2912_v37 = vsel %vm1257_vm3, %v11323_v44, -inf }
 0x499   : > { %2913 = vmax.xlane.f32.xlu0 %v2912_v37  ;;  %v2909_v47 = vsel %vm1257_vm3, %v11326_v20, -inf  ;;  %v2930_v37 = vsel %vm1257_vm3, %v11333_v12, -inf }
 0x49a   : > { %2928 = vmax.xlane.f32.xlu1 %v2927_v13 }
 0x49d   : > { %v8883_v14 = vpop.f32.mrb[24].mxu1  ;;  %2910 = vmax.xlane.f32.xlu0 %v2909_v47  ;;  %v12525_v47 = vld [vmem:[#allocation45_spill] sm:$0xff] }
 0x49e   : > { %v2700_v15 = vpop.f32.mrb[25].mxu1  ;;  %v11341_v46 = vadd.f32 %v8883_v14, %v12524_v16 }
 0x49f   : > { %v11338_v26 = vadd.f32 %v2700_v15, %v12523_v29  ;;  %v12526_v29 = vld [vmem:[#allocation47_spill] sm:$0xff] }
 0x4a0   : > { %v2924_v13 = vsel %vm1257_vm3, %v11341_v46, -inf }
 0x4a1   : > { %2931 = vmax.xlane.f32.xlu0 %v2930_v37  ;;  %v2921_v33 = vsel %vm1257_vm3, %v11338_v26, -inf }
 0x4a2   : > { %2922 = vmax.xlane.f32.xlu1 %v2921_v33  ;;  %v9830_v33 = vpop.permute.xlu0 %9829 }
 0x4a3   : > { %v9831_v27 = vunpack.i.l.bf16 %v9830_v33 }
 0x4a5   : > { %v8897_v34 = vpop.f32.mrb[26].mxu1  ;;  %2925 = vmax.xlane.f32.xlu0 %v2924_v13 }
 0x4a6   : > { %v11350_v7 = vadd.f32 %v8897_v34, %v12525_v47  ;;  %v2882_v15 = vpop.f32.mrb[27].mxu1 }
 0x4a7   : > { %v11353_v14 = vadd.f32 %v2882_v15, %v12526_v29  ;;  %v12527_v29 = vld [vmem:[#allocation26_spill] sm:$0xff] }
 0x4a8   : > { %v2936_v16 = vsel %vm1257_vm3, %v11350_v7, -inf }
 0x4a9   : > { %2937 = vmax.xlane.f32.xlu0 %v2936_v16  ;;  %v2933_v37 = vsel %vm1257_vm3, %v11353_v14, -inf }
 0x4aa   : > { %2934 = vmax.xlane.f32.xlu1 %v2933_v37  ;;  %v9832_v37 = vunpack.i.h.bf16 %v9830_v33 }
 0x4ba   : > { %v2896_v59 = vpop.xlane.xlu0 %2895 }
 0x4bb   : > { %v2940_v53 = vsub.f32 %v11272_v18, %v2896_v59  ;;  %9844 = vrot.lane.b32.xlu1 %v10794_v3, %s10406_s20 }
 0x4bd   : > { %v2957_v34 = vmul.f32 1.442695, %v2940_v53  ;;  %v9434_v53 = vpack.c.bf16 %v9832_v37, %v9831_v27 }
 0x4be   : > { %v2893_v13 = vpop.xlane.xlu0 %2892 }
 0x4bf   : > { %v2939_v15 = vsub.f32 %v11275_v6, %v2893_v13  ;;  %9839 = vrot.lane.b32.xlu0 %v12527_v29, %s10406_s20  ;;  %10040 = vpow2.f32 %v2957_v34  ;;  %v9835_v6 = vpop.permute.xlu1 %9834 }
 0x4c1   : > { %v2955_v47 = vmul.f32 1.442695, %v2939_v15 }
 0x4c3   : > { %10042 = vpow2.f32 %v2955_v47 }
 0x4c9   : > { %v10041_v16 = vpop.eup %10040 }
 0x4ca   : > { %v11369_v59 = vmul.f32 %v10041_v16, %v10849_v56 }
 0x4cd   : > { %v10043_v38 = vpop.eup %10042 }
 0x4ce   : > { %v11366_v19 = vmul.f32 %v10043_v38, %v10851_v57 }
 0x4d0   : > { %8902 = vmatprep.mubr.msk.f32.mxu0 %vm1257_vm3, %v11366_v19 }
 0x4d1   : > { %8903 = vmatmul.mubr.msk.f32.vlgmr.msra.gmra.mrb[36].mxu0 %vm1257_vm3, %v11369_v59 }
 0x4d2   : > { %9429 = vmatpush3.bf16.msra.mxu0 %v11237_v58 }
 0x4d3   : > { %9435 = vmatprep.subr.bf16.mxu0 %v9434_v53 }
 0x509   : > { %v2908_v18 = vpop.xlane.xlu1 %2907 }
 0x50a   : > { %v2944_v47 = vsub.f32 %v11286_v40, %v2908_v18 }
 0x50c   : > { %v2965_v33 = vmul.f32 1.442695, %v2944_v47 }
 0x50d   : > { %v2905_v38 = vpop.xlane.xlu1 %2904 }
 0x50e   : > { %v2943_v34 = vsub.f32 %v11289_v0, %v2905_v38  ;;  %10044 = vpow2.f32 %v2965_v33 }
 0x510   : > { %v2963_v13 = vmul.f32 1.442695, %v2943_v34 }
 0x512   : > { %10046 = vpow2.f32 %v2963_v13 }
 0x518   : > { %v10045_v15 = vpop.eup %10044 }
 0x519   : > { %v11382_v58 = vmul.f32 %v10045_v15, %v10879_v21 }
 0x51c   : > { %v10047_v16 = vpop.eup %10046 }
 0x51d   : > { %v11379_v57 = vmul.f32 %v10047_v16, %v10883_v23 }
 0x51e   : > { %v2902_v27 = vpop.xlane.xlu0 %2901 }
 0x51f   : > { %v2942_v37 = vsub.f32 %v11300_v22, %v2902_v27  ;;  %v2899_v56 = vpop.xlane.xlu1 %2898  ;;  %8916 = vmatprep.mubr.msk.f32.mxu0 %vm1257_vm3, %v11379_v57 }
 0x520   : > { %v2941_v40 = vsub.f32 %v11303_v55, %v2899_v56  ;;  %8917 = vmatmul.mubr.msk.f32.vlgmr.msra.gmra.mrb[38].mxu0 %vm1257_vm3, %v11382_v58 }
 0x521   : > { %v2961_v0 = vmul.f32 1.442695, %v2942_v37  ;;  %9437 = vmatpush3.bf16.msra.mxu0 %v9434_v53 }
 0x522   : > { %v2959_v18 = vmul.f32 1.442695, %v2941_v40  ;;  %v2920_v47 = vpop.xlane.xlu0 %2919 }
 0x523   : > { %10048 = vpow2.f32 %v2961_v0  ;;  %v2948_v33 = vsub.f32 %v11306_v52, %v2920_v47  ;;  %v2917_v38 = vpop.xlane.xlu1 %2916  ;;  %v9836_v47 = vunpack.i.l.bf16 %v9835_v6 }
 0x524   : > { %10050 = vpow2.f32 %v2959_v18  ;;  %v2947_v22 = vsub.f32 %v11311_v35, %v2917_v38  ;;  %v9837_v18 = vunpack.i.h.bf16 %v9835_v6 }
 0x525   : > { %v2973_v34 = vmul.f32 1.442695, %v2948_v33 }
 0x526   : > { %v2971_v13 = vmul.f32 1.442695, %v2947_v22  ;;  %v2914_v15 = vpop.xlane.xlu0 %2913 }
 0x527   : > { %10052 = vpow2.f32 %v2973_v34  ;;  %v2946_v56 = vsub.f32 %v11323_v44, %v2914_v15  ;;  %v2929_v55 = vpop.xlane.xlu1 %2928 }
 0x528   : > { %10054 = vpow2.f32 %v2971_v13  ;;  %v2951_v16 = vsub.f32 %v11318_v32, %v2929_v55 }
 0x529   : > { %v2969_v53 = vmul.f32 1.442695, %v2946_v56  ;;  %v9438_v56 = vpack.c.bf16 %v9837_v18, %v9836_v47 }
 0x52a   : > { %v2979_v27 = vmul.f32 1.442695, %v2951_v16  ;;  %v2911_v37 = vpop.xlane.xlu0 %2910 }
 0x52b   : > { %10056 = vpow2.f32 %v2969_v53  ;;  %v2945_v52 = vsub.f32 %v11326_v20, %v2911_v37 }
 0x52c   : > { %10058 = vpow2.f32 %v2979_v27 }
 0x52d   : > { %v10049_v40 = vpop.eup %10048  ;;  %v2967_v0 = vmul.f32 1.442695, %v2945_v52 }
 0x52e   : > { %v10051_v35 = vpop.eup %10050  ;;  %v2932_v33 = vpop.xlane.xlu0 %2931  ;;  %v11401_v34 = vmul.f32 %v10049_v40, %v10858_v8 }
 0x52f   : > { %10060 = vpow2.f32 %v2967_v0  ;;  %v2952_v44 = vsub.f32 %v11333_v12, %v2932_v33  ;;  %v2923_v38 = vpop.xlane.xlu1 %2922  ;;  %v11397_v22 = vmul.f32 %v10051_v35, %v10862_v10 }
 0x530   : > { %v2949_v32 = vsub.f32 %v11338_v26, %v2923_v38 }
 0x531   : > { %v10053_v20 = vpop.eup %10052  ;;  %v2981_v13 = vmul.f32 1.442695, %v2952_v44  ;;  %8909 = vmatprep.mubr.msk.f32.mxu1 %vm1257_vm3, %v11397_v22 }
 0x532   : > { %v10055_v15 = vpop.eup %10054  ;;  %v2975_v6 = vmul.f32 1.442695, %v2949_v32  ;;  %8910 = vmatmul.mubr.msk.f32.vlgmr.msra.gmra.mrb[28].mxu1 %vm1257_vm3, %v11401_v34  ;;  %v2926_v12 = vpop.xlane.xlu0 %2925  ;;  %v2996_v16 = vmul.f32 %v10053_v20, %v10897_v42 }
 0x533   : > { %10062 = vpow2.f32 %v2981_v13  ;;  %9433 = vmatpush3.bf16.msra.mxu1 %v11244_v24  ;;  %v2950_v26 = vsub.f32 %v11341_v46, %v2926_v12  ;;  %v2995_v55 = vmul.f32 %v10055_v15, %v10905_v51 }
 0x534   : > { %10064 = vpow2.f32 %v2975_v6  ;;  %9439 = vmatprep.subr.bf16.mxu1 %v9438_v56 }
 0x535   : > { %v10057_v53 = vpop.eup %10056  ;;  %v2977_v27 = vmul.f32 1.442695, %v2950_v26  ;;  %8930 = vmatprep.mubr.msk.f32.mxu0 %vm1257_vm3, %v2995_v55  ;;  %v3027_v37 = vsel %vm1257_vm3, %v2995_v55, 0.0 }
 0x536   : > { %v10059_v52 = vpop.eup %10058  ;;  %v2938_v40 = vpop.xlane.xlu0 %2937  ;;  %8931 = vmatmul.mubr.msk.f32.vlgmr.msra.gmra.mrb[40].mxu0 %vm1257_vm3, %v2996_v16  ;;  %3028 = vadd.xlane.f32.xlu0 %v3027_v37  ;;  %v2994_v24 = vmul.f32 %v10057_v53, %v10903_v48 }
 0x537   : > { %10066 = vpow2.f32 %v2977_v27  ;;  %v2954_v46 = vsub.f32 %v11350_v7, %v2938_v40  ;;  %v2935_v0 = vpop.xlane.xlu1 %2934  ;;  %v2999_v35 = vmul.f32 %v10059_v52, %v10920_v28  ;;  %v3030_v40 = vsel %vm1257_vm3, %v2996_v16, 0.0 }
 0x538   : > { %v2953_v18 = vsub.f32 %v11353_v14, %v2935_v0  ;;  %v3024_v47 = vsel %vm1257_vm3, %v2994_v24, 0.0 }
 0x539   : > { %v10061_v33 = vpop.eup %10060  ;;  %v2985_v44 = vmul.f32 1.442695, %v2954_v46  ;;  %3025 = vadd.xlane.f32.xlu1 %v3024_v47  ;;  %8944 = vmatprep.mubr.msk.f32.mxu0 %vm1257_vm3, %v2999_v35  ;;  %v3039_v55 = vsel %vm1257_vm3, %v2999_v35, 0.0 }
 0x53a   : > { %v2983_v38 = vmul.f32 1.442695, %v2953_v18  ;;  %v9840_v32 = vpop.permute.xlu0 %9839  ;;  %v2993_v20 = vmul.f32 %v10061_v33, %v10910_v5 }
 0x53b   : > { %10068 = vpow2.f32 %v2985_v44  ;;  %v9842_v13 = vunpack.i.h.bf16 %v9840_v32  ;;  %v9841_v15 = vunpack.i.l.bf16 %v9840_v32  ;;  %v9845_v7 = vpop.permute.xlu1 %9844  ;;  %v12528_v32 = vld [vmem:[#allocation14_spill] sm:$0xff] }
 0x53c   : > { %10070 = vpow2.f32 %v2983_v38  ;;  %v9847_v6 = vunpack.i.h.bf16 %v9845_v7  ;;  %v9846_v12 = vunpack.i.l.bf16 %v9845_v7  ;;  %8923 = vmatprep.mubr.msk.f32.mxu1 %vm1257_vm3, %v2993_v20  ;;  %v3021_v14 = vsel %vm1257_vm3, %v2993_v20, 0.0  ;;  %v3795_v38 = vld [vmem:[%s12350_s3 + $0x8] sm:$0xff] }
 0x53d   : > { %v10063_v26 = vpop.eup %10062  ;;  %8924 = vmatmul.mubr.msk.f32.vlgmr.msra.gmra.mrb[30].mxu1 %vm1257_vm3, %v2994_v24  ;;  %3022 = vadd.xlane.f32.xlu0 %v3021_v14  ;;  %v9442_v53 = vpack.c.bf16 %v9842_v13, %v9841_v15  ;;  %v12529_v13 = vld [vmem:[#allocation12_spill] sm:$0xff]  ;;  %v12530_v15 = vld [vmem:[#allocation23_spill] sm:$0xff] }
 0x53e   : > { %v10065_v27 = vpop.eup %10064  ;;  %9441 = vmatpush3.bf16.msra.mxu1 %v9438_v56  ;;  %3040 = vadd.xlane.f32.xlu1 %v3039_v55  ;;  %v9446_v37 = vpack.c.bf16 %v9847_v6, %v9846_v12  ;;  %v3000_v24 = vmul.f32 %v10063_v26, %v10918_v25  ;;  %v12531_v7 = vld [vmem:[#allocation24_spill] sm:$0xff]  ;;  %v3003_v26 = vsel %vm1257_vm3, %v11366_v19, 0.0  ;;  %v3009_v55 = vsel %vm1257_vm3, %v11397_v22, 0.0  ;;  %v12533_v19 = vld [vmem:[#allocation15_spill] sm:$0xff] }
 0x53f   : > { %9443 = vmatprep.subr.bf16.mxu0 %v9442_v53  ;;  %v2997_v52 = vmul.f32 %v10065_v27, %v10990_v43  ;;  %v3018_v27 = vsel %vm1257_vm3, %v11382_v58, 0.0  ;;  %v1379_v22 = vsel %vm1257_vm3, %v11091_v11, 0.0  ;;  %v1385_v58 = vsel %vm1257_vm3, %v11112_v17, 0.0 }
 0x540   : > { %9445 = vmatpush3.bf16.msra.mxu0 %v9442_v53  ;;  %9447 = vmatprep.subr.bf16.mxu1 %v9446_v37  ;;  %v3042_v47 = vsel %vm1257_vm3, %v3000_v24, 0.0  ;;  %v3012_v53 = vsel %vm1257_vm3, %v11401_v34, 0.0  ;;  %v12534_v34 = vld [vmem:[#allocation16_spill] sm:$0xff]  ;;  %v1397_v11 = vsel %vm1257_vm3, %v11140_v30, 0.0  ;;  %v1403_v17 = vsel %vm1257_vm3, %v11187_v31, 0.0 }
 0x541   : > { %v10067_v46 = vpop.eup %10066  ;;  %3031 = vadd.xlane.f32.xlu0 %v3030_v40  ;;  %8937 = vmatprep.mubr.msk.f32.mxu1 %vm1257_vm3, %v2997_v52  ;;  %v3033_v20 = vsel %vm1257_vm3, %v2997_v52, 0.0  ;;  %v1373_v52 = vsel %vm1257_vm3, %v11071_v54, 0.0  ;;  %v1391_v54 = vsel %vm1257_vm3, %v11133_v49, 0.0  ;;  %v12539_v31 = vld [vmem:[#allocation20_spill] sm:$0xff] }
 0x542   : > { %v2998_v0 = vmul.f32 %v10067_v46, %v12491_v4  ;;  %8954 = vmatprep.subr.mxu0 %v3795_v38  ;;  %v12535_v46 = vld [vmem:[#allocation17_spill] sm:$0xff] }
 0x543   : > { %8945 = vmatmul.mubr.msk.f32.vlgmr.msra.gmra.mrb[42].mxu0 %vm1257_vm3, %v3000_v24 }
 0x544   : > { %8938 = vmatmul.mubr.msk.f32.vlgmr.msra.gmra.mrb[32].mxu1 %vm1257_vm3, %v2998_v0  ;;  %v3036_v56 = vsel %vm1257_vm3, %v2998_v0, 0.0  ;;  %8955 = vmatpush3.msra.mxu0 %v3795_v38 }
 0x545   : > { %v10069_v35 = vpop.eup %10068  ;;  %9449 = vmatpush3.bf16.msra.mxu1 %v9446_v37  ;;  %3037 = vadd.xlane.f32.xlu0 %v3036_v56  ;;  %v12532_v37 = vld [vmem:[#allocation11_spill] sm:$0xff] }
 0x546   : > { %v10071_v18 = vpop.eup %10070  ;;  %v3002_v33 = vmul.f32 %v10069_v35, %v12493_v39  ;;  %9610 = vmatprep.subr.mxu1 %v3795_v38  ;;  %v12536_v35 = vld [vmem:[#allocation18_spill] sm:$0xff] }
 0x547   : > { %v3001_v16 = vmul.f32 %v10071_v18, %v11020_v9  ;;  %v12537_v18 = vld [vmem:[#allocation54_spill] sm:$0xff] }
 0x548   : > { %v3048_v44 = vsel %vm1257_vm3, %v3002_v33, 0.0 }
 0x549   : > { %3043 = vadd.xlane.f32.xlu0 %v3042_v47  ;;  %8951 = vmatprep.mubr.msk.f32.mxu1 %vm1257_vm3, %v3001_v16  ;;  %v3045_v14 = vsel %vm1257_vm3, %v3001_v16, 0.0  ;;  %v1409_v16 = vsel %vm1257_vm3, %v12537_v18, 0.0 }
 0x54a   : > { %8952 = vmatmul.mubr.msk.f32.vlgmr.msra.gmra.mrb[34].mxu1 %vm1257_vm3, %v3002_v33 }
 0x54b   : > { %9611 = vmatpush3.msra.mxu1 %v3795_v38 }
 0x54d   : > { %3049 = vadd.xlane.f32.xlu0 %v3048_v44  ;;  %v12540_v44 = vld [vmem:[#allocation56_spill] sm:$0xff] }
 0x54e   : > { %v1415_v38 = vsel %vm1257_vm3, %v12540_v44, 0.0 }
 0x54f   : > { %9849 = vrot.lane.b32.xlu1 %v10756_v61, %s10407_s25 }
 0x563   : > { %9854 = vrot.lane.b32.xlu0 %v10749_v60, %s10407_s25 }
 0x567   : > { %9859 = vrot.lane.b32.xlu0 %v10766_v63, %s10407_s25 }
 0x56b   : > { %4275 = vrot.lane.b32.xlu0 %v12528_v32, %s10408_s22 }
 0x56f   : > { %4364 = vrot.lane.b32.xlu0 %v10686_v36, %s10408_s22 }
 0x573   : > { %3034 = vadd.xlane.f32.xlu1 %v3033_v20  ;;  %9869 = vrot.lane.b32.xlu0 %v10760_v62, %s10407_s25 }
 0x577   : > { %4457 = vrot.lane.b32.xlu0 %v10699_v41, %s10408_s22 }
 0x57b   : > { %4546 = vrot.lane.b32.xlu0 %v10707_v45, %s10408_s22 }
 0x57f   : > { %9879 = vrot.lane.b32.xlu0 %v12527_v29, %s10407_s25 }
 0x583   : > { %4639 = vrot.lane.b32.xlu0 %v10721_v50, %s10408_s22 }
 0x584   : > { %4182 = vrot.lane.b32.xlu1 %v12529_v13, %s10408_s22 }
 0x587   : > { %4728 = vrot.lane.b32.xlu0 %v12530_v15, %s10408_s22 }
 0x58b   : > { %4819 = vrot.lane.b32.xlu0 %v12531_v7, %s10408_s22 }
 0x5a4   : > { %v11469_v6 = vpop.f32.mrb[36].mxu0 }
 0x5a5   : > { %v11471_v12 = vpop.f32.mrb[37].mxu0 }
 0x5a8   : > { %3046 = vadd.xlane.f32.xlu1 %v3045_v14  ;;  %v12541_v14 = vld [vmem:[#allocation22_spill] sm:$0xff] }
 0x5aa   : > { %3004 = vadd.xlane.f32.xlu0 %v3003_v26 }
 0x5ae   : > { %3010 = vadd.xlane.f32.xlu0 %v3009_v55  ;;  %v12542_v55 = vld [vmem:[#allocation25_spill] sm:$0xff] }
 0x5b2   : > { %3013 = vadd.xlane.f32.xlu0 %v3012_v53 }
 0x5b6   : > { %3019 = vadd.xlane.f32.xlu0 %v3018_v27 }
 0x5b9   : > { %4184 = vrot.lane.b32.xlu1 %v12532_v37, %s10408_s22 }
 0x5ba   : > { %1374 = vadd.xlane.f32.xlu0 %v1373_v52 }
 0x5bd   : > { %4273 = vrot.lane.b32.xlu1 %v12533_v19, %s10408_s22 }
 0x5be   : > { %1380 = vadd.xlane.f32.xlu0 %v1379_v22 }
 0x5c1   : > { %9864 = vrot.lane.b32.xlu1 %v10776_v1, %s10407_s25 }
 0x5c2   : > { %1386 = vadd.xlane.f32.xlu0 %v1385_v58 }
 0x5c3   : > { %v3029_v33 = vpop.xlane.xlu0 %3028 }
 0x5c4   : > { %v3755_v18 = vmax.f32 %v3029_v33, 1e-30 }
 0x5c5   : > { %4366 = vrot.lane.b32.xlu1 %v12534_v34, %s10408_s22 }
 0x5c6   : > { %1392 = vadd.xlane.f32.xlu0 %v1391_v54  ;;  %v3026_v40 = vpop.xlane.xlu1 %3025 }
 0x5c9   : > { %4455 = vrot.lane.b32.xlu1 %v12535_v46, %s10408_s22 }
 0x5ca   : > { %1398 = vadd.xlane.f32.xlu0 %v1397_v11  ;;  %v3023_v20 = vpop.xlane.xlu0 %3022 }
 0x5cb   : > { %v3041_v24 = vpop.xlane.xlu1 %3040 }
 0x5cc   : > { %v3759_v15 = vmax.f32 %v3041_v24, 1e-30 }
 0x5cd   : > { %9874 = vrot.lane.b32.xlu1 %v10783_v2, %s10407_s25 }
 0x5ce   : > { %1404 = vadd.xlane.f32.xlu0 %v1403_v17  ;;  %v3032_v26 = vpop.xlane.xlu0 %3031  ;;  %v3753_v17 = vmax.f32 %v3023_v20, 1e-30 }
 0x5cf   : > { %v9850_v0 = vpop.permute.xlu1 %9849 }
 0x5d0   : > { %v9852_v56 = vunpack.i.h.bf16 %v9850_v0  ;;  %v9851_v49 = vunpack.i.l.bf16 %v9850_v0  ;;  %10072 = vrcp.f32 %v3753_v17 }
 0x5d1   : > { %4548 = vrot.lane.b32.xlu1 %v12536_v35, %s10408_s22 }
 0x5d2   : > { %v11510_v47 = vpack.c.bf16 %v9852_v56, %v9851_v49  ;;  %1410 = vadd.xlane.f32.xlu0 %v1409_v16  ;;  %v3038_v53 = vpop.xlane.xlu0 %3037  ;;  %v3754_v56 = vmax.f32 %v3026_v40, 1e-30  ;;  %v3006_v49 = vsel %vm1257_vm3, %v11369_v59, 0.0 }
 0x5d3   : > { %v3758_v33 = vmax.f32 %v3038_v53, 1e-30 }
 0x5d4   : > { %9452 = vmatprep.subr.msk.bf16.mxu1 %vm10662_vm2, %v11510_v47  ;;  %10074 = vrcp.f32 %v3754_v56  ;;  %v12544_v56 = vld [vmem:[#allocation49_spill] sm:$0xff] }
 0x5d5   : > { %4637 = vrot.lane.b32.xlu1 %v12539_v31, %s10408_s22  ;;  %10076 = vrcp.f32 %v3755_v18  ;;  %v1376_v18 = vsel %vm1257_vm3, %v12544_v56, 0.0 }
 0x5d6   : > { %1416 = vadd.xlane.f32.xlu0 %v1415_v38  ;;  %v3044_v27 = vpop.xlane.xlu0 %3043 }
 0x5d9   : > { %9884 = vrot.lane.b32.xlu1 %v10794_v3, %s10407_s25 }
 0x5da   : > { %v11527_v52 = vpop.xlane.xlu0 %3049 }
 0x5dd   : > { %4730 = vrot.lane.b32.xlu1 %v12541_v14, %s10408_s22  ;;  %v3015_v14 = vsel %vm1257_vm3, %v11379_v57, 0.0 }
 0x5de   : > { %v9855_v54 = vpop.permute.xlu0 %9854 }
 0x5df   : > { %v9856_v31 = vunpack.i.l.bf16 %v9855_v54 }
 0x5e1   : > { %4821 = vrot.lane.b32.xlu1 %v12542_v55, %s10408_s22  ;;  %v3756_v55 = vmax.f32 %v3032_v26, 1e-30  ;;  %v3760_v26 = vmax.f32 %v3044_v27, 1e-30 }
 0x5e2   : > { %v11533_v11 = vpop.permute.xlu0 %9859 }
 0x5e3   : > { %10078 = vrcp.f32 %v3756_v55  ;;  %v9862_v46 = vunpack.i.h.bf16 %v11533_v11  ;;  %v9861_v39 = vunpack.i.l.bf16 %v11533_v11 }
 0x5e6   : > { %v11535_v0 = vpop.permute.xlu0 %4275 }
 0x5ea   : > { %v11545_v20 = vpop.permute.xlu0 %4364 }
 0x5ec   : > { %9894 = vrot.lane.b32.xlu0 %v10749_v60, %s10409_s23 }
 0x5ee   : > { %v11549_v17 = vpop.permute.xlu0 %9869 }
 0x5f2   : > { %v11558_v56 = vpop.permute.xlu0 %4457 }
 0x5f3   : > { %v11529_v22 = vpop.f32.mrb[38].mxu0 }
 0x5f4   : > { %v11531_v58 = vpop.f32.mrb[39].mxu0 }
 0x600   : > { %v3035_v38 = vpop.xlane.xlu1 %3034 }
 0x601   : > { %v3757_v50 = vmax.f32 %v3035_v38, 1e-30  ;;  %v9857_v38 = vunpack.i.h.bf16 %v9855_v54 }
 0x603   : > { %10080 = vrcp.f32 %v3757_v50  ;;  %v11556_v27 = vpack.c.bf16 %v9857_v38, %v9856_v31 }
 0x604   : > { %10082 = vrcp.f32 %v3758_v33 }
 0x605   : > { %3007 = vadd.xlane.f32.xlu1 %v3006_v49  ;;  %v11539_v16 = vpop.f32.mrb[28].mxu1  ;;  %v12543_v49 = vld [vmem:[#allocation48_spill] sm:$0xff]  ;;  %10084 = vrcp.f32 %v3759_v15 }
 0x606   : > { %v11541_v44 = vpop.f32.mrb[29].mxu1  ;;  %v1370_v7 = vsel %vm1257_vm3, %v12543_v49, 0.0  ;;  %10086 = vrcp.f32 %v3760_v26 }
 0x609   : > { %3016 = vadd.xlane.f32.xlu1 %v3015_v14  ;;  %v8932_v40 = vpop.f32.mrb[40].mxu0  ;;  %v10073_v14 = vpop.eup %10072 }
 0x60a   : > { %v3477_v59 = vpop.f32.mrb[41].mxu0  ;;  %v10075_v53 = vpop.eup %10074 }
 0x60b   : > { %v10077_v49 = vpop.eup %10076 }
 0x60c   : > { %v3787_v50 = vmul.f32 %v10077_v49, %v3477_v59  ;;  %v10079_v15 = vpop.eup %10078 }
 0x60d   : > { %1371 = vadd.xlane.f32.xlu1 %v1370_v7  ;;  %v12545_v7 = vld [vmem:[#allocation50_spill] sm:$0xff]  ;;  %v3788_v59 = vmul.f32 %v10079_v15, %v8932_v40  ;;  %v10081_v26 = vpop.eup %10080 }
 0x60e   : > { %v1382_v33 = vsel %vm1257_vm3, %v12545_v7, 0.0 }
 0x610   : > { %v8925_v57 = vpop.f32.mrb[30].mxu1 }
 0x611   : > { %1377 = vadd.xlane.f32.xlu1 %v1376_v18  ;;  %v3390_v55 = vpop.f32.mrb[31].mxu1  ;;  %v3786_v24 = vmul.f32 %v10075_v53, %v8925_v57  ;;  %v12546_v18 = vld [vmem:[#allocation51_spill] sm:$0xff]  ;;  %v11571_v53 = vpop.permute.xlu0 %4546 }
 0x612   : > { %v3785_v35 = vmul.f32 %v10073_v14, %v3390_v55  ;;  %v1388_v14 = vsel %vm1257_vm3, %v12546_v18, 0.0 }
 0x614   : > { %8965 = vmatprep.mubr.msk.f32.mxu1 %vm550_vm1, %v3785_v35 }
 0x615   : > { %1383 = vadd.xlane.f32.xlu1 %v1382_v33  ;;  %8966 = vmatmul.mubr.msk.f32.vlgmr.msra.gmra.mrb[36].mxu1 %vm550_vm1, %v3786_v24  ;;  %v12547_v24 = vld [vmem:[#allocation52_spill] sm:$0xff]  ;;  %v11580_v18 = vpop.permute.xlu0 %9879 }
 0x616   : > { %9455 = vmatpush3.bf16.xpose.msk.msra.mxu1 %vm10662_vm2, %v11510_v47  ;;  %v8946_v54 = vpop.f32.mrb[42].mxu0  ;;  %8968 = vmatprep.mubr.msk.f32.mxu1 %vm550_vm1, %v3787_v50  ;;  %v10083_v47 = vpop.eup %10082  ;;  %v1394_v50 = vsel %vm1257_vm3, %v12547_v24, 0.0  ;;  %v3762_v24 = vmax.f32 %v11527_v52, 1e-30 }
 0x617   : > { %9458 = vmatprep.subr.msk.bf16.mxu1 %vm10662_vm2, %v11556_v27  ;;  %v8939_v35 = vpop.f32.mrb[32].mxu1  ;;  %v3651_v31 = vpop.f32.mrb[43].mxu0 }
 0x618   : > { %v3564_v57 = vpop.f32.mrb[33].mxu1  ;;  %v10085_v55 = vpop.eup %10084  ;;  %v3790_v40 = vmul.f32 %v10083_v47, %v8939_v35  ;;  %v12549_v35 = vld [vmem:[#allocation53_spill] sm:$0xff] }
 0x619   : > { %v3789_v38 = vmul.f32 %v10081_v26, %v3564_v57  ;;  %1389 = vadd.xlane.f32.xlu1 %v1388_v14  ;;  %8969 = vmatmul.mubr.msk.f32.gmra.mrb[38].mxu1 %vm550_vm1, %v3788_v59  ;;  %v3791_v49 = vmul.f32 %v10085_v55, %v3651_v31  ;;  %v10087_v33 = vpop.eup %10086  ;;  %v12548_v26 = vld [vmem:[#allocation55_spill] sm:$0xff]  ;;  %v1406_v31 = vsel %vm1257_vm3, %v12549_v35, 0.0  ;;  %v11585_v14 = vpop.permute.xlu0 %4639 }
 0x61a   : > { %v3792_v59 = vmul.f32 %v10087_v33, %v8946_v54  ;;  %v1400_v57 = vsel %vm1257_vm3, %v12548_v26, 0.0  ;;  %v11592_v54 = vld [vmem:[%s12350_s3] sm:$0xff] }
 0x61b   : > { %8971 = vmatprep.mubr.msk.f32.mxu1 %vm550_vm1, %v3789_v38  ;;  %v12550_v38 = vld [vmem:[#allocation37_spill] sm:$0xff]  ;;  %8980 = vmatprep.subr.mxu0 %v11592_v54 }
 0x61c   : > { %v1412_v47 = vsel %vm1257_vm3, %v12550_v38, 0.0 }
 0x61d   : > { %1395 = vadd.xlane.f32.xlu1 %v1394_v50  ;;  %v8953_v7 = vpop.f32.mrb[34].mxu1  ;;  %8972 = vmatmul.mubr.msk.f32.gmra.mrb[40].mxu1 %vm550_vm1, %v3790_v40  ;;  %v11594_v55 = vpop.permute.xlu0 %4728 }
 0x61e   : > { %v3738_v15 = vpop.f32.mrb[35].mxu1  ;;  %8974 = vmatprep.mubr.msk.f32.mxu1 %vm550_vm1, %v3791_v49  ;;  %v4183_v40 = vpop.permute.xlu1 %4182 }
 0x621   : > { %1401 = vadd.xlane.f32.xlu1 %v1400_v57  ;;  %8975 = vmatmul.mubr.msk.f32.gmra.mrb[42].mxu1 %vm550_vm1, %v3792_v59  ;;  %v11597_v49 = vpop.permute.xlu0 %4819 }
 0x625   : > { %1407 = vadd.xlane.f32.xlu1 %v1406_v31 }
 0x629   : > { %1413 = vadd.xlane.f32.xlu1 %v1412_v47 }
 0x635   : > { %v3047_v50 = vpop.xlane.xlu1 %3046 }
 0x636   : > { %v3761_v33 = vmax.f32 %v3047_v50, 1e-30 }
 0x637   : > { %v3005_v59 = vpop.xlane.xlu0 %3004 }
 0x638   : > { %10088 = vrcp.f32 %v3761_v33  ;;  %v3747_v26 = vmax.f32 %v3005_v59, 1e-30 }
 0x639   : > { %10090 = vrcp.f32 %v3762_v24  ;;  %v4185_v57 = vpop.permute.xlu1 %4184 }
 0x63a   : > { %10092 = vrcp.f32 %v3747_v26  ;;  %9889 = vrot.lane.b32.xlu1 %v10756_v61, %s10409_s23 }
 0x63b   : > { %v11602_v35 = vpop.xlane.xlu0 %3010 }
 0x63d   : > { %v4274_v38 = vpop.permute.xlu1 %4273 }
 0x63e   : > { %9899 = vrot.lane.b32.xlu1 %v10766_v63, %s10409_s23 }
 0x63f   : > { %v11606_v31 = vpop.xlane.xlu0 %3013 }
 0x641   : > { %v9865_v45 = vpop.permute.xlu1 %9864 }
 0x642   : > { %v10089_v52 = vpop.eup %10088  ;;  %9904 = vrot.lane.b32.xlu1 %v10776_v1, %s10409_s23 }
 0x643   : > { %v10091_v47 = vpop.eup %10090  ;;  %v11610_v50 = vpop.xlane.xlu0 %3019  ;;  %v3793_v24 = vmul.f32 %v10089_v52, %v3738_v15  ;;  %v9867_v15 = vunpack.i.h.bf16 %v9865_v45 }
 0x644   : > { %v10093_v33 = vpop.eup %10092  ;;  %v3794_v59 = vmul.f32 %v10091_v47, %v8953_v7  ;;  %v9462_v7 = vpack.c.bf16 %v9862_v46, %v9861_v39 }
 0x645   : > { %8977 = vmatprep.mubr.msk.f32.mxu1 %vm550_vm1, %v3793_v24  ;;  %v3779_v26 = vmul.f32 %v10093_v33, %v11471_v12  ;;  %v4367_v11 = vpop.permute.xlu1 %4366 }
 0x646   : > { %9909 = vrot.lane.b32.xlu1 %v10760_v62, %s10409_s23  ;;  %8978 = vmatmul.mubr.msk.f32.gmra.mrb[44].mxu1 %vm550_vm1, %v3794_v59 }
 0x647   : > { %9010 = vmatprep.mubr.msk.f32.mxu1 %vm550_vm1, %v4183_v40  ;;  %v11620_v9 = vpop.xlane.xlu0 %1374  ;;  %8956 = vmatprep.mubr.msk.f32.mxu0 %vm550_vm1, %v3779_v26  ;;  %v9866_v40 = vunpack.i.l.bf16 %v9865_v45  ;;  %v9872_v45 = vunpack.i.h.bf16 %v11549_v17 }
 0x649   : > { %v9468_v46 = vpack.c.bf16 %v9867_v15, %v9866_v40 }
 0x64a   : > { %9914 = vrot.lane.b32.xlu1 %v10783_v2, %s10409_s23  ;;  %9011 = vmatmul.mubr.msk.f32.vlgmr.msra.gmra.mrb[46].mxu1 %vm550_vm1, %v4185_v57  ;;  %v4456_v57 = vpop.permute.xlu1 %4455 }
 0x64b   : > { %9461 = vmatpush3.bf16.xpose.msk.msra.mxu1 %vm10662_vm2, %v11556_v27  ;;  %9017 = vmatprep.mubr.msk.f32.mxu1 %vm550_vm1, %v4274_v38  ;;  %v11630_v12 = vpop.xlane.xlu0 %1380  ;;  %v9871_v38 = vunpack.i.l.bf16 %v11549_v17 }
 0x64c   : > { %9464 = vmatprep.subr.msk.bf16.mxu1 %vm10662_vm2, %v9462_v7 }
 0x64d   : > { %v9474_v47 = vpack.c.bf16 %v9872_v45, %v9871_v38 }
 0x64e   : > { %v9875_v52 = vpop.permute.xlu1 %9874 }
 0x64f   : > { %v11634_v39 = vpop.xlane.xlu0 %1386  ;;  %v9876_v24 = vunpack.i.l.bf16 %v9875_v52 }
 0x652   : > { %9018 = vmatmul.mubr.msk.f32.vlgmr.msra.gmra.mrb[48].mxu1 %vm550_vm1, %v11535_v0  ;;  %v4549_v33 = vpop.permute.xlu1 %4548 }
 0x653   : > { %9467 = vmatpush3.bf16.xpose.msk.msra.mxu1 %vm10662_vm2, %v9462_v7  ;;  %9024 = vmatprep.mubr.msk.f32.mxu1 %vm550_vm1, %v11545_v20  ;;  %v11644_v27 = vpop.xlane.xlu0 %1392  ;;  %v9877_v20 = vunpack.i.h.bf16 %v9875_v52  ;;  %v9882_v7 = vunpack.i.h.bf16 %v11580_v18 }
 0x654   : > { %9470 = vmatprep.subr.msk.bf16.mxu1 %vm10662_vm2, %v9468_v46 }
 0x655   : > { %v9480_v17 = vpack.c.bf16 %v9877_v20, %v9876_v24 }
 0x656   : > { %v4638_v26 = vpop.permute.xlu1 %4637 }
 0x657   : > { %v11649_v0 = vpop.xlane.xlu0 %1398 }
 0x65a   : > { %9025 = vmatmul.mubr.msk.f32.vlgmr.msra.gmra.mrb[50].mxu1 %vm550_vm1, %v4367_v11  ;;  %v9881_v11 = vunpack.i.l.bf16 %v11580_v18 }
 0x65b   : > { %9473 = vmatpush3.bf16.xpose.msk.msra.mxu1 %vm10662_vm2, %v9468_v46  ;;  %9031 = vmatprep.mubr.msk.f32.mxu1 %vm550_vm1, %v4456_v57  ;;  %v11656_v59 = vpop.xlane.xlu0 %1404 }
 0x65c   : > { %9476 = vmatprep.subr.msk.bf16.mxu1 %vm10662_vm2, %v9474_v47  ;;  %v9486_v40 = vpack.c.bf16 %v9882_v7, %v9881_v11  ;;  %v3752_v7 = vmax.f32 %v11610_v50, 1e-30 }
 0x65f   : > { %v11668_v15 = vpop.xlane.xlu0 %1410 }
 0x662   : > { %9032 = vmatmul.mubr.msk.f32.vlgmr.msra.gmra.mrb[52].mxu1 %vm550_vm1, %v11558_v56  ;;  %v9885_v56 = vpop.permute.xlu1 %9884 }
 0x663   : > { %9479 = vmatpush3.bf16.xpose.msk.msra.mxu1 %vm10662_vm2, %v9474_v47  ;;  %9038 = vmatprep.mubr.msk.f32.mxu1 %vm550_vm1, %v11571_v53  ;;  %v11676_v53 = vpop.xlane.xlu0 %1416  ;;  %v9887_v46 = vunpack.i.h.bf16 %v9885_v56  ;;  %v9886_v57 = vunpack.i.l.bf16 %v9885_v56 }
 0x664   : > { %9482 = vmatprep.subr.msk.bf16.mxu1 %vm10662_vm2, %v9480_v17 }
 0x665   : > { %v9492_v45 = vpack.c.bf16 %v9887_v46, %v9886_v57 }
 0x666   : > { %v4731_v47 = vpop.permute.xlu1 %4730 }
 0x667   : > { %v9895_v18 = vpop.permute.xlu0 %9894 }
 0x668   : > { %v9897_v38 = vunpack.i.h.bf16 %v9895_v18  ;;  %v9896_v52 = vunpack.i.l.bf16 %v9895_v18 }
 0x66a   : > { %9039 = vmatmul.mubr.msk.f32.vlgmr.msra.gmra.mrb[54].mxu1 %vm550_vm1, %v4549_v33  ;;  %v9502_v20 = vpack.c.bf16 %v9897_v38, %v9896_v52  ;;  %v3750_v33 = vmax.f32 %v11606_v31, 1e-30  ;;  %v2117_v31 = vmax.f32 %v11630_v12, 1e-30 }
 0x66b   : > { %9485 = vmatpush3.bf16.xpose.msk.msra.mxu1 %vm10662_vm2, %v9480_v17  ;;  %9045 = vmatprep.mubr.msk.f32.mxu1 %vm550_vm1, %v4638_v26 }
 0x66c   : > { %9488 = vmatprep.subr.msk.bf16.mxu1 %vm10662_vm2, %v9486_v40 }
 0x672   : > { %9046 = vmatmul.mubr.msk.f32.vlgmr.msra.gmra.mrb[56].mxu1 %vm550_vm1, %v11585_v14  ;;  %v4822_v14 = vpop.permute.xlu1 %4821 }
 0x673   : > { %9491 = vmatpush3.bf16.xpose.msk.msra.mxu1 %vm10662_vm2, %v9486_v40  ;;  %9052 = vmatprep.mubr.msk.f32.mxu1 %vm550_vm1, %v11594_v55  ;;  %v3749_v55 = vmax.f32 %v11602_v35, 1e-30  ;;  %v2115_v40 = vmax.f32 %v11620_v9, 1e-30  ;;  %v2119_v9 = vmax.f32 %v11634_v39, 1e-30 }
 0x674   : > { %9494 = vmatprep.subr.msk.bf16.mxu1 %vm10662_vm2, %v9492_v45 }
 0x675   : > { %10094 = vrcp.f32 %v3749_v55 }
 0x67a   : > { %9053 = vmatmul.mubr.msk.f32.vlgmr.msra.gmra.mrb[58].mxu1 %vm550_vm1, %v4731_v47 }
 0x67b   : > { %9497 = vmatpush3.bf16.xpose.msk.msra.mxu1 %vm10662_vm2, %v9492_v45  ;;  %9059 = vmatprep.mubr.msk.f32.mxu1 %vm550_vm1, %v11597_v49 }
 0x67c   : > { %9503 = vmatprep.subr.bf16.mxu1 %v9502_v20 }
 0x67f   : > { %v10095_v46 = vpop.eup %10094 }
 0x680   : > { %v3781_v50 = vmul.f32 %v10095_v46, %v11541_v44 }
 0x682   : > { %9060 = vmatmul.mubr.msk.f32.vlgmr.msra.gmra.mrb[60].mxu1 %vm550_vm1, %v4822_v14 }
 0x683   : > { %9505 = vmatpush3.bf16.msra.mxu1 %v9502_v20 }
 0x692   : > { %v3008_v24 = vpop.xlane.xlu1 %3007 }
 0x693   : > { %v3748_v17 = vmax.f32 %v3008_v24, 1e-30  ;;  %v2121_v24 = vmax.f32 %v11644_v27, 1e-30  ;;  %v12552_v27 = vld [vmem:[#allocation57_spill] sm:$0xff] }
 0x695   : > { %10096 = vrcp.f32 %v3748_v17  ;;  %v12551_v17 = vld [vmem:[#allocation58_spill] sm:$0xff] }
 0x696   : > { %v3017_v26 = vpop.xlane.xlu1 %3016  ;;  %10098 = vrcp.f32 %v3750_v33 }
 0x697   : > { %v3751_v11 = vmax.f32 %v3017_v26, 1e-30 }
 0x699   : > { %10100 = vrcp.f32 %v3751_v11 }
 0x69a   : > { %v1372_v49 = vpop.xlane.xlu1 %1371  ;;  %10102 = vrcp.f32 %v3752_v7  ;;  %v2123_v7 = vmax.f32 %v11649_v0, 1e-30  ;;  %v12554_v0 = vld [vmem:[#allocation59_spill] sm:$0xff] }
 0x69b   : > { %v2114_v56 = vmax.f32 %v1372_v49, 1e-30 }
 0x69d   : > { %10104 = vrcp.f32 %v2114_v56 }
 0x69e   : > { %v1378_v35 = vpop.xlane.xlu1 %1377  ;;  %10106 = vrcp.f32 %v2115_v40  ;;  %v12553_v40 = vld [vmem:[#allocation60_spill] sm:$0xff] }
 0x69f   : > { %v10097_v57 = vpop.eup %10096  ;;  %v2116_v45 = vmax.f32 %v1378_v35, 1e-30 }
 0x6a0   : > { %v3780_v18 = vmul.f32 %v10097_v57, %v11469_v6  ;;  %v10099_v38 = vpop.eup %10098  ;;  %v2125_v57 = vmax.f32 %v11656_v59, 1e-30  ;;  %v12556_v59 = vld [vmem:[#allocation61_spill] sm:$0xff] }
 0x6a1   : > { %10108 = vrcp.f32 %v2116_v45  ;;  %v3782_v12 = vmul.f32 %v10099_v38, %v11539_v16 }
 0x6a2   : > { %8957 = vmatmul.mubr.msk.f32.vlgmr.msra.gmra.mrb[44].mxu0 %vm550_vm1, %v3780_v18  ;;  %v1384_v52 = vpop.xlane.xlu1 %1383  ;;  %10110 = vrcp.f32 %v2117_v31  ;;  %v12555_v18 = vld [vmem:[#allocation62_spill] sm:$0xff] }
 0x6a3   : > { %v10101_v47 = vpop.eup %10100  ;;  %v2118_v20 = vmax.f32 %v1384_v52, 1e-30  ;;  %8959 = vmatprep.mubr.msk.f32.mxu0 %vm550_vm1, %v3781_v50  ;;  %8981 = vmatpush3.msra.mxu0 %v11592_v54 }
 0x6a4   : > { %v3783_v6 = vmul.f32 %v10101_v47, %v11531_v58  ;;  %v10103_v14 = vpop.eup %10102 }
 0x6a5   : > { %10112 = vrcp.f32 %v2118_v20  ;;  %v3784_v39 = vmul.f32 %v10103_v14, %v11529_v22 }
 0x6a6   : > { %8960 = vmatmul.mubr.msk.f32.gmra.mrb[46].mxu0 %vm550_vm1, %v3782_v12  ;;  %v1390_v44 = vpop.xlane.xlu1 %1389  ;;  %10114 = vrcp.f32 %v2119_v9  ;;  %v2127_v9 = vmax.f32 %v11668_v15, 1e-30  ;;  %v12558_v15 = vld [vmem:[#allocation63_spill] sm:$0xff] }
 0x6a7   : > { %v10105_v55 = vpop.eup %10104  ;;  %v2120_v33 = vmax.f32 %v1390_v44, 1e-30  ;;  %8962 = vmatprep.mubr.msk.f32.mxu0 %vm550_vm1, %v3783_v6  ;;  %v12557_v6 = vld [vmem:[#allocation65_spill] sm:$0xff] }
 0x6a8   : > { %v2146_v54 = vmul.f32 %v10105_v55, %v12551_v17  ;;  %v10107_v26 = vpop.eup %10106 }
 0x6a9   : > { %10116 = vrcp.f32 %v2120_v33  ;;  %v2147_v49 = vmul.f32 %v10107_v26, %v12552_v27  ;;  %v2129_v33 = vmax.f32 %v11676_v53, 1e-30 }
 0x6aa   : > { %8963 = vmatmul.mubr.msk.f32.gmra.mrb[48].mxu0 %vm550_vm1, %v3784_v39  ;;  %v1396_v58 = vpop.xlane.xlu1 %1395  ;;  %10118 = vrcp.f32 %v2121_v24 }
 0x6ab   : > { %v10109_v16 = vpop.eup %10108  ;;  %v2122_v11 = vmax.f32 %v1396_v58, 1e-30  ;;  %8982 = vmatprep.mubr.msk.f32.mxu0 %vm550_vm1, %v2146_v54  ;;  %v12559_v54 = vld [vmem:[#allocation66_spill] sm:$0xff] }
 0x6ac   : > { %v2148_v56 = vmul.f32 %v10109_v16, %v12553_v40  ;;  %v10111_v46 = vpop.eup %10110  ;;  %v12561_v40 = vld [vmem:[#allocation70_spill] sm:$0xff] }
 0x6ad   : > { %10120 = vrcp.f32 %v2122_v11  ;;  %v2149_v45 = vmul.f32 %v10111_v46, %v12554_v0 }
 0x6ae   : > { %8983 = vmatmul.mubr.msk.f32.vlgmr.msra.gmra.mrb[44].mxu0 %vm550_vm1, %v2147_v49  ;;  %v1402_v22 = vpop.xlane.xlu1 %1401  ;;  %10122 = vrcp.f32 %v2123_v7  ;;  %v12560_v49 = vld [vmem:[#allocation64_spill] sm:$0xff] }
 0x6af   : > { %v10113_v35 = vpop.eup %10112  ;;  %v2124_v31 = vmax.f32 %v1402_v22, 1e-30  ;;  %8985 = vmatprep.mubr.msk.f32.mxu0 %vm550_vm1, %v2148_v56 }
 0x6b0   : > { %v2150_v38 = vmul.f32 %v10113_v35, %v12555_v18  ;;  %v10115_v50 = vpop.eup %10114 }
 0x6b1   : > { %10124 = vrcp.f32 %v2124_v31  ;;  %v2151_v12 = vmul.f32 %v10115_v50, %v12556_v59 }
 0x6b2   : > { %8986 = vmatmul.mubr.msk.f32.gmra.mrb[46].mxu0 %vm550_vm1, %v2149_v45  ;;  %v1408_v52 = vpop.xlane.xlu1 %1407  ;;  %10126 = vrcp.f32 %v2125_v57  ;;  %v12562_v45 = vld [vmem:[#allocation69_spill] sm:$0xff] }
 0x6b3   : > { %v10117_v47 = vpop.eup %10116  ;;  %v2126_v20 = vmax.f32 %v1408_v52, 1e-30  ;;  %8988 = vmatprep.mubr.msk.f32.mxu0 %vm550_vm1, %v2150_v38  ;;  %v12563_v38 = vld [vmem:[#allocation68_spill] sm:$0xff] }
 0x6b4   : > { %v2152_v14 = vmul.f32 %v10117_v47, %v12557_v6  ;;  %v10119_v44 = vpop.eup %10118  ;;  %v12564_v6 = vld [vmem:[#allocation67_spill] sm:$0xff] }
 0x6b5   : > { %10128 = vrcp.f32 %v2126_v20  ;;  %v2153_v17 = vmul.f32 %v10119_v44, %v12558_v15  ;;  %v12565_v44 = vld [vmem:[#allocation72_spill] sm:$0xff] }
 0x6b6   : > { %8989 = vmatmul.mubr.msk.f32.gmra.mrb[48].mxu0 %vm550_vm1, %v2151_v12  ;;  %v1414_v55 = vpop.xlane.xlu1 %1413  ;;  %10130 = vrcp.f32 %v2127_v9 }
 0x6b7   : > { %v10121_v24 = vpop.eup %10120  ;;  %v2128_v39 = vmax.f32 %v1414_v55, 1e-30  ;;  %8991 = vmatprep.mubr.msk.f32.mxu0 %vm550_vm1, %v2152_v14 }
 0x6b8   : > { %v2154_v26 = vmul.f32 %v10121_v24, %v12559_v54  ;;  %v10123_v58 = vpop.eup %10122 }
 0x6b9   : > { %10132 = vrcp.f32 %v2128_v39  ;;  %v2155_v53 = vmul.f32 %v10123_v58, %v12560_v49  ;;  %v12566_v39 = vld [vmem:[#allocation71_spill] sm:$0xff] }
 0x6ba   : > { %8992 = vmatmul.mubr.msk.f32.gmra.mrb[50].mxu0 %vm550_vm1, %v2153_v17  ;;  %v9890_v16 = vpop.permute.xlu1 %9889  ;;  %10134 = vrcp.f32 %v2129_v33 }
 0x6bb   : > { %v10125_v7 = vpop.eup %10124  ;;  %v9892_v11 = vunpack.i.h.bf16 %v9890_v16  ;;  %v9891_v27 = vunpack.i.l.bf16 %v9890_v16  ;;  %8994 = vmatprep.mubr.msk.f32.mxu0 %vm550_vm1, %v2154_v26 }
 0x6bc   : > { %v2156_v56 = vmul.f32 %v10125_v7, %v12561_v40  ;;  %v10127_v46 = vpop.eup %10126 }
 0x6bd   : > { %v9498_v22 = vpack.c.bf16 %v9892_v11, %v9891_v27  ;;  %v2157_v18 = vmul.f32 %v10127_v46, %v12562_v45 }
 0x6be   : > { %8995 = vmatmul.mubr.msk.f32.gmra.mrb[52].mxu0 %vm550_vm1, %v2155_v53  ;;  %v9900_v35 = vpop.permute.xlu1 %9899 }
 0x6bf   : > { %v10129_v57 = vpop.eup %10128  ;;  %v9902_v31 = vunpack.i.h.bf16 %v9900_v35  ;;  %v9901_v0 = vunpack.i.l.bf16 %v9900_v35  ;;  %8997 = vmatprep.mubr.msk.f32.mxu0 %vm550_vm1, %v2156_v56  ;;  %9499 = vmatprep.subr.bf16.mxu0 %v9498_v22  ;;  %v12577_v56 = vld [vmem:[#allocation29_spill] sm:$0xff]  ;;  %v12578_v35 = vld [vmem:[#allocation30_spill] sm:$0xff] }
 0x6c0   : > { %9501 = vmatpush3.bf16.msra.mxu0 %v9498_v22  ;;  %v2158_v50 = vmul.f32 %v10129_v57, %v12563_v38  ;;  %v10131_v52 = vpop.eup %10130 }
 0x6c1   : > { %v11738_v47 = vpack.c.bf16 %v9902_v31, %v9901_v0  ;;  %v2159_v14 = vmul.f32 %v10131_v52, %v12564_v6  ;;  %v12580_v52 = vld [vmem:[#allocation32_spill] sm:$0xff]  ;;  %v12581_v6 = vld [vmem:[#allocation33_spill] sm:$0xff] }
 0x6c2   : > { %8998 = vmatmul.mubr.msk.f32.gmra.mrb[54].mxu0 %vm550_vm1, %v2157_v18  ;;  %v9905_v9 = vpop.permute.xlu1 %9904  ;;  %v12579_v18 = vld [vmem:[#allocation31_spill] sm:$0xff] }
 0x6c3   : > { %v10133_v20 = vpop.eup %10132  ;;  %v9907_v59 = vunpack.i.h.bf16 %v9905_v9  ;;  %v9906_v12 = vunpack.i.l.bf16 %v9905_v9  ;;  %9000 = vmatprep.mubr.msk.f32.mxu0 %vm550_vm1, %v2158_v50  ;;  %9507 = vmatprep.subr.bf16.mxu0 %v11738_v47 }
 0x6c4   : > { %v2160_v55 = vmul.f32 %v10133_v20, %v12565_v44  ;;  %v10135_v24 = vpop.eup %10134 }
 0x6c5   : > { %v11745_v33 = vpack.c.bf16 %v9907_v59, %v9906_v12  ;;  %v2161_v15 = vmul.f32 %v10135_v24, %v12566_v39 }
 0x6c6   : > { %9001 = vmatmul.mubr.msk.f32.gmra.mrb[56].mxu0 %vm550_vm1, %v2159_v14 }
 0x6c7   : > { %9003 = vmatprep.mubr.msk.f32.mxu0 %vm550_vm1, %v2160_v55  ;;  %9511 = vmatprep.subr.bf16.mxu1 %v11745_v33  ;;  %v12582_v55 = vld [vmem:[#allocation34_spill] sm:$0xff] }
 0x6ca   : > { %9004 = vmatmul.mubr.msk.f32.gmra.mrb[58].mxu0 %vm550_vm1, %v2161_v15 }
 0x6e8   : > { %v11752_v17 = vpop.f32.mrb[36].mxu1 }
 0x6e9   : > { %12567 = vst [vmem:[#allocation26_spill] sm:$0xff] %v11752_v17  ;;  %v11754_v54 = vpop.f32.mrb[37].mxu1 }
 0x6ea   : > { %12568 = vst [vmem:[#allocation14_spill] sm:$0xff] %v11754_v54  ;;  %v12590_v54 = vld [vmem:[#allocation41_spill] sm:$0xff] }
 0x6ec   : > { %v11756_v26 = vpop.f32.mrb[38].mxu1 }
 0x6ed   : > { %12569 = vst [vmem:[#allocation12_spill] sm:$0xff] %v11756_v26  ;;  %v11758_v58 = vpop.f32.mrb[39].mxu1 }
 0x6ee   : > { %12570 = vst [vmem:[#allocation11_spill] sm:$0xff] %v11758_v58  ;;  %v12589_v58 = vld [vmem:[#allocation40_spill] sm:$0xff] }
 0x6f0   : > { %v11760_v16 = vpop.f32.mrb[40].mxu1 }
 0x6f1   : > { %12571 = vst [vmem:[#allocation15_spill] sm:$0xff] %v11760_v16  ;;  %v11762_v7 = vpop.f32.mrb[41].mxu1 }
 0x6f2   : > { %12572 = vst [vmem:[#allocation16_spill] sm:$0xff] %v11762_v7  ;;  %v12588_v7 = vld [vmem:[#allocation44_spill] sm:$0xff] }
 0x6f4   : > { %v11764_v11 = vpop.f32.mrb[42].mxu1 }
 0x6f5   : > { %12573 = vst [vmem:[#allocation54_spill] sm:$0xff] %v11764_v11  ;;  %v11766_v27 = vpop.f32.mrb[43].mxu1 }
 0x6f6   : > { %12574 = vst [vmem:[#allocation13_spill] sm:$0xff] %v11766_v27  ;;  %v12587_v27 = vld [vmem:[#allocation42_spill] sm:$0xff] }
 0x719   : > { %v11768_v49 = vpop.f32.mrb[44].mxu1 }
 0x71a   : > { %12575 = vst [vmem:[#allocation56_spill] sm:$0xff] %v11768_v49  ;;  %v11770_v53 = vpop.f32.mrb[45].mxu1 }
 0x71b   : > { %12576 = vst [vmem:[#allocation48_spill] sm:$0xff] %v11770_v53  ;;  %v12586_v53 = vld [vmem:[#allocation38_spill] sm:$0xff] }
 0x71d   : > { %v9012_v40 = vpop.f32.mrb[46].mxu1 }
 0x71e   : > { %v11773_v46 = vadd.f32 %v9012_v40, %v12577_v56  ;;  %v4264_v22 = vpop.f32.mrb[47].mxu1 }
 0x71f   : > { %v11776_v57 = vadd.f32 %v4264_v22, %v12578_v35  ;;  %v12583_v22 = vld [vmem:[#allocation36_spill] sm:$0xff] }
 0x720   : > { %v4913_v31 = vsel %vm1257_vm3, %v11773_v46, -inf }
 0x721   : > { %4914 = vmax.xlane.f32.xlu0 %v4913_v31  ;;  %v4910_v0 = vsel %vm1257_vm3, %v11776_v57, -inf }
 0x722   : > { %4911 = vmax.xlane.f32.xlu1 %v4910_v0 }
 0x725   : > { %v9019_v45 = vpop.f32.mrb[48].mxu1 }
 0x726   : > { %v11783_v38 = vadd.f32 %v9019_v45, %v12579_v18  ;;  %v4355_v50 = vpop.f32.mrb[49].mxu1  ;;  %v12584_v45 = vld [vmem:[#allocation39_spill] sm:$0xff] }
 0x727   : > { %v11786_v9 = vadd.f32 %v4355_v50, %v12580_v52 }
 0x728   : > { %v4919_v20 = vsel %vm1257_vm3, %v11783_v38, -inf }
 0x729   : > { %4920 = vmax.xlane.f32.xlu0 %v4919_v20  ;;  %v4916_v59 = vsel %vm1257_vm3, %v11786_v9, -inf }
 0x72a   : > { %4917 = vmax.xlane.f32.xlu1 %v4916_v59 }
 0x72d   : > { %v9026_v12 = vpop.f32.mrb[50].mxu1 }
 0x72e   : > { %v11793_v14 = vadd.f32 %v9026_v12, %v12581_v6  ;;  %v4446_v44 = vpop.f32.mrb[51].mxu1 }
 0x72f   : > { %v11796_v24 = vadd.f32 %v4446_v44, %v12582_v55  ;;  %v12585_v44 = vld [vmem:[#allocation35_spill] sm:$0xff] }
 0x730   : > { %v4925_v39 = vsel %vm1257_vm3, %v11793_v14, -inf }
 0x731   : > { %4926 = vmax.xlane.f32.xlu0 %v4925_v39  ;;  %v4922_v15 = vsel %vm1257_vm3, %v11796_v24, -inf }
 0x732   : > { %4923 = vmax.xlane.f32.xlu1 %v4922_v15 }
 0x735   : > { %v9033_v40 = vpop.f32.mrb[52].mxu1 }
 0x736   : > { %v11803_v31 = vadd.f32 %v9033_v40, %v12583_v22  ;;  %v4537_v0 = vpop.f32.mrb[53].mxu1 }
 0x737   : > { %v11806_v50 = vadd.f32 %v4537_v0, %v12584_v45 }
 0x738   : > { %v4931_v20 = vsel %vm1257_vm3, %v11803_v31, -inf }
 0x739   : > { %4932 = vmax.xlane.f32.xlu0 %v4931_v20  ;;  %v4928_v59 = vsel %vm1257_vm3, %v11806_v50, -inf }
 0x73a   : > { %4929 = vmax.xlane.f32.xlu1 %v4928_v59 }
 0x73d   : > { %v9040_v12 = vpop.f32.mrb[54].mxu1 }
 0x73e   : > { %v11813_v39 = vadd.f32 %v9040_v12, %v12585_v44  ;;  %v4628_v15 = vpop.f32.mrb[55].mxu1 }
 0x73f   : > { %v11816_v40 = vadd.f32 %v4628_v15, %v12586_v53  ;;  %v12591_v53 = vld [vmem:[#allocation45_spill] sm:$0xff] }
 0x740   : > { %v4937_v0 = vsel %vm1257_vm3, %v11813_v39, -inf }
 0x741   : > { %4938 = vmax.xlane.f32.xlu0 %v4937_v0  ;;  %v4934_v49 = vsel %vm1257_vm3, %v11816_v40, -inf }
 0x742   : > { %4935 = vmax.xlane.f32.xlu1 %v4934_v49 }
 0x745   : > { %v9047_v20 = vpop.f32.mrb[56].mxu1 }
 0x746   : > { %v11823_v11 = vadd.f32 %v9047_v20, %v12587_v27  ;;  %v4719_v59 = vpop.f32.mrb[57].mxu1 }
 0x747   : > { %v11826_v12 = vadd.f32 %v4719_v59, %v12588_v7  ;;  %v12592_v7 = vld [vmem:[#allocation47_spill] sm:$0xff] }
 0x748   : > { %v4943_v15 = vsel %vm1257_vm3, %v11823_v11, -inf }
 0x749   : > { %4944 = vmax.xlane.f32.xlu0 %v4943_v15  ;;  %v4940_v16 = vsel %vm1257_vm3, %v11826_v12, -inf }
 0x74a   : > { %4941 = vmax.xlane.f32.xlu1 %v4940_v16 }
 0x74d   : > { %v9054_v0 = vpop.f32.mrb[58].mxu1 }
 0x74e   : > { %v11833_v26 = vadd.f32 %v9054_v0, %v12589_v58  ;;  %v4810_v49 = vpop.f32.mrb[59].mxu1 }
 0x74f   : > { %v11836_v20 = vadd.f32 %v4810_v49, %v12590_v54 }
 0x750   : > { %v4949_v59 = vsel %vm1257_vm3, %v11833_v26, -inf }
 0x751   : > { %4950 = vmax.xlane.f32.xlu0 %v4949_v59  ;;  %v4946_v17 = vsel %vm1257_vm3, %v11836_v20, -inf }
 0x752   : > { %4947 = vmax.xlane.f32.xlu1 %v4946_v17 }
 0x755   : > { %v9061_v15 = vpop.f32.mrb[60].mxu1 }
 0x756   : > { %v11843_v44 = vadd.f32 %v9061_v15, %v12591_v53  ;;  %v4901_v16 = vpop.f32.mrb[61].mxu1 }
 0x757   : > { %v11846_v0 = vadd.f32 %v4901_v16, %v12592_v7 }
 0x758   : > { %v4955_v49 = vsel %vm1257_vm3, %v11843_v44, -inf }
 0x759   : > { %4956 = vmax.xlane.f32.xlu0 %v4955_v49  ;;  %v4952_v54 = vsel %vm1257_vm3, %v11846_v0, -inf }
 0x75d   : > { %4953 = vmax.xlane.f32.xlu0 %v4952_v54 }
 0x763   : > { %9924 = vrot.lane.b32.xlu1 %v10794_v3, %s10409_s23 }
 0x767   : > { %9934 = vrot.lane.b32.xlu1 %v10749_v60, %s10410_s5 }
 0x76b   : > { %6115 = vrot.lane.b32.xlu1 %v12533_v19, %s10411_s10  ;;  %v9910_v19 = vpop.permute.xlu1 %9909 }
 0x76f   : > { %9944 = vrot.lane.b32.xlu1 %v10776_v1, %s10410_s5 }
 0x773   : > { %9919 = vrot.lane.b32.xlu0 %v12527_v29, %s10409_s23  ;;  %6208 = vrot.lane.b32.xlu1 %v12534_v34, %s10411_s10  ;;  %v9915_v34 = vpop.permute.xlu1 %9914 }
 0x777   : > { %9929 = vrot.lane.b32.xlu0 %v10756_v61, %s10410_s5 }
 0x77b   : > { %6024 = vrot.lane.b32.xlu0 %v12529_v13, %s10411_s10 }
 0x77f   : > { %6026 = vrot.lane.b32.xlu0 %v12532_v37, %s10411_s10 }
 0x783   : > { %9939 = vrot.lane.b32.xlu0 %v10766_v63, %s10410_s5 }
 0x787   : > { %6117 = vrot.lane.b32.xlu0 %v12528_v32, %s10411_s10 }
 0x78b   : > { %6206 = vrot.lane.b32.xlu0 %v10686_v36, %s10411_s10 }
 0x7ae   : > { %v4915_v17 = vpop.xlane.xlu0 %4914 }
 0x7af   : > { %v4959_v54 = vsub.f32 %v11773_v46, %v4915_v17  ;;  %v4912_v59 = vpop.xlane.xlu1 %4911  ;;  %v9912_v46 = vunpack.i.h.bf16 %v9910_v19  ;;  %v9911_v17 = vunpack.i.l.bf16 %v9910_v19 }
 0x7b0   : > { %v4958_v13 = vsub.f32 %v11776_v57, %v4912_v59  ;;  %v12593_v57 = vld [vmem:[#allocation27_spill] sm:$0xff] }
 0x7b1   : > { %v4976_v15 = vmul.f32 1.442695, %v4959_v54 }
 0x7b2   : > { %v4974_v16 = vmul.f32 1.442695, %v4958_v13 }
 0x7b3   : > { %10136 = vpow2.f32 %v4976_v15  ;;  %v12594_v15 = vld [vmem:[#allocation28_spill] sm:$0xff] }
 0x7b4   : > { %10138 = vpow2.f32 %v4974_v16 }
 0x7b6   : > { %v4921_v37 = vpop.xlane.xlu0 %4920 }
 0x7b7   : > { %v4961_v49 = vsub.f32 %v11783_v38, %v4921_v37  ;;  %v4918_v58 = vpop.xlane.xlu1 %4917  ;;  %v9514_v37 = vpack.c.bf16 %v9912_v46, %v9911_v17 }
 0x7b8   : > { %v4960_v32 = vsub.f32 %v11786_v9, %v4918_v58 }
 0x7b9   : > { %v4980_v7 = vmul.f32 1.442695, %v4961_v49 }
 0x7ba   : > { %v4978_v36 = vmul.f32 1.442695, %v4960_v32 }
 0x7bb   : > { %10140 = vpow2.f32 %v4980_v7 }
 0x7bc   : > { %10142 = vpow2.f32 %v4978_v36 }
 0x7bd   : > { %v10137_v53 = vpop.eup %10136 }
 0x7be   : > { %v10139_v27 = vpop.eup %10138  ;;  %v4927_v45 = vpop.xlane.xlu0 %4926  ;;  %v5007_v54 = vmul.f32 %v10137_v53, %v12593_v57 }
 0x7bf   : > { %v4963_v59 = vsub.f32 %v11793_v14, %v4927_v45  ;;  %v4924_v13 = vpop.xlane.xlu1 %4923  ;;  %v5006_v16 = vmul.f32 %v10139_v27, %v12594_v15  ;;  %v9917_v14 = vunpack.i.h.bf16 %v9915_v34 }
 0x7c0   : > { %v4962_v38 = vsub.f32 %v11796_v24, %v4924_v13  ;;  %v5025_v58 = vsel %vm1257_vm3, %v5007_v54, 0.0  ;;  %v9916_v24 = vunpack.i.l.bf16 %v9915_v34 }
 0x7c1   : > { %v4984_v9 = vmul.f32 1.442695, %v4963_v59  ;;  %5026 = vadd.xlane.f32.xlu1 %v5025_v58  ;;  %9066 = vmatprep.mubr.msk.f32.mxu0 %vm1257_vm3, %v5006_v16  ;;  %v5022_v7 = vsel %vm1257_vm3, %v5006_v16, 0.0 }
 0x7c2   : > { %v4982_v19 = vmul.f32 1.442695, %v4962_v38  ;;  %9067 = vmatmul.mubr.msk.f32.vlgmr.msra.gmra.mrb[60].mxu0 %vm1257_vm3, %v5007_v54  ;;  %5023 = vadd.xlane.f32.xlu0 %v5022_v7 }
 0x7c3   : > { %10144 = vpow2.f32 %v4984_v9  ;;  %9509 = vmatpush3.bf16.msra.mxu0 %v11738_v47  ;;  %v9518_v47 = vpack.c.bf16 %v9917_v14, %v9916_v24 }
 0x7c4   : > { %10146 = vpow2.f32 %v4982_v19  ;;  %9515 = vmatprep.subr.bf16.mxu0 %v9514_v37 }
 0x7c5   : > { %v10141_v27 = vpop.eup %10140 }
 0x7c6   : > { %v10143_v53 = vpop.eup %10142  ;;  %v4933_v45 = vpop.xlane.xlu0 %4932  ;;  %v5009_v49 = vmul.f32 %v10141_v27, %v10858_v8 }
 0x7c7   : > { %v4965_v32 = vsub.f32 %v11803_v31, %v4933_v45  ;;  %v4930_v36 = vpop.xlane.xlu1 %4929  ;;  %v5008_v46 = vmul.f32 %v10143_v53, %v10862_v10 }
 0x7c8   : > { %v4964_v17 = vsub.f32 %v11806_v50, %v4930_v36  ;;  %v5031_v54 = vsel %vm1257_vm3, %v5009_v49, 0.0 }
 0x7c9   : > { %v4988_v59 = vmul.f32 1.442695, %v4965_v32  ;;  %5032 = vadd.xlane.f32.xlu0 %v5031_v54  ;;  %9073 = vmatprep.mubr.msk.f32.mxu1 %vm1257_vm3, %v5008_v46  ;;  %v5028_v31 = vsel %vm1257_vm3, %v5008_v46, 0.0 }
 0x7ca   : > { %v4986_v13 = vmul.f32 1.442695, %v4964_v17  ;;  %9074 = vmatmul.mubr.msk.f32.vlgmr.msra.gmra.mrb[62].mxu1 %vm1257_vm3, %v5009_v49 }
 0x7cb   : > { %10148 = vpow2.f32 %v4988_v59  ;;  %9513 = vmatpush3.bf16.msra.mxu1 %v11745_v33 }
 0x7cc   : > { %10150 = vpow2.f32 %v4986_v13  ;;  %9519 = vmatprep.subr.bf16.mxu1 %v9518_v47 }
 0x7cd   : > { %v10145_v34 = vpop.eup %10144  ;;  %5029 = vadd.xlane.f32.xlu0 %v5028_v31 }
 0x7ce   : > { %v10147_v50 = vpop.eup %10146  ;;  %v4939_v16 = vpop.xlane.xlu0 %4938  ;;  %v5011_v38 = vmul.f32 %v10145_v34, %v10879_v21 }
 0x7cf   : > { %v4967_v58 = vsub.f32 %v11813_v39, %v4939_v16  ;;  %v4936_v9 = vpop.xlane.xlu1 %4935  ;;  %v5010_v7 = vmul.f32 %v10147_v50, %v10883_v23 }
 0x7d0   : > { %v4966_v19 = vsub.f32 %v11816_v40, %v4936_v9  ;;  %v5037_v27 = vsel %vm1257_vm3, %v5011_v38, 0.0 }
 0x7d1   : > { %v4992_v33 = vmul.f32 1.442695, %v4967_v58  ;;  %5038 = vadd.xlane.f32.xlu0 %v5037_v27  ;;  %9080 = vmatprep.mubr.msk.f32.mxu0 %vm1257_vm3, %v5010_v7  ;;  %v5034_v53 = vsel %vm1257_vm3, %v5010_v7, 0.0 }
 0x7d2   : > { %v4990_v14 = vmul.f32 1.442695, %v4966_v19  ;;  %9081 = vmatmul.mubr.msk.f32.vlgmr.msra.gmra.mrb[62].mxu0 %vm1257_vm3, %v5011_v38  ;;  %5035 = vadd.xlane.f32.xlu1 %v5034_v53 }
 0x7d3   : > { %10152 = vpow2.f32 %v4992_v33  ;;  %9517 = vmatpush3.bf16.msra.mxu0 %v9514_v37 }
 0x7d4   : > { %10154 = vpow2.f32 %v4990_v14 }
 0x7d5   : > { %v10149_v39 = vpop.eup %10148 }
 0x7d6   : > { %v10151_v24 = vpop.eup %10150  ;;  %v4945_v45 = vpop.xlane.xlu0 %4944  ;;  %v5013_v40 = vmul.f32 %v10149_v39, %v10903_v48 }
 0x7d7   : > { %v4969_v49 = vsub.f32 %v11823_v11, %v4945_v45  ;;  %v4942_v32 = vpop.xlane.xlu1 %4941  ;;  %v5012_v36 = vmul.f32 %v10151_v24, %v10910_v5 }
 0x7d8   : > { %v4968_v46 = vsub.f32 %v11826_v12, %v4942_v32  ;;  %v5043_v17 = vsel %vm1257_vm3, %v5013_v40, 0.0 }
 0x7d9   : > { %v4996_v54 = vmul.f32 1.442695, %v4969_v49  ;;  %5044 = vadd.xlane.f32.xlu0 %v5043_v17  ;;  %9087 = vmatprep.mubr.msk.f32.mxu1 %vm1257_vm3, %v5012_v36  ;;  %v5040_v37 = vsel %vm1257_vm3, %v5012_v36, 0.0 }
 0x7da   : > { %v4994_v59 = vmul.f32 1.442695, %v4968_v46  ;;  %9088 = vmatmul.mubr.msk.f32.vlgmr.msra.gmra.mrb[64].mxu1 %vm1257_vm3, %v5013_v40  ;;  %5041 = vadd.xlane.f32.xlu1 %v5040_v37 }
 0x7db   : > { %10156 = vpow2.f32 %v4996_v54  ;;  %9521 = vmatpush3.bf16.msra.mxu1 %v9518_v47 }
 0x7dc   : > { %10158 = vpow2.f32 %v4994_v59 }
 0x7dd   : > { %v10153_v11 = vpop.eup %10152 }
 0x7de   : > { %v10155_v13 = vpop.eup %10154  ;;  %v4951_v31 = vpop.xlane.xlu0 %4950  ;;  %v5015_v12 = vmul.f32 %v10153_v11, %v10897_v42 }
 0x7df   : > { %v4948_v34 = vpop.xlane.xlu1 %4947  ;;  %v5014_v50 = vmul.f32 %v10155_v13, %v10905_v51  ;;  %v4971_v16 = vsub.f32 %v11833_v26, %v4951_v31 }
 0x7e0   : > { %v4970_v38 = vsub.f32 %v11836_v20, %v4948_v34  ;;  %v5049_v58 = vsel %vm1257_vm3, %v5015_v12, 0.0 }
 0x7e1   : > { %5050 = vadd.xlane.f32.xlu0 %v5049_v58  ;;  %9094 = vmatprep.mubr.msk.f32.mxu0 %vm1257_vm3, %v5014_v50  ;;  %v5046_v47 = vsel %vm1257_vm3, %v5014_v50, 0.0  ;;  %v5000_v19 = vmul.f32 1.442695, %v4971_v16 }
 0x7e2   : > { %v4998_v9 = vmul.f32 1.442695, %v4970_v38  ;;  %9095 = vmatmul.mubr.msk.f32.vlgmr.msra.gmra.mrb[64].mxu0 %vm1257_vm3, %v5015_v12  ;;  %5047 = vadd.xlane.f32.xlu1 %v5046_v47 }
 0x7e3   : > { %v9925_v7 = vpop.permute.xlu1 %9924 }
 0x7e4   : > { %10160 = vpow2.f32 %v4998_v9  ;;  %v9927_v27 = vunpack.i.h.bf16 %v9925_v7  ;;  %v9926_v33 = vunpack.i.l.bf16 %v9925_v7 }
 0x7e5   : > { %v10157_v53 = vpop.eup %10156  ;;  %10162 = vpow2.f32 %v5000_v19 }
 0x7e6   : > { %v10159_v26 = vpop.eup %10158  ;;  %v9526_v14 = vpack.c.bf16 %v9927_v27, %v9926_v33  ;;  %v4957_v20 = vpop.xlane.xlu0 %4956  ;;  %v5017_v39 = vmul.f32 %v10157_v53, %v12491_v4  ;;  %v12595_v27 = vld [vmem:[#allocation46_spill] sm:$0xff]  ;;  %v12596_v53 = vld [vmem:[#allocation19_spill] sm:$0xff] }
 0x7e7   : > { %v4973_v24 = vsub.f32 %v11843_v44, %v4957_v20  ;;  %v11925_v45 = vmul.f32 %v10159_v26, %v10990_v43  ;;  %v9935_v16 = vpop.permute.xlu1 %9934  ;;  %v12597_v26 = vld [vmem:[#allocation43_spill] sm:$0xff]  ;;  %v5814_v20 = vld [vmem:[%s12350_s3 + $0x10] sm:$0xff] }
 0x7e8   : > { %9527 = vmatprep.subr.bf16.mxu1 %v9526_v14  ;;  %v5055_v40 = vsel %vm1257_vm3, %v5017_v39, 0.0  ;;  %v9937_v9 = vunpack.i.h.bf16 %v9935_v16  ;;  %v9936_v7 = vunpack.i.l.bf16 %v9935_v16 }
 0x7e9   : > { %5056 = vadd.xlane.f32.xlu0 %v5055_v40  ;;  %9101 = vmatprep.mubr.msk.f32.mxu1 %vm1257_vm3, %v11925_v45  ;;  %v5004_v49 = vmul.f32 1.442695, %v4973_v24  ;;  %v5052_v16 = vsel %vm1257_vm3, %v11925_v45, 0.0  ;;  %v12604_v45 = vld [vmem:[#allocation22_spill] sm:$0xff] }
 0x7ea   : > { %v4954_v32 = vpop.xlane.xlu0 %4953  ;;  %9102 = vmatmul.mubr.msk.f32.vlgmr.msra.gmra.mrb[66].mxu1 %vm1257_vm3, %v5017_v39 }
 0x7eb   : > { %v4972_v36 = vsub.f32 %v11846_v0, %v4954_v32  ;;  %9529 = vmatpush3.bf16.msra.mxu1 %v9526_v14  ;;  %10164 = vpow2.f32 %v5004_v49  ;;  %v6116_v24 = vpop.permute.xlu1 %6115  ;;  %v12598_v32 = vld [vmem:[#allocation17_spill] sm:$0xff] }
 0x7ed   : > { %v5002_v46 = vmul.f32 1.442695, %v4972_v36 }
 0x7ee   : > { %v10161_v44 = vpop.eup %10160  ;;  %v9920_v17 = vpop.permute.xlu0 %9919 }
 0x7ef   : > { %10166 = vpow2.f32 %v5002_v46  ;;  %v9922_v54 = vunpack.i.h.bf16 %v9920_v17  ;;  %v9921_v37 = vunpack.i.l.bf16 %v9920_v17  ;;  %v11933_v59 = vmul.f32 %v10161_v44, %v10920_v28  ;;  %v10163_v13 = vpop.eup %10162  ;;  %v9945_v46 = vpop.permute.xlu1 %9944 }
 0x7f0   : > { %v5019_v50 = vmul.f32 %v10163_v13, %v10918_v25  ;;  %v9947_v17 = vunpack.i.h.bf16 %v9945_v46 }
 0x7f1   : > { %v9522_v11 = vpack.c.bf16 %v9922_v54, %v9921_v37  ;;  %9108 = vmatprep.mubr.msk.f32.mxu0 %vm1257_vm3, %v11933_v59  ;;  %v9946_v54 = vunpack.i.l.bf16 %v9945_v46  ;;  %v12599_v37 = vld [vmem:[#allocation18_spill] sm:$0xff] }
 0x7f2   : > { %v9930_v31 = vpop.permute.xlu0 %9929 }
 0x7f3   : > { %v9932_v12 = vunpack.i.h.bf16 %v9930_v31  ;;  %v9931_v34 = vunpack.i.l.bf16 %v9930_v31  ;;  %9523 = vmatprep.subr.bf16.mxu0 %v9522_v11  ;;  %9954 = vrot.lane.b32.xlu1 %v10783_v2, %s10410_s5  ;;  %v12600_v31 = vld [vmem:[#allocation20_spill] sm:$0xff] }
 0x7f4   : > { %9525 = vmatpush3.bf16.msra.mxu0 %v9522_v11  ;;  %v9548_v11 = vpack.c.bf16 %v9947_v17, %v9946_v54 }
 0x7f5   : > { %v9530_v0 = vpack.c.bf16 %v9932_v12, %v9931_v34  ;;  %v10165_v58 = vpop.eup %10164  ;;  %9118 = vmatprep.subr.mxu0 %v5814_v20  ;;  %v12601_v12 = vld [vmem:[#allocation23_spill] sm:$0xff]  ;;  %v6209_v34 = vpop.permute.xlu1 %6208 }
 0x7f6   : > { %v6025_v38 = vpop.permute.xlu0 %6024  ;;  %v5021_v14 = vmul.f32 %v10165_v58, %v12597_v26  ;;  %v5058_v58 = vsel %vm1257_vm3, %v11933_v59, 0.0 }
 0x7f7   : > { %6299 = vrot.lane.b32.xlu1 %v10699_v41, %s10411_s10  ;;  %9109 = vmatmul.mubr.msk.f32.vlgmr.msra.gmra.mrb[66].mxu0 %vm1257_vm3, %v5019_v50  ;;  %v9536_v41 = vpack.c.bf16 %v9937_v9, %v9936_v7 }
 0x7f8   : > { %9532 = vmatprep.subr.msk.bf16.mxu1 %vm10662_vm2, %v9530_v0  ;;  %9119 = vmatpush3.msra.mxu0 %v5814_v20 }
 0x7f9   : > { %v10167_v47 = vpop.eup %10166 }
 0x7fa   : > { %v6027_v19 = vpop.permute.xlu0 %6026  ;;  %v5020_v33 = vmul.f32 %v10167_v47, %v12595_v27  ;;  %v5067_v47 = vsel %vm1257_vm3, %v5021_v14, 0.0 }
 0x7fb   : > { %6388 = vrot.lane.b32.xlu1 %v12596_v53, %s10411_s10 }
 0x7fc   : > { %9115 = vmatprep.mubr.msk.f32.mxu1 %vm1257_vm3, %v5020_v33  ;;  %v5064_v9 = vsel %vm1257_vm3, %v5020_v33, 0.0 }
 0x7fd   : > { %9116 = vmatmul.mubr.msk.f32.vlgmr.msra.gmra.mrb[68].mxu1 %vm1257_vm3, %v5021_v14 }
 0x7fe   : > { %9535 = vmatpush3.bf16.xpose.msk.msra.mxu1 %vm10662_vm2, %v9530_v0  ;;  %v9940_v39 = vpop.permute.xlu0 %9939  ;;  %9148 = vmatprep.mubr.msk.f32.mxu1 %vm550_vm1, %v6025_v38  ;;  %v12602_v0 = vld [vmem:[#allocation24_spill] sm:$0xff]  ;;  %v5061_v38 = vsel %vm1257_vm3, %v5019_v50, 0.0  ;;  %v12605_v50 = vld [vmem:[#allocation25_spill] sm:$0xff] }
 0x7ff   : > { %9538 = vmatprep.subr.msk.bf16.mxu1 %vm10662_vm2, %v9536_v41  ;;  %9949 = vrot.lane.b32.xlu0 %v10760_v62, %s10410_s5  ;;  %v9942_v40 = vunpack.i.h.bf16 %v9940_v39  ;;  %v9941_v49 = vunpack.i.l.bf16 %v9940_v39 }
 0x801   : > { %v9542_v36 = vpack.c.bf16 %v9942_v40, %v9941_v49 }
 0x802   : > { %v6118_v44 = vpop.permute.xlu0 %6117 }
 0x803   : > { %6297 = vrot.lane.b32.xlu0 %v12598_v32, %s10411_s10 }
 0x805   : > { %9149 = vmatmul.mubr.msk.f32.vlgmr.msra.gmra.mrb[70].mxu1 %vm550_vm1, %v6027_v19 }
 0x806   : > { %9541 = vmatpush3.bf16.xpose.msk.msra.mxu1 %vm10662_vm2, %v9536_v41  ;;  %9155 = vmatprep.mubr.msk.f32.mxu1 %vm550_vm1, %v6116_v24  ;;  %v6207_v13 = vpop.permute.xlu0 %6206 }
 0x807   : > { %9544 = vmatprep.subr.msk.bf16.mxu1 %vm10662_vm2, %v9542_v36  ;;  %9959 = vrot.lane.b32.xlu0 %v12527_v29, %s10410_s5 }
 0x80b   : > { %6390 = vrot.lane.b32.xlu0 %v12599_v37, %s10411_s10 }
 0x80d   : > { %9156 = vmatmul.mubr.msk.f32.vlgmr.msra.gmra.mrb[72].mxu1 %vm550_vm1, %v6118_v44 }
 0x80e   : > { %9547 = vmatpush3.bf16.xpose.msk.msra.mxu1 %vm10662_vm2, %v9542_v36  ;;  %9162 = vmatprep.mubr.msk.f32.mxu1 %vm550_vm1, %v6207_v13 }
 0x80f   : > { %9550 = vmatprep.subr.msk.bf16.mxu1 %vm10662_vm2, %v9548_v11  ;;  %6479 = vrot.lane.b32.xlu0 %v12600_v31, %s10411_s10 }
 0x813   : > { %6570 = vrot.lane.b32.xlu0 %v12601_v12, %s10411_s10 }
 0x815   : > { %9163 = vmatmul.mubr.msk.f32.vlgmr.msra.gmra.mrb[74].mxu1 %vm550_vm1, %v6209_v34 }
 0x816   : > { %9553 = vmatpush3.bf16.xpose.msk.msra.mxu1 %vm10662_vm2, %v9548_v11 }
 0x817   : > { %6661 = vrot.lane.b32.xlu0 %v12602_v0, %s10411_s10 }
 0x81b   : > { %9974 = vrot.lane.b32.xlu0 %v10749_v60, %s10412_s14  ;;  %v12603_v60 = vld [vmem:[#allocation21_spill] sm:$0xff] }
 0x81f   : > { %5053 = vadd.xlane.f32.xlu1 %v5052_v16 }
 0x823   : > { %5062 = vadd.xlane.f32.xlu1 %v5061_v38 }
 0x827   : > { %5059 = vadd.xlane.f32.xlu1 %v5058_v58 }
 0x82b   : > { %5068 = vadd.xlane.f32.xlu1 %v5067_v47 }
 0x82f   : > { %5065 = vadd.xlane.f32.xlu1 %v5064_v9 }
 0x840   : > { %9964 = vrot.lane.b32.xlu1 %v10794_v3, %s10410_s5  ;;  %s10413_s5 = smov [#allocation7]  }
 0x844   : > { %6481 = vrot.lane.b32.xlu1 %v12603_v60, %s10411_s10 }
 0x848   : > { %6572 = vrot.lane.b32.xlu1 %v12604_v45, %s10411_s10 }
 0x84c   : > { %6663 = vrot.lane.b32.xlu1 %v12605_v50, %s10411_s10  ;;  %s10328_s10 = sshll.u32 %s10413_s5, 4  ;;  %s10329_s10 = int_to_ptr.vmem [resolvable:$false] %s10328_s10 }
 0x84d   : > { %s10330_s12 = scalar_lea.vmem %s10329_s10, 4096  ;;  %p10331_p5 = scmp.lt.s32.totalorder %s12299_s8, %s10329_s10 }
 0x84e   : > { %v5027_v19 = vpop.xlane.xlu1 %5026  ;;  %p10332_p7 = scmp.lt.s32.totalorder %s10330_s12, %s10324_s26 }
 0x84f   : > { %v5024_v59 = vpop.xlane.xlu0 %5023  ;;  %v5767_v11 = vmax.f32 %v5027_v19, 1e-30 }
 0x850   : > { %9969 = vrot.lane.b32.xlu1 %v10756_v61, %s10412_s14  ;;  %v5766_v37 = vmax.f32 %v5024_v59, 1e-30  ;;  %p10333_p9 = por %p10332_p7, %p10331_p5 }
 0x852   : > { %10168 = vrcp.f32 %v5766_v37  ;;  %p10334_p3 = pnand %p10333_p9, %p10327_p10 }
 0x853   : > { %10170 = vrcp.f32 %v5767_v11 }
 0x854   : > { %9979 = vrot.lane.b32.xlu1 %v10766_v63, %s10412_s14 }
 0x856   : > { %v5033_v7 = vpop.xlane.xlu0 %5032 }
 0x857   : > { %v5769_v12 = vmax.f32 %v5033_v7, 1e-30 }
 0x858   : > { %9984 = vrot.lane.b32.xlu1 %v10776_v1, %s10412_s14 }
 0x85a   : > { %v5030_v33 = vpop.xlane.xlu0 %5029 }
 0x85b   : > { %v5768_v31 = vmax.f32 %v5030_v33, 1e-30 }
 0x85c   : > { %9989 = vrot.lane.b32.xlu1 %v10760_v62, %s10412_s14  ;;  %v10169_v0 = vpop.eup %10168 }
 0x85d   : > { %10172 = vrcp.f32 %v5768_v31  ;;  %v10171_v47 = vpop.eup %10170 }
 0x85e   : > { %v5039_v14 = vpop.xlane.xlu0 %5038  ;;  %10174 = vrcp.f32 %v5769_v12 }
 0x85f   : > { %v5036_v53 = vpop.xlane.xlu1 %5035  ;;  %v5771_v50 = vmax.f32 %v5039_v14, 1e-30 }
 0x860   : > { %9994 = vrot.lane.b32.xlu1 %v10783_v2, %s10412_s14  ;;  %v5770_v60 = vmax.f32 %v5036_v53, 1e-30 }
 0x862   : > { %10176 = vrcp.f32 %v5770_v60 }
 0x863   : > { %10178 = vrcp.f32 %v5771_v50 }
 0x866   : > { %v5045_v61 = vpop.xlane.xlu0 %5044 }
 0x867   : > { %v5042_v41 = vpop.xlane.xlu1 %5041  ;;  %v10173_v19 = vpop.eup %10172 }
 0x868   : > { %v10175_v53 = vpop.eup %10174 }
 0x86e   : > { %v12017_v63 = vpop.xlane.xlu0 %5050 }
 0x86f   : > { %v12015_v20 = vpop.xlane.xlu1 %5047 }
 0x873   : > { %v9955_v39 = vpop.permute.xlu1 %9954 }
 0x874   : > { %v9957_v1 = vunpack.i.h.bf16 %v9955_v39  ;;  %v9956_v24 = vunpack.i.l.bf16 %v9955_v39  ;;  %v5772_v39 = vmax.f32 %v5042_v41, 1e-30  ;;  %v5775_v41 = vmax.f32 %v12017_v63, 1e-30 }
 0x876   : > { %v9560_v40 = vpack.c.bf16 %v9957_v1, %v9956_v24  ;;  %v12019_v49 = vpop.xlane.xlu0 %5056  ;;  %v5773_v24 = vmax.f32 %v5045_v61, 1e-30  ;;  %10180 = vrcp.f32 %v5772_v39 }
 0x877   : > { %v6300_v44 = vpop.permute.xlu1 %6299 }
 0x878   : > { %9562 = vmatprep.subr.msk.bf16.mxu1 %vm10662_vm2, %v9560_v40  ;;  %10182 = vrcp.f32 %v5773_v24 }
 0x87a   : > { %v9950_v62 = vpop.permute.xlu0 %9949 }
 0x87b   : > { %v9952_v2 = vunpack.i.h.bf16 %v9950_v62  ;;  %v9951_v32 = vunpack.i.l.bf16 %v9950_v62  ;;  %v10177_v62 = vpop.eup %10176 }
 0x87d   : > { %v9554_v36 = vpack.c.bf16 %v9952_v2, %v9951_v32  ;;  %v10179_v32 = vpop.eup %10178 }
 0x87e   : > { %v6298_v46 = vpop.permute.xlu0 %6297 }
 0x87f   : > { %9169 = vmatprep.mubr.msk.f32.mxu1 %vm550_vm1, %v6298_v46  ;;  %9556 = vmatprep.subr.msk.bf16.mxu0 %vm10662_vm2, %v9554_v36  ;;  %v5774_v46 = vmax.f32 %v12015_v20, 1e-30 }
 0x880   : > { %9170 = vmatmul.mubr.msk.f32.vlgmr.msra.gmra.mrb[76].mxu1 %vm550_vm1, %v6300_v44  ;;  %v12044_v44 = vpop.permute.xlu1 %6388  ;;  %v10181_v11 = vpop.eup %10180 }
 0x881   : > { %9565 = vmatpush3.bf16.xpose.msk.msra.mxu1 %vm10662_vm2, %v9560_v40  ;;  %10184 = vrcp.f32 %v5774_v46 }
 0x882   : > { %v9960_v17 = vpop.permute.xlu0 %9959  ;;  %10186 = vrcp.f32 %v5775_v41  ;;  %v10183_v31 = vpop.eup %10182 }
 0x883   : > { %v9962_v16 = vunpack.i.h.bf16 %v9960_v17  ;;  %v9961_v38 = vunpack.i.l.bf16 %v9960_v17 }
 0x885   : > { %v12033_v59 = vpack.c.bf16 %v9962_v16, %v9961_v38  ;;  %v5777_v16 = vmax.f32 %v12019_v49, 1e-30 }
 0x886   : > { %v12029_v54 = vpop.permute.xlu0 %6390 }
 0x88a   : > { %v6480_v13 = vpop.permute.xlu0 %6479 }
 0x88b   : > { %9183 = vmatprep.mubr.msk.f32.mxu1 %vm550_vm1, %v6480_v13 }
 0x895   : > { %v9068_v34 = vpop.f32.mrb[60].mxu0 }
 0x896   : > { %v5148_v58 = vpop.f32.mrb[61].mxu0  ;;  %v5799_v45 = vmul.f32 %v10171_v47, %v9068_v34 }
 0x897   : > { %v5798_v9 = vmul.f32 %v10169_v0, %v5148_v58  ;;  %v10185_v58 = vpop.eup %10184 }
 0x899   : > { %9120 = vmatprep.mubr.msk.f32.mxu0 %vm550_vm1, %v5798_v9  ;;  %v10187_v9 = vpop.eup %10186 }
 0x89a   : > { %9121 = vmatmul.mubr.msk.f32.vlgmr.msra.gmra.mrb[44].mxu0 %vm550_vm1, %v5799_v45 }
 0x89b   : > { %9559 = vmatpush3.bf16.xpose.msk.msra.mxu0 %vm10662_vm2, %v9554_v36 }
 0x89c   : > { %9568 = vmatprep.subr.msk.bf16.mxu0 %vm10662_vm2, %v12033_v59 }
 0x89d   : > { %v9075_v7 = vpop.f32.mrb[62].mxu1 }
 0x89e   : > { %v5235_v33 = vpop.f32.mrb[63].mxu1  ;;  %v5801_v1 = vmul.f32 %v10175_v53, %v9075_v7 }
 0x89f   : > { %v5800_v14 = vmul.f32 %v10173_v19, %v5235_v33 }
 0x8a1   : > { %9123 = vmatprep.mubr.msk.f32.mxu0 %vm550_vm1, %v5800_v14 }
 0x8a2   : > { %9124 = vmatmul.mubr.msk.f32.gmra.mrb[46].mxu0 %vm550_vm1, %v5801_v1  ;;  %v6571_v1 = vpop.permute.xlu0 %6570 }
 0x8a5   : > { %v9082_v40 = vpop.f32.mrb[62].mxu0 }
 0x8a6   : > { %v5322_v2 = vpop.f32.mrb[63].mxu0  ;;  %v5803_v17 = vmul.f32 %v10179_v32, %v9082_v40 }
 0x8a7   : > { %v5802_v36 = vmul.f32 %v10177_v62, %v5322_v2 }
 0x8a9   : > { %9126 = vmatprep.mubr.msk.f32.mxu0 %vm550_vm1, %v5802_v36 }
 0x8aa   : > { %9127 = vmatmul.mubr.msk.f32.gmra.mrb[48].mxu0 %vm550_vm1, %v5803_v17 }
 0x8ac   : > { %v5054_v61 = vpop.xlane.xlu1 %5053 }
 0x8ad   : > { %v9089_v37 = vpop.f32.mrb[64].mxu1  ;;  %v5776_v34 = vmax.f32 %v5054_v61, 1e-30  ;;  %v6662_v61 = vpop.permute.xlu0 %6661 }
 0x8ae   : > { %v5409_v13 = vpop.f32.mrb[65].mxu1  ;;  %v5805_v0 = vmul.f32 %v10183_v31, %v9089_v37 }
 0x8af   : > { %v5804_v12 = vmul.f32 %v10181_v11, %v5409_v13  ;;  %10188 = vrcp.f32 %v5776_v34 }
 0x8b0   : > { %v5063_v20 = vpop.xlane.xlu1 %5062  ;;  %10190 = vrcp.f32 %v5777_v16 }
 0x8b1   : > { %9129 = vmatprep.mubr.msk.f32.mxu0 %vm550_vm1, %v5804_v12  ;;  %v5779_v53 = vmax.f32 %v5063_v20, 1e-30 }
 0x8b2   : > { %9130 = vmatmul.mubr.msk.f32.gmra.mrb[50].mxu0 %vm550_vm1, %v5805_v0 }
 0x8b4   : > { %v5060_v63 = vpop.xlane.xlu1 %5059 }
 0x8b5   : > { %v9096_v38 = vpop.f32.mrb[64].mxu0  ;;  %v5778_v49 = vmax.f32 %v5060_v63, 1e-30 }
 0x8b6   : > { %v5496_v47 = vpop.f32.mrb[65].mxu0  ;;  %v5807_v45 = vmul.f32 %v10187_v9, %v9096_v38 }
 0x8b7   : > { %v5806_v60 = vmul.f32 %v10185_v58, %v5496_v47  ;;  %10192 = vrcp.f32 %v5778_v49 }
 0x8b8   : > { %v5069_v50 = vpop.xlane.xlu1 %5068  ;;  %10194 = vrcp.f32 %v5779_v53 }
 0x8b9   : > { %9132 = vmatprep.mubr.msk.f32.mxu0 %vm550_vm1, %v5806_v60  ;;  %v10189_v33 = vpop.eup %10188  ;;  %v5781_v17 = vmax.f32 %v5069_v50, 1e-30 }
 0x8ba   : > { %9133 = vmatmul.mubr.msk.f32.gmra.mrb[52].mxu0 %vm550_vm1, %v5807_v45  ;;  %v10191_v39 = vpop.eup %10190 }
 0x8bc   : > { %v5066_v7 = vpop.xlane.xlu1 %5065 }
 0x8bd   : > { %v9103_v19 = vpop.f32.mrb[66].mxu1  ;;  %v5780_v36 = vmax.f32 %v5066_v7, 1e-30 }
 0x8be   : > { %v5583_v14 = vpop.f32.mrb[67].mxu1  ;;  %v5809_v40 = vmul.f32 %v10191_v39, %v9103_v19 }
 0x8bf   : > { %v5808_v24 = vmul.f32 %v10189_v33, %v5583_v14  ;;  %10196 = vrcp.f32 %v5780_v36 }
 0x8c0   : > { %v9965_v62 = vpop.permute.xlu1 %9964  ;;  %10198 = vrcp.f32 %v5781_v17 }
 0x8c1   : > { %v9967_v2 = vunpack.i.h.bf16 %v9965_v62  ;;  %v9966_v32 = vunpack.i.l.bf16 %v9965_v62  ;;  %9135 = vmatprep.mubr.msk.f32.mxu0 %vm550_vm1, %v5808_v24  ;;  %v10193_v13 = vpop.eup %10192  ;;  %v9975_v62 = vpop.permute.xlu0 %9974 }
 0x8c2   : > { %9136 = vmatmul.mubr.msk.f32.gmra.mrb[54].mxu0 %vm550_vm1, %v5809_v40  ;;  %v10195_v12 = vpop.eup %10194  ;;  %v9977_v36 = vunpack.i.h.bf16 %v9975_v62 }
 0x8c3   : > { %v9572_v46 = vpack.c.bf16 %v9967_v2, %v9966_v32 }
 0x8c4   : > { %v6482_v41 = vpop.permute.xlu1 %6481 }
 0x8c5   : > { %9184 = vmatmul.mubr.msk.f32.vlgmr.msra.gmra.mrb[78].mxu1 %vm550_vm1, %v6482_v41  ;;  %9574 = vmatprep.subr.msk.bf16.mxu1 %vm10662_vm2, %v9572_v46 }
 0x8c6   : > { %9577 = vmatpush3.bf16.xpose.msk.msra.mxu1 %vm10662_vm2, %v9572_v46  ;;  %9197 = vmatprep.mubr.msk.f32.mxu1 %vm550_vm1, %v6662_v61 }
 0x8c8   : > { %v6573_v37 = vpop.permute.xlu1 %6572 }
 0x8c9   : > { %v10197_v38 = vpop.eup %10196 }
 0x8ca   : > { %v9110_v11 = vpop.f32.mrb[66].mxu0  ;;  %v10199_v47 = vpop.eup %10198 }
 0x8cb   : > { %v5670_v31 = vpop.f32.mrb[67].mxu0  ;;  %v5811_v20 = vmul.f32 %v10195_v12, %v9110_v11 }
 0x8cc   : > { %v5810_v34 = vmul.f32 %v10193_v13, %v5670_v31  ;;  %v6664_v0 = vpop.permute.xlu1 %6663 }
 0x8cd   : > { %9198 = vmatmul.mubr.msk.f32.vlgmr.msra.gmra.mrb[80].mxu1 %vm550_vm1, %v6664_v0 }
 0x8ce   : > { %9138 = vmatprep.mubr.msk.f32.mxu0 %vm550_vm1, %v5810_v34 }
 0x8cf   : > { %9139 = vmatmul.mubr.msk.f32.gmra.mrb[56].mxu0 %vm550_vm1, %v5811_v20 }
 0x8d0   : > { %v9970_v16 = vpop.permute.xlu1 %9969  ;;  %v9117_v63 = vpop.f32.mrb[68].mxu1 }
 0x8d1   : > { %v5757_v58 = vpop.f32.mrb[69].mxu1  ;;  %v5813_v60 = vmul.f32 %v10199_v47, %v9117_v63  ;;  %v9972_v50 = vunpack.i.h.bf16 %v9970_v16  ;;  %v9971_v7 = vunpack.i.l.bf16 %v9970_v16  ;;  %v12606_v63 = vld [vmem:[#allocation39_spill] sm:$0xff] }
 0x8d2   : > { %v5812_v9 = vmul.f32 %v10197_v38, %v5757_v58 }
 0x8d3   : > { %v9578_v39 = vpack.c.bf16 %v9972_v50, %v9971_v7 }
 0x8d4   : > { %v9980_v45 = vpop.permute.xlu1 %9979  ;;  %9141 = vmatprep.mubr.msk.f32.mxu0 %vm550_vm1, %v5812_v9 }
 0x8d5   : > { %v9982_v49 = vunpack.i.h.bf16 %v9980_v45  ;;  %v9981_v19 = vunpack.i.l.bf16 %v9980_v45  ;;  %9142 = vmatmul.mubr.msk.f32.gmra.mrb[58].mxu0 %vm550_vm1, %v5813_v60 }
 0x8d6   : > { %9176 = vmatprep.mubr.msk.f32.mxu0 %vm550_vm1, %v12044_v44 }
 0x8d7   : > { %v9586_v33 = vpack.c.bf16 %v9982_v49, %v9981_v19 }
 0x8d8   : > { %v9150_v53 = vpop.f32.mrb[70].mxu1  ;;  %v12069_v14 = vpop.permute.xlu1 %9984 }
 0x8d9   : > { %v6112_v24 = vadd.f32 %v9150_v53, %v12577_v56  ;;  %v6106_v40 = vpop.f32.mrb[71].mxu1  ;;  %9177 = vmatmul.mubr.msk.f32.vlgmr.msra.gmra.mrb[68].mxu0 %vm550_vm1, %v12029_v54  ;;  %9587 = vmatprep.subr.bf16.mxu1 %v9586_v33  ;;  %v9976_v54 = vunpack.i.l.bf16 %v9975_v62 }
 0x8da   : > { %v6107_v2 = vadd.f32 %v6106_v40, %v12578_v35  ;;  %9571 = vmatpush3.bf16.xpose.msk.msra.mxu0 %vm10662_vm2, %v12033_v59  ;;  %9190 = vmatprep.mubr.msk.f32.mxu0 %vm550_vm1, %v6571_v1 }
 0x8db   : > { %9579 = vmatprep.subr.bf16.mxu0 %v9578_v39  ;;  %9589 = vmatpush3.bf16.msra.mxu1 %v9586_v33  ;;  %v6755_v44 = vsel %vm1257_vm3, %v6112_v24, -inf  ;;  %v9582_v30 = vpack.c.bf16 %v9977_v36, %v9976_v54 }
 0x8dc   : > { %6756 = vmax.xlane.f32.xlu1 %v6755_v44  ;;  %v9990_v56 = vpop.permute.xlu1 %9989  ;;  %v6752_v32 = vsel %vm1257_vm3, %v6107_v2, -inf  ;;  %v9987_v44 = vunpack.i.h.bf16 %v12069_v14 }
 0x8dd   : > { %v9992_v46 = vunpack.i.h.bf16 %v9990_v56  ;;  %v9991_v17 = vunpack.i.l.bf16 %v9990_v56  ;;  %6753 = vmax.xlane.f32.xlu0 %v6752_v32  ;;  %v9986_v56 = vunpack.i.l.bf16 %v12069_v14 }
 0x8df   : > { %v12081_v35 = vpack.c.bf16 %v9992_v46, %v9991_v17 }
 0x8e0   : > { %v9157_v41 = vpop.f32.mrb[72].mxu1  ;;  %v9995_v58 = vpop.permute.xlu1 %9994 }
 0x8e1   : > { %v6203_v59 = vadd.f32 %v9157_v41, %v12579_v18  ;;  %v6197_v1 = vpop.f32.mrb[73].mxu1  ;;  %9191 = vmatmul.mubr.msk.f32.vlgmr.msra.gmra.mrb[70].mxu0 %vm550_vm1, %v6573_v37  ;;  %9595 = vmatprep.subr.bf16.mxu1 %v12081_v35  ;;  %v9590_v41 = vpack.c.bf16 %v9987_v44, %v9986_v56  ;;  %v12614_v44 = vld [vmem:[#allocation41_spill] sm:$0xff] }
 0x8e2   : > { %9581 = vmatpush3.bf16.msra.mxu0 %v9578_v39  ;;  %v6198_v61 = vadd.f32 %v6197_v1, %v12580_v52  ;;  %v9997_v1 = vunpack.i.h.bf16 %v9995_v58 }
 0x8e3   : > { %9583 = vmatprep.subr.bf16.mxu0 %v9582_v30  ;;  %v6761_v11 = vsel %vm1257_vm3, %v6203_v59, -inf }
 0x8e4   : > { %6762 = vmax.xlane.f32.xlu0 %v6761_v11  ;;  %v6758_v13 = vsel %vm1257_vm3, %v6198_v61, -inf }
 0x8e8   : > { %v9164_v31 = vpop.f32.mrb[74].mxu1  ;;  %6759 = vmax.xlane.f32.xlu0 %v6758_v13 }
 0x8e9   : > { %v6294_v12 = vadd.f32 %v9164_v31, %v12581_v6  ;;  %v6288_v34 = vpop.f32.mrb[75].mxu1 }
 0x8ea   : > { %v6289_v18 = vadd.f32 %v6288_v34, %v12582_v55 }
 0x8eb   : > { %v6767_v37 = vsel %vm1257_vm3, %v6294_v12, -inf }
 0x8ec   : > { %6768 = vmax.xlane.f32.xlu0 %v6767_v37  ;;  %v6764_v0 = vsel %vm1257_vm3, %v6289_v18, -inf }
 0x8ed   : > { %6765 = vmax.xlane.f32.xlu1 %v6764_v0  ;;  %v12608_v0 = vld [vmem:[#allocation44_spill] sm:$0xff] }
 0x953   : > { %v9171_v52 = vpop.f32.mrb[76].mxu1 }
 0x954   : > { %v12094_v20 = vadd.f32 %v9171_v52, %v12583_v22  ;;  %v6379_v16 = vpop.f32.mrb[77].mxu1 }
 0x955   : > { %v12097_v38 = vadd.f32 %v6379_v16, %v12606_v63  ;;  %v12609_v63 = vld [vmem:[#allocation45_spill] sm:$0xff] }
 0x956   : > { %v6773_v6 = vsel %vm1257_vm3, %v12094_v20, -inf }
 0x957   : > { %6774 = vmax.xlane.f32.xlu0 %v6773_v6  ;;  %v6770_v55 = vsel %vm1257_vm3, %v12097_v38, -inf }
 0x958   : > { %6771 = vmax.xlane.f32.xlu1 %v6770_v55  ;;  %v12610_v55 = vld [vmem:[#allocation47_spill] sm:$0xff] }
 0x969   : > { %v6757_v47 = vpop.xlane.xlu1 %6756 }
 0x96a   : > { %v6801_v9 = vsub.f32 %v6112_v24, %v6757_v47  ;;  %v6754_v60 = vpop.xlane.xlu0 %6753 }
 0x96b   : > { %v6800_v45 = vsub.f32 %v6107_v2, %v6754_v60 }
 0x96c   : > { %v6818_v50 = vmul.f32 1.442695, %v6801_v9 }
 0x96d   : > { %v6816_v22 = vmul.f32 1.442695, %v6800_v45  ;;  %v12611_v45 = vld [vmem:[#allocation35_spill] sm:$0xff] }
 0x96e   : > { %10200 = vpow2.f32 %v6818_v50 }
 0x96f   : > { %10202 = vpow2.f32 %v6816_v22 }
 0x971   : > { %v6763_v7 = vpop.xlane.xlu0 %6762 }
 0x972   : > { %v6803_v49 = vsub.f32 %v6203_v59, %v6763_v7  ;;  %v12612_v7 = vld [vmem:[#allocation38_spill] sm:$0xff] }
 0x974   : > { %v6822_v19 = vmul.f32 1.442695, %v6803_v49 }
 0x975   : > { %v6760_v33 = vpop.xlane.xlu0 %6759 }
 0x976   : > { %v6802_v53 = vsub.f32 %v6198_v61, %v6760_v33  ;;  %10204 = vpow2.f32 %v6822_v19  ;;  %v9996_v61 = vunpack.i.l.bf16 %v9995_v58 }
 0x978   : > { %v10201_v39 = vpop.eup %10200  ;;  %v6820_v40 = vmul.f32 1.442695, %v6802_v53  ;;  %v12120_v31 = vpack.c.bf16 %v9997_v1, %v9996_v61 }
 0x979   : > { %v10203_v62 = vpop.eup %10202  ;;  %v6769_v24 = vpop.xlane.xlu0 %6768  ;;  %v12109_v46 = vmul.f32 %v10201_v39, %v12593_v57  ;;  %v12613_v39 = vld [vmem:[#allocation40_spill] sm:$0xff] }
 0x97a   : > { %10206 = vpow2.f32 %v6820_v40  ;;  %v6805_v2 = vsub.f32 %v6294_v12, %v6769_v24  ;;  %v6766_v32 = vpop.xlane.xlu1 %6765  ;;  %v12106_v36 = vmul.f32 %v10203_v62, %v12594_v15 }
 0x97b   : > { %v6804_v54 = vsub.f32 %v6289_v18, %v6766_v32 }
 0x97c   : > { %v6826_v17 = vmul.f32 1.442695, %v6805_v2  ;;  %9204 = vmatprep.mubr.msk.f32.mxu0 %vm1257_vm3, %v12106_v36 }
 0x97d   : > { %v6824_v59 = vmul.f32 1.442695, %v6804_v54  ;;  %9205 = vmatmul.mubr.msk.f32.vlgmr.msra.gmra.mrb[72].mxu0 %vm1257_vm3, %v12109_v46 }
 0x97e   : > { %10208 = vpow2.f32 %v6826_v17  ;;  %9585 = vmatpush3.bf16.msra.mxu0 %v9582_v30 }
 0x97f   : > { %10210 = vpow2.f32 %v6824_v59  ;;  %9591 = vmatprep.subr.bf16.mxu0 %v9590_v41 }
 0x980   : > { %v10205_v14 = vpop.eup %10204 }
 0x981   : > { %v12117_v11 = vmul.f32 %v10205_v14, %v10858_v8 }
 0x983   : > { %v6873_v61 = vsel %vm1257_vm3, %v12117_v11, 0.0 }
 0x984   : > { %v10207_v15 = vpop.eup %10206 }
 0x985   : > { %v6850_v57 = vmul.f32 %v10207_v15, %v10862_v10  ;;  %v12607_v10 = vld [vmem:[#allocation42_spill] sm:$0xff]  ;;  %v6864_v15 = vsel %vm1257_vm3, %v12106_v36, 0.0 }
 0x987   : > { %9211 = vmatprep.mubr.msk.f32.mxu0 %vm1257_vm3, %v6850_v57 }
 0x988   : > { %v10209_v13 = vpop.eup %10208  ;;  %9212 = vmatmul.mubr.msk.f32.vlgmr.msra.gmra.mrb[74].mxu0 %vm1257_vm3, %v12117_v11 }
 0x989   : > { %v10211_v30 = vpop.eup %10210  ;;  %9593 = vmatpush3.bf16.msra.mxu0 %v9590_v41  ;;  %v12127_v34 = vmul.f32 %v10209_v13, %v10879_v21 }
 0x98a   : > { %9599 = vmatprep.subr.bf16.mxu0 %v12120_v31  ;;  %v6852_v12 = vmul.f32 %v10211_v30, %v10883_v23 }
 0x98c   : > { %9218 = vmatprep.mubr.msk.f32.mxu1 %vm1257_vm3, %v6852_v12 }
 0x98d   : > { %9219 = vmatmul.mubr.msk.f32.vlgmr.msra.gmra.mrb[82].mxu1 %vm1257_vm3, %v12127_v34 }
 0x98e   : > { %9597 = vmatpush3.bf16.msra.mxu1 %v12081_v35 }
 0x998   : > { %v9185_v8 = vpop.f32.mrb[78].mxu1 }
 0x999   : > { %v12134_v18 = vadd.f32 %v9185_v8, %v12607_v10  ;;  %v6561_v37 = vpop.f32.mrb[79].mxu1 }
 0x99a   : > { %v12137_v52 = vadd.f32 %v6561_v37, %v12608_v0 }
 0x99b   : > { %v6785_v23 = vsel %vm1257_vm3, %v12134_v18, -inf }
 0x99c   : > { %6786 = vmax.xlane.f32.xlu0 %v6785_v23  ;;  %v6782_v21 = vsel %vm1257_vm3, %v12137_v52, -inf }
 0x99d   : > { %6783 = vmax.xlane.f32.xlu1 %v6782_v21 }
 0x9a0   : > { %v9199_v16 = vpop.f32.mrb[80].mxu1 }
 0x9a1   : > { %v12144_v6 = vadd.f32 %v9199_v16, %v12609_v63  ;;  %v6743_v35 = vpop.f32.mrb[81].mxu1 }
 0x9a2   : > { %v12147_v58 = vadd.f32 %v6743_v35, %v12610_v55 }
 0x9a3   : > { %v6797_v47 = vsel %vm1257_vm3, %v12144_v6, -inf }
 0x9a4   : > { %6798 = vmax.xlane.f32.xlu0 %v6797_v47  ;;  %v6794_v9 = vsel %vm1257_vm3, %v12147_v58, -inf }
 0x9a8   : > { %6795 = vmax.xlane.f32.xlu0 %v6794_v9 }
 0x9ac   : > { %v9178_v60 = vpop.f32.mrb[68].mxu0 }
 0x9ad   : > { %v12154_v50 = vadd.f32 %v9178_v60, %v12611_v45  ;;  %v6470_v22 = vpop.f32.mrb[69].mxu0 }
 0x9ae   : > { %v12157_v49 = vadd.f32 %v6470_v22, %v12612_v7 }
 0x9af   : > { %v6779_v19 = vsel %vm1257_vm3, %v12154_v50, -inf }
 0x9b0   : > { %6780 = vmax.xlane.f32.xlu0 %v6779_v19  ;;  %v6776_v33 = vsel %vm1257_vm3, %v12157_v49, -inf }
 0x9b1   : > { %6777 = vmax.xlane.f32.xlu1 %v6776_v33 }
 0x9b4   : > { %v9192_v53 = vpop.f32.mrb[70].mxu0 }
 0x9b5   : > { %v12164_v40 = vadd.f32 %v9192_v53, %v12613_v39  ;;  %v6652_v62 = vpop.f32.mrb[71].mxu0 }
 0x9b6   : > { %v12167_v56 = vadd.f32 %v6652_v62, %v12614_v44 }
 0x9b7   : > { %v6791_v24 = vsel %vm1257_vm3, %v12164_v40, -inf }
 0x9b8   : > { %6792 = vmax.xlane.f32.xlu0 %v6791_v24  ;;  %v6788_v2 = vsel %vm1257_vm3, %v12167_v56, -inf }
 0x9b9   : > { %6789 = vmax.xlane.f32.xlu1 %v6788_v2 }
 0x9ca   : > { %10004 = vrot.lane.b32.xlu1 %v10794_v3, %s10412_s14  ;;  %v6867_v3 = vsel %vm1257_vm3, %v12109_v46, 0.0 }
 0x9ce   : > { %9999 = vrot.lane.b32.xlu0 %v12527_v29, %s10412_s14  ;;  %v6870_v29 = vsel %vm1257_vm3, %v6850_v57, 0.0  ;;  %v6879_v57 = vsel %vm1257_vm3, %v12127_v34, 0.0 }
 0x9e4   : > { %v6775_v32 = vpop.xlane.xlu0 %6774 }
 0x9e5   : > { %v6807_v54 = vsub.f32 %v12094_v20, %v6775_v32  ;;  %v6772_v17 = vpop.xlane.xlu1 %6771  ;;  %v6876_v20 = vsel %vm1257_vm3, %v6852_v12, 0.0 }
 0x9e6   : > { %v6806_v41 = vsub.f32 %v12097_v38, %v6772_v17 }
 0x9e7   : > { %v6830_v59 = vmul.f32 1.442695, %v6807_v54 }
 0x9e8   : > { %v6828_v14 = vmul.f32 1.442695, %v6806_v41  ;;  %v7656_v41 = vld [vmem:[%s12350_s3 + $0x18] sm:$0xff] }
 0x9e9   : > { %10212 = vpow2.f32 %v6830_v59 }
 0x9ea   : > { %10214 = vpow2.f32 %v6828_v14 }
 0x9ed   : > { %6865 = vadd.xlane.f32.xlu0 %v6864_v15 }
 0x9ee   : > { %6868 = vadd.xlane.f32.xlu1 %v6867_v3 }
 0x9f1   : > { %6871 = vadd.xlane.f32.xlu0 %v6870_v29 }
 0x9f2   : > { %6877 = vadd.xlane.f32.xlu1 %v6876_v20 }
 0x9f3   : > { %v10213_v1 = vpop.eup %10212 }
 0x9f4   : > { %v10215_v38 = vpop.eup %10214  ;;  %v6855_v36 = vmul.f32 %v10213_v1, %v10903_v48 }
 0x9f5   : > { %6874 = vadd.xlane.f32.xlu0 %v6873_v61  ;;  %v6854_v13 = vmul.f32 %v10215_v38, %v10910_v5 }
 0x9f6   : > { %v6885_v11 = vsel %vm1257_vm3, %v6855_v36, 0.0 }
 0x9f7   : > { %9225 = vmatprep.mubr.msk.f32.mxu0 %vm1257_vm3, %v6854_v13  ;;  %v6882_v46 = vsel %vm1257_vm3, %v6854_v13, 0.0 }
 0x9f8   : > { %9226 = vmatmul.mubr.msk.f32.vlgmr.msra.gmra.mrb[76].mxu0 %vm1257_vm3, %v6855_v36  ;;  %6883 = vadd.xlane.f32.xlu1 %v6882_v46 }
 0x9f9   : > { %9601 = vmatpush3.bf16.msra.mxu0 %v12120_v31  ;;  %6880 = vadd.xlane.f32.xlu0 %v6879_v57 }
 0x9fd   : > { %6886 = vadd.xlane.f32.xlu0 %v6885_v11 }
 0xa29   : > { %v6787_v30 = vpop.xlane.xlu0 %6786 }
 0xa2a   : > { %v6811_v5 = vsub.f32 %v12134_v18, %v6787_v30  ;;  %v6784_v48 = vpop.xlane.xlu1 %6783 }
 0xa2b   : > { %v6810_v12 = vsub.f32 %v12137_v52, %v6784_v48 }
 0xa2c   : > { %v6838_v8 = vmul.f32 1.442695, %v6811_v5 }
 0xa2d   : > { %v6836_v10 = vmul.f32 1.442695, %v6810_v12 }
 0xa2e   : > { %10216 = vpow2.f32 %v6838_v8 }
 0xa2f   : > { %10218 = vpow2.f32 %v6836_v10 }
 0xa31   : > { %v6799_v37 = vpop.xlane.xlu0 %6798 }
 0xa32   : > { %v6815_v18 = vsub.f32 %v12144_v6, %v6799_v37 }
 0xa34   : > { %v6846_v47 = vmul.f32 1.442695, %v6815_v18 }
 0xa35   : > { %v6796_v0 = vpop.xlane.xlu0 %6795 }
 0xa36   : > { %v6814_v34 = vsub.f32 %v12147_v58, %v6796_v0 }
 0xa38   : > { %v10217_v23 = vpop.eup %10216  ;;  %v6844_v31 = vmul.f32 1.442695, %v6814_v34 }
 0xa39   : > { %v10219_v21 = vpop.eup %10218  ;;  %v6859_v63 = vmul.f32 %v10217_v23, %v12491_v4 }
 0xa3a   : > { %10220 = vpow2.f32 %v6844_v31  ;;  %v6858_v16 = vmul.f32 %v10219_v21, %v10990_v43 }
 0xa3c   : > { %9239 = vmatprep.mubr.msk.f32.mxu0 %vm1257_vm3, %v6858_v16  ;;  %v6894_v29 = vsel %vm1257_vm3, %v6858_v16, 0.0 }
 0xa3d   : > { %9240 = vmatmul.mubr.msk.f32.vlgmr.msra.gmra.mrb[78].mxu0 %vm1257_vm3, %v6859_v63  ;;  %v6781_v52 = vpop.xlane.xlu0 %6780 }
 0xa3e   : > { %v6809_v35 = vsub.f32 %v12154_v50, %v6781_v52  ;;  %v6778_v55 = vpop.xlane.xlu1 %6777 }
 0xa3f   : > { %v6808_v58 = vsub.f32 %v12157_v49, %v6778_v55 }
 0xa40   : > { %v6834_v9 = vmul.f32 1.442695, %v6809_v35 }
 0xa41   : > { %v6832_v60 = vmul.f32 1.442695, %v6808_v58 }
 0xa42   : > { %10222 = vpow2.f32 %v6834_v9 }
 0xa43   : > { %10224 = vpow2.f32 %v6832_v60 }
 0xa44   : > { %v10221_v43 = vpop.eup %10220  ;;  %10226 = vpow2.f32 %v6846_v47 }
 0xa45   : > { %v6793_v4 = vpop.xlane.xlu0 %6792  ;;  %v6862_v6 = vmul.f32 %v10221_v43, %v12595_v27 }
 0xa46   : > { %v6813_v45 = vsub.f32 %v12164_v40, %v6793_v4  ;;  %v6790_v22 = vpop.xlane.xlu1 %6789 }
 0xa47   : > { %v6812_v7 = vsub.f32 %v12167_v56, %v6790_v22  ;;  %9253 = vmatprep.mubr.msk.f32.mxu0 %vm1257_vm3, %v6862_v6  ;;  %v6906_v57 = vsel %vm1257_vm3, %v6862_v6, 0.0 }
 0xa48   : > { %v6842_v50 = vmul.f32 1.442695, %v6813_v45 }
 0xa49   : > { %v6840_v19 = vmul.f32 1.442695, %v6812_v7  ;;  %v10000_v49 = vpop.permute.xlu0 %9999 }
 0xa4a   : > { %10228 = vpow2.f32 %v6842_v50  ;;  %v10002_v33 = vunpack.i.h.bf16 %v10000_v49  ;;  %v10001_v53 = vunpack.i.l.bf16 %v10000_v49  ;;  %v10005_v39 = vpop.permute.xlu1 %10004 }
 0xa4b   : > { %10230 = vpow2.f32 %v6840_v19  ;;  %v10007_v62 = vunpack.i.h.bf16 %v10005_v39  ;;  %v10006_v44 = vunpack.i.l.bf16 %v10005_v39 }
 0xa4c   : > { %v10223_v24 = vpop.eup %10222  ;;  %v9602_v2 = vpack.c.bf16 %v10002_v33, %v10001_v53 }
 0xa4d   : > { %v10225_v27 = vpop.eup %10224  ;;  %v9606_v32 = vpack.c.bf16 %v10007_v62, %v10006_v44  ;;  %v6857_v40 = vmul.f32 %v10223_v24, %v10897_v42 }
 0xa4e   : > { %v10227_v54 = vpop.eup %10226  ;;  %9603 = vmatprep.subr.bf16.mxu1 %v9602_v2  ;;  %v6856_v56 = vmul.f32 %v10225_v27, %v10905_v51  ;;  %v6897_v51 = vsel %vm1257_vm3, %v6859_v63, 0.0 }
 0xa4f   : > { %9607 = vmatprep.subr.bf16.mxu0 %v9606_v32  ;;  %v6891_v17 = vsel %vm1257_vm3, %v6857_v40, 0.0  ;;  %v6863_v42 = vmul.f32 %v10227_v54, %v12597_v26 }
 0xa50   : > { %v9206_v59 = vpop.f32.mrb[72].mxu0  ;;  %9609 = vmatpush3.bf16.msra.mxu0 %v9606_v32  ;;  %6892 = vadd.xlane.f32.xlu0 %v6891_v17  ;;  %v6888_v14 = vsel %vm1257_vm3, %v6856_v56, 0.0 }
 0xa51   : > { %v6990_v15 = vpop.f32.mrb[73].mxu0  ;;  %9232 = vmatprep.mubr.msk.f32.mxu1 %vm1257_vm3, %v6856_v56  ;;  %6889 = vadd.xlane.f32.xlu1 %v6888_v14  ;;  %v6909_v36 = vsel %vm1257_vm3, %v6863_v42, 0.0 }
 0xa52   : > { %9233 = vmatmul.mubr.msk.f32.vlgmr.msra.gmra.mrb[84].mxu1 %vm1257_vm3, %v6857_v40  ;;  %9256 = vmatprep.subr.mxu0 %v7656_v41 }
 0xa53   : > { %9605 = vmatpush3.bf16.msra.mxu1 %v9602_v2  ;;  %9254 = vmatmul.mubr.msk.f32.vlgmr.msra.gmra.mrb[80].mxu0 %vm1257_vm3, %v6863_v42 }
 0xa54   : > { %v10229_v3 = vpop.eup %10228  ;;  %6898 = vadd.xlane.f32.xlu0 %v6897_v51  ;;  %9257 = vmatpush3.msra.mxu0 %v7656_v41 }
 0xa55   : > { %v10231_v20 = vpop.eup %10230  ;;  %6895 = vadd.xlane.f32.xlu1 %v6894_v29  ;;  %v6861_v1 = vmul.f32 %v10229_v3, %v10918_v25 }
 0xa56   : > { %v6860_v38 = vmul.f32 %v10231_v20, %v10920_v28 }
 0xa57   : > { %v6903_v26 = vsel %vm1257_vm3, %v6861_v1, 0.0 }
 0xa58   : > { %9246 = vmatprep.mubr.msk.f32.mxu1 %vm1257_vm3, %v6860_v38  ;;  %6904 = vadd.xlane.f32.xlu0 %v6903_v26  ;;  %v6900_v61 = vsel %vm1257_vm3, %v6860_v38, 0.0 }
 0xa59   : > { %9247 = vmatmul.mubr.msk.f32.vlgmr.msra.gmra.mrb[86].mxu1 %vm1257_vm3, %v6861_v1  ;;  %6901 = vadd.xlane.f32.xlu1 %v6900_v61 }
 0xa5b   : > { %v9213_v13 = vpop.f32.mrb[74].mxu0 }
 0xa5c   : > { %v7077_v46 = vpop.f32.mrb[75].mxu0  ;;  %6910 = vadd.xlane.f32.xlu0 %v6909_v36 }
 0xa5d   : > { %6907 = vadd.xlane.f32.xlu1 %v6906_v57 }
 0xa60   : > { %v9220_v25 = vpop.f32.mrb[82].mxu1 }
 0xa61   : > { %v7164_v28 = vpop.f32.mrb[83].mxu1 }
 0xa7a   : > { %v6866_v11 = vpop.xlane.xlu0 %6865 }
 0xa7b   : > { %v7608_v30 = vmax.f32 %v6866_v11, 1e-30  ;;  %v6869_v5 = vpop.xlane.xlu1 %6868 }
 0xa7c   : > { %v7609_v48 = vmax.f32 %v6869_v5, 1e-30 }
 0xa7d   : > { %10232 = vrcp.f32 %v7608_v30 }
 0xa7e   : > { %10234 = vrcp.f32 %v7609_v48  ;;  %v6872_v12 = vpop.xlane.xlu0 %6871 }
 0xa7f   : > { %v7610_v8 = vmax.f32 %v6872_v12, 1e-30  ;;  %v6878_v10 = vpop.xlane.xlu1 %6877 }
 0xa80   : > { %v7612_v37 = vmax.f32 %v6878_v10, 1e-30 }
 0xa81   : > { %10236 = vrcp.f32 %v7610_v8 }
 0xa82   : > { %v6875_v0 = vpop.xlane.xlu0 %6874  ;;  %10238 = vrcp.f32 %v7612_v37 }
 0xa83   : > { %v7611_v34 = vmax.f32 %v6875_v0, 1e-30 }
 0xa85   : > { %10240 = vrcp.f32 %v7611_v34  ;;  %v6884_v4 = vpop.xlane.xlu1 %6883 }
 0xa86   : > { %v6881_v23 = vpop.xlane.xlu0 %6880  ;;  %v7614_v45 = vmax.f32 %v6884_v4, 1e-30  ;;  %v12615_v4 = vld [vmem:[#allocation26_spill] sm:$0xff] }
 0xa87   : > { %v10233_v31 = vpop.eup %10232  ;;  %v7613_v21 = vmax.f32 %v6881_v23, 1e-30  ;;  %v8302_v23 = vld [vmem:[%s12350_s3 + $0x20] ss:$0 sm:$0xff] }
 0xa88   : > { %v10235_v16 = vpop.eup %10234  ;;  %v7640_v63 = vmul.f32 %v10233_v31, %v6990_v15 }
 0xa89   : > { %10242 = vrcp.f32 %v7613_v21  ;;  %v7641_v18 = vmul.f32 %v10235_v16, %v9206_v59 }
 0xa8a   : > { %9258 = vmatprep.mubr.msk.f32.mxu0 %vm550_vm1, %v7640_v63  ;;  %v6887_v6 = vpop.xlane.xlu0 %6886  ;;  %10244 = vrcp.f32 %v7614_v45 }
 0xa8b   : > { %v10237_v52 = vpop.eup %10236  ;;  %9259 = vmatmul.mubr.msk.f32.vlgmr.msra.gmra.mrb[44].mxu0 %vm550_vm1, %v7641_v18  ;;  %v7615_v22 = vmax.f32 %v6887_v6, 1e-30 }
 0xa8c   : > { %v7642_v35 = vmul.f32 %v10237_v52, %v7077_v46  ;;  %v10239_v55 = vpop.eup %10238 }
 0xa8d   : > { %v7644_v9 = vmul.f32 %v10239_v55, %v7164_v28  ;;  %10246 = vrcp.f32 %v7615_v22  ;;  %v12616_v22 = vld [vmem:[#allocation14_spill] sm:$0xff] }
 0xa8e   : > { %9261 = vmatprep.mubr.msk.f32.mxu0 %vm550_vm1, %v7642_v35 }
 0xa8f   : > { %v10241_v58 = vpop.eup %10240 }
 0xa90   : > { %v7643_v47 = vmul.f32 %v10241_v58, %v9213_v13 }
 0xa92   : > { %9262 = vmatmul.mubr.msk.f32.gmra.mrb[46].mxu0 %vm550_vm1, %v7643_v47 }
 0xa93   : > { %v10243_v60 = vpop.eup %10242  ;;  %9264 = vmatprep.mubr.msk.f32.mxu0 %vm550_vm1, %v7644_v9 }
 0xa94   : > { %v7645_v43 = vmul.f32 %v10243_v60, %v9220_v25  ;;  %v10245_v50 = vpop.eup %10244 }
 0xa96   : > { %9265 = vmatmul.mubr.msk.f32.gmra.mrb[48].mxu0 %vm550_vm1, %v7645_v43 }
 0xa97   : > { %v10247_v49 = vpop.eup %10246 }
 0xacb   : > { %v9227_v7 = vpop.f32.mrb[76].mxu0 }
 0xacc   : > { %v7251_v19 = vpop.f32.mrb[77].mxu0  ;;  %v7647_v53 = vmul.f32 %v10247_v49, %v9227_v7 }
 0xacd   : > { %v7646_v33 = vmul.f32 %v10245_v50, %v7251_v19 }
 0xacf   : > { %9267 = vmatprep.mubr.msk.f32.mxu0 %vm550_vm1, %v7646_v33  ;;  %v12617_v33 = vld [vmem:[#allocation12_spill] sm:$0xff] }
 0xad0   : > { %9268 = vmatmul.mubr.msk.f32.gmra.mrb[50].mxu0 %vm550_vm1, %v7647_v53 }
 0xadd   : > { %v6893_v62 = vpop.xlane.xlu0 %6892 }
 0xade   : > { %v6890_v39 = vpop.xlane.xlu1 %6889  ;;  %v7617_v40 = vmax.f32 %v6893_v62, 1e-30  ;;  %v12618_v62 = vld [vmem:[#allocation11_spill] sm:$0xff] }
 0xadf   : > { %v7616_v32 = vmax.f32 %v6890_v39, 1e-30 }
 0xae1   : > { %v6899_v27 = vpop.xlane.xlu0 %6898  ;;  %10248 = vrcp.f32 %v7616_v32  ;;  %v12619_v32 = vld [vmem:[#allocation15_spill] sm:$0xff] }
 0xae2   : > { %v6896_v2 = vpop.xlane.xlu1 %6895  ;;  %10250 = vrcp.f32 %v7617_v40  ;;  %v7619_v41 = vmax.f32 %v6899_v27, 1e-30 }
 0xae3   : > { %v7618_v56 = vmax.f32 %v6896_v2, 1e-30 }
 0xae5   : > { %v6905_v17 = vpop.xlane.xlu0 %6904  ;;  %10252 = vrcp.f32 %v7618_v56  ;;  %v12620_v56 = vld [vmem:[#allocation16_spill] sm:$0xff] }
 0xae6   : > { %v6902_v54 = vpop.xlane.xlu1 %6901  ;;  %10254 = vrcp.f32 %v7619_v41  ;;  %v7621_v15 = vmax.f32 %v6905_v17, 1e-30 }
 0xae7   : > { %v7620_v59 = vmax.f32 %v6902_v54, 1e-30 }
 0xae9   : > { %v6911_v42 = vpop.xlane.xlu0 %6910  ;;  %10256 = vrcp.f32 %v7620_v59 }
 0xaea   : > { %v6908_v14 = vpop.xlane.xlu1 %6907  ;;  %10258 = vrcp.f32 %v7621_v15  ;;  %v7623_v3 = vmax.f32 %v6911_v42, 1e-30  ;;  %v12621_v15 = vld [vmem:[#allocation54_spill] sm:$0xff] }
 0xaeb   : > { %v7622_v51 = vmax.f32 %v6908_v14, 1e-30  ;;  %v10249_v20 = vpop.eup %10248 }
 0xaec   : > { %v10251_v26 = vpop.eup %10250 }
 0xaed   : > { %10260 = vrcp.f32 %v7622_v51 }
 0xaee   : > { %10262 = vrcp.f32 %v7623_v3  ;;  %v12622_v3 = vld [vmem:[#allocation13_spill] sm:$0xff] }
 0xaef   : > { %v10253_v36 = vpop.eup %10252 }
 0xaf0   : > { %v10255_v25 = vpop.eup %10254 }
 0xaf3   : > { %v10257_v30 = vpop.eup %10256 }
 0xaf4   : > { %v10259_v12 = vpop.eup %10258 }
 0xaf7   : > { %v10261_v8 = vpop.eup %10260 }
 0xaf8   : > { %v10263_v0 = vpop.eup %10262 }
 0xb10   : > { %v9241_v44 = vpop.f32.mrb[78].mxu0 }
 0xb11   : > { %v7425_v24 = vpop.f32.mrb[79].mxu0  ;;  %v7651_v28 = vmul.f32 %v10255_v25, %v9241_v44 }
 0xb12   : > { %v7650_v57 = vmul.f32 %v10253_v36, %v7425_v24  ;;  %v12624_v36 = vld [vmem:[#allocation48_spill] sm:$0xff] }
 0xb25   : > { %v9234_v29 = vpop.f32.mrb[84].mxu1 }
 0xb26   : > { %v7338_v1 = vpop.f32.mrb[85].mxu1  ;;  %v9255_v38 = vpop.f32.mrb[80].mxu0  ;;  %v7649_v46 = vmul.f32 %v10251_v26, %v9234_v29  ;;  %v12623_v26 = vld [vmem:[#allocation56_spill] sm:$0xff] }
 0xb27   : > { %v7648_v61 = vmul.f32 %v10249_v20, %v7338_v1  ;;  %v7599_v13 = vpop.f32.mrb[81].mxu0  ;;  %v7655_v34 = vmul.f32 %v10263_v0, %v9255_v38 }
 0xb28   : > { %v7654_v37 = vmul.f32 %v10261_v8, %v7599_v13 }
 0xb29   : > { %9270 = vmatprep.mubr.msk.f32.mxu0 %vm550_vm1, %v7648_v61 }
 0xb2a   : > { %9271 = vmatmul.mubr.msk.f32.gmra.mrb[52].mxu0 %vm550_vm1, %v7649_v46 }
 0xb2b   : > { %9273 = vmatprep.mubr.msk.f32.mxu0 %vm550_vm1, %v7650_v57 }
 0xb2c   : > { %v9248_v11 = vpop.f32.mrb[86].mxu1 }
 0xb2d   : > { %v7512_v5 = vpop.f32.mrb[87].mxu1  ;;  %v7653_v10 = vmul.f32 %v10259_v12, %v9248_v11 }
 0xb2e   : > { %v7652_v48 = vmul.f32 %v10257_v30, %v7512_v5  ;;  %9274 = vmatmul.mubr.msk.f32.gmra.mrb[54].mxu0 %vm550_vm1, %v7651_v28 }
 0xb30   : > { %9276 = vmatprep.mubr.msk.f32.mxu0 %vm550_vm1, %v7652_v48 }
 0xb32   : > { %9277 = vmatmul.mubr.msk.f32.gmra.mrb[56].mxu0 %vm550_vm1, %v7653_v10 }
 0xb33   : > { %9279 = vmatprep.mubr.msk.f32.mxu0 %vm550_vm1, %v7654_v37 }
 0xb36   : > { %9280 = vmatmul.mubr.msk.f32.gmra.mrb[58].mxu0 %vm550_vm1, %v7655_v34 }
 0xb5e   : > { %v9260_v31 = vpop.f32.mrb[44].mxu0 }
 0xb5f   : > { %v7872_v21 = vadd.f32 %v9260_v31, %v8302_v23  ;;  %v7771_v16 = vpop.f32.mrb[45].mxu0 }
 0xb60   : > { %v7871_v63 = vadd.f32 %v8302_v23, %v7771_v16 }
 0xb61   : > { %7888 = vst.msk [vmem:[%s12252_s6 + $0x8] sm:$0xff] %vm318_vm0, %v7872_v21 }
 0xb62   : > { %7887 = vst.msk [vmem:[%s12252_s6] sm:$0xff] %vm318_vm0, %v7871_v63 }
 0xb65   : > { %v9263_v18 = vpop.f32.mrb[46].mxu0 }
 0xb66   : > { %v7874_v52 = vadd.f32 %v9263_v18, %v8302_v23  ;;  %v7781_v35 = vpop.f32.mrb[47].mxu0 }
 0xb67   : > { %v7873_v55 = vadd.f32 %v8302_v23, %v7781_v35 }
 0xb68   : > { %7890 = vst.msk [vmem:[%s12252_s6 + $0x18] sm:$0xff] %vm318_vm0, %v7874_v52 }
 0xb69   : > { %7889 = vst.msk [vmem:[%s12252_s6 + $0x10] sm:$0xff] %vm318_vm0, %v7873_v55  ;;  %v9266_v58 = vpop.f32.mrb[48].mxu0 }
 0xb6a   : > { %v7876_v47 = vadd.f32 %v9266_v58, %v8302_v23  ;;  %v7791_v9 = vpop.f32.mrb[49].mxu0 }
 0xb6b   : > { %v7875_v60 = vadd.f32 %v8302_v23, %v7791_v9 }
 0xb6c   : > { %7892 = vst.msk [vmem:[%s12252_s6 + $0x28] sm:$0xff] %vm318_vm0, %v7876_v47 }
 0xb6d   : > { %7891 = vst.msk [vmem:[%s12252_s6 + $0x20] sm:$0xff] %vm318_vm0, %v7875_v60 }
 0xba3   : > { %v9269_v43 = vpop.f32.mrb[50].mxu0 }
 0xba4   : > { %v9612_v6 = vadd.f32 %v9269_v43, %v12615_v4  ;;  %v7801_v45 = vpop.f32.mrb[51].mxu0 }
 0xba5   : > { %v9613_v7 = vadd.f32 %v7801_v45, %v12616_v22 }
 0xba6   : > { %v7878_v50 = vadd.f32 %v9612_v6, %v8302_v23 }
 0xba7   : > { %v7877_v19 = vadd.f32 %v9613_v7, %v8302_v23 }
 0xba8   : > { %7894 = vst.msk [vmem:[%s12252_s6 + $0x38] sm:$0xff] %vm318_vm0, %v7878_v50 }
 0xba9   : > { %7893 = vst.msk [vmem:[%s12252_s6 + $0x30] sm:$0xff] %vm318_vm0, %v7877_v19 }
 0xbfd   : > { %v9272_v49 = vpop.f32.mrb[52].mxu0 }
 0xbfe   : > { %v9614_v53 = vadd.f32 %v9272_v49, %v12617_v33  ;;  %v7811_v39 = vpop.f32.mrb[53].mxu0 }
 0xbff   : > { %v9615_v44 = vadd.f32 %v7811_v39, %v12618_v62 }
 0xc00   : > { %v7880_v24 = vadd.f32 %v9614_v53, %v8302_v23 }
 0xc01   : > { %v7879_v2 = vadd.f32 %v9615_v44, %v8302_v23  ;;  %v9275_v27 = vpop.f32.mrb[54].mxu0 }
 0xc02   : > { %7896 = vst.msk [vmem:[%s12252_s6 + $0x48] sm:$0xff] %vm318_vm0, %v7880_v24  ;;  %v9616_v40 = vadd.f32 %v9275_v27, %v12619_v32  ;;  %v7821_v54 = vpop.f32.mrb[55].mxu0 }
 0xc03   : > { %7895 = vst.msk [vmem:[%s12252_s6 + $0x40] sm:$0xff] %vm318_vm0, %v7879_v2  ;;  %v9617_v17 = vadd.f32 %v7821_v54, %v12620_v56 }
 0xc04   : > { %v7882_v41 = vadd.f32 %v9616_v40, %v8302_v23 }
 0xc05   : > { %v7881_v59 = vadd.f32 %v9617_v17, %v8302_v23  ;;  %v9278_v14 = vpop.f32.mrb[56].mxu0 }
 0xc06   : > { %7898 = vst.msk [vmem:[%s12252_s6 + $0x58] sm:$0xff] %vm318_vm0, %v7882_v41  ;;  %v9618_v42 = vadd.f32 %v9278_v14, %v12621_v15  ;;  %v7831_v51 = vpop.f32.mrb[57].mxu0 }
 0xc07   : > { %7897 = vst.msk [vmem:[%s12252_s6 + $0x50] sm:$0xff] %vm318_vm0, %v7881_v59  ;;  %v9619_v29 = vadd.f32 %v7831_v51, %v12622_v3 }
 0xc08   : > { %v7884_v20 = vadd.f32 %v9618_v42, %v8302_v23 }
 0xc09   : > { %v7883_v1 = vadd.f32 %v9619_v29, %v8302_v23  ;;  %v9281_v38 = vpop.f32.mrb[58].mxu0 }
 0xc0a   : > { %7900 = vst.msk [vmem:[%s12252_s6 + $0x68] sm:$0xff] %vm318_vm0, %v7884_v20  ;;  %v9620_v61 = vadd.f32 %v9281_v38, %v12623_v26  ;;  %v7841_v13 = vpop.f32.mrb[59].mxu0 }
 0xc0b   : > { %7899 = vst.msk [vmem:[%s12252_s6 + $0x60] sm:$0xff] %vm318_vm0, %v7883_v1  ;;  %v9621_v46 = vadd.f32 %v7841_v13, %v12624_v36 }
 0xc0c   : > { %v7886_v57 = vadd.f32 %v9620_v61, %v8302_v23 }
 0xc0d   : > { %v7885_v25 = vadd.f32 %v9621_v46, %v8302_v23 }
 0xc0e   : > { %7902 = vst.msk [vmem:[%s12252_s6 + $0x78] sm:$0xff] %vm318_vm0, %v7886_v57 }
 0xc0f   : > { %7901 = vst.msk [vmem:[%s12252_s6 + $0x70] sm:$0xff] %vm318_vm0, %v7885_v25 }
 0xc10   : > { %10337 = shalt.err (!%p10334_p3)
}
 0xc11   : > { %s10338_s13 = scalar_lea.hbm %s12297_s30, 2048  ;;  %s10342_s11 = scalar_lea.hbm %s12351_s4, 4096 }
 0xc12   : > { %p10339_p12 = scmp.ne.s32.totalorder %s12297_s30, %s10338_s13  ;;  %p10343_p2 = scmp.lt.u32.totalorder %s12297_s30, %s12351_s4 }
 0xc13   : > { %p10344_p4 = scmp.lt.u32.totalorder %s10342_s11, %s10338_s13  ;;  %p10346_p13 = scmp.lt.u32.totalorder %s10338_s13, %s12297_s30 }
 0xc14   : > { %p10340_p8 = pnand %p10339_p12, %p12625_p1 }
 0xc15   : > { %p10345_p6 = por %p10344_p4, %p10343_p2 }
 0xc16   : > { %p10341_p0 = pneg %p10340_p8 }
 0xc17   : > { %p10347_p11 = por %p10346_p13, %p10345_p6 }
 0xc19   : > { %p10348_p10 = pnand %p10347_p11, %p10341_p0 }
 0xc1b   : > { %10351 = shalt.err (!%p10348_p10)
}
 0xc1c   : > { %s10414_s6 = smov 128   ;;  %s10415_s9 = smov 8  }
 0xc1d   : > { %9664 = dma.vmem_to_hbm [thread:$0]  (%p12625_p1), %s12299_s8, 2048, %s12297_s30, %s7904_s19, %s10414_s6, %s10414_s6, %s10415_s9  }
 0xc1e PF: > { %s7933_s22 = sand.u32 1, %s10382_s15   ;;  %p12626_p5 = scmp.ne.s32.totalorder %s12440_s28, 0 }
 0xc1f   : > { %p12627_p7 = scmp.ge.s32.totalorder %s10394_s18, 2  ;;  %s7934_s23 = scalar_lea.sflag [#allocation4], %s7933_s22 }
 0xc21   : > { %p9674_p9 = pnand %p12627_p7, %p12626_p5 }
 0xc23   : > { %10377 = dma.done.wait (!%p9674_p9), %s7934_s23, 2048  }
 0xc24   : > { %10379 = vsyncadd (!%p9674_p9), %s7934_s23, 4294965248  ;;  %p20_p3 = scmp.ge.s32.totalorder %s10466_s21, 4   ;;  %s12628_s15 = smov %s10386_s16 }
 0xc25   : > { %s12629_s16 = smov %s10390_s17  ;;  %s12630_s17 = smov %s10478_s24 }
 0xc26   : > { %s12631_s18 = smov %s10466_s21  ;;  %22 = sbr.rel (!%p20_p3) target bundleno = 7 (0x7), region = 94 }
 0xc2d   :  { %7939 = vsyncpa [#allocation3], 1 }
 0xc2e   :  { %7941 = vsyncpa [#allocation3 + $0x1], 1 }
 0xc2f   :  { %7942 = vsyncpa [#allocation6], 1 }
 0xc30   :  { %7944 = vsyncpa [#allocation6 + $0x1], 1 }
 0xc31   :  { %7945 = vsyncpa [#allocation4], 1 }
 0xc32   :  { %7947 = vsyncpa [#allocation4 + $0x1], 1 }

</bundles_post_ra>
